<compile_context>
chip_gen: v5e
topology: v5e:2x2
jax: 0.10.0
libtpu: 0.0.40
codegen_flags: <defaults>
</compile_context>

<pallas_src>
import functools

import jax
import jax.numpy as jnp
from jax.experimental import pallas as pl
from jax.experimental.pallas import tpu as pltpu

LEAKY_SLOPE = 0.01   # torch.nn.LeakyReLU default
BN_EPS = 1e-5


# --------------------------------------------------------------------------
# Tiling helpers
# --------------------------------------------------------------------------
def _round_up(x, m):
    return (x + m - 1) // m * m


def _tile(dim, align, cap):
    """Return (tile, padded_dim): tile is a multiple of `align`, <= cap, divides padded."""
    r = _round_up(dim, align)
    if r <= cap:
        return r, r
    return cap, _round_up(dim, cap)


def _pad2(a, rows, cols):
    r, c = a.shape
    if r == rows and c == cols:
        return a
    return jnp.pad(a, ((0, rows - r), (0, cols - c)))


# --------------------------------------------------------------------------
# Pallas kernel: tiled  out = affine(act(x @ w + b))
#   - covers conv-as-matmul + LeakyReLU (+ BatchNorm eval affine AFTER activation)
#     and the fused Linear heads (LeakyReLU / Sigmoid epilogues).
# --------------------------------------------------------------------------
def _fused_matmul_kernel(*refs, act, has_affine):
    if has_affine:
        x_ref, w_ref, b_ref, s_ref, t_ref, o_ref, acc_ref = refs
    else:
        x_ref, w_ref, b_ref, o_ref, acc_ref = refs
        s_ref = t_ref = None

    @pl.when(pl.program_id(2) == 0)
    def _init():
        acc_ref[...] = jnp.zeros_like(acc_ref)

    acc_ref[...] += jnp.dot(x_ref[...], w_ref[...],
                            preferred_element_type=jnp.float32)

    @pl.when(pl.program_id(2) == pl.num_programs(2) - 1)
    def _finalize():
        y = acc_ref[...] + b_ref[...]                       # (tm,tn) + (1,tn) f32
        if act == "leaky_relu":
            y = jnp.where(y >= 0, y, LEAKY_SLOPE * y)
        elif act == "sigmoid":
            y = jax.nn.sigmoid(y)
        elif act != "none":
            raise ValueError(act)
        if has_affine:
            # BatchNorm2d(eval) applied AFTER the activation (torch Sequential order).
            y = y * s_ref[...] + t_ref[...]
        o_ref[...] = y.astype(o_ref.dtype)


def fused_matmul(x, w, b, act="none", scale=None, shift=None, out_dtype=jnp.float32):
    """x: (M,K), w: (K,N), b/scale/shift: (N,). Returns (M,N) in out_dtype."""
    M, K = x.shape
    K2, N = w.shape
    assert K == K2
    has_affine = scale is not None

    tm, Mp = _tile(M, 16, 256)     # bf16 sublane packing -> multiple of 16
    tk, Kp = _tile(K, 128, 1024)   # lane dim of x block
    tn, Np = _tile(N, 128, 512)    # lane dim of w/out block -> dense (unmasked) stores

    xp = _pad2(x, Mp, Kp).astype(jnp.bfloat16)              # bf16 MXU operands
    wp = _pad2(w, Kp, Np).astype(jnp.bfloat16)
    bp = _pad2(b.reshape(1, N).astype(jnp.float32), 1, Np)  # f32 epilogue operands

    args = [xp, wp, bp]
    in_specs = [
        pl.BlockSpec((tm, tk), lambda i, j, k: (i, k)),
        pl.BlockSpec((tk, tn), lambda i, j, k: (k, j)),
        pl.BlockSpec((1, tn), lambda i, j, k: (0, j)),
    ]
    if has_affine:
        args.append(_pad2(scale.reshape(1, N).astype(jnp.float32), 1, Np))
        args.append(_pad2(shift.reshape(1, N).astype(jnp.float32), 1, Np))
        in_specs += [pl.BlockSpec((1, tn), lambda i, j, k: (0, j)),
                     pl.BlockSpec((1, tn), lambda i, j, k: (0, j))]

    grid = (Mp // tm, Np // tn, Kp // tk)
    kern = functools.partial(_fused_matmul_kernel, act=act, has_affine=has_affine)

    out = pl.pallas_call(
        kern,
        out_shape=jax.ShapeDtypeStruct((Mp, Np), out_dtype),
        grid_spec=pltpu.PrefetchScalarGridSpec(
            num_scalar_prefetch=0,
            grid=grid,
            in_specs=in_specs,
            out_specs=pl.BlockSpec((tm, tn), lambda i, j, k: (i, j)),
            scratch_shapes=[pltpu.VMEM((tm, tn), jnp.float32)],
        ),
        compiler_params=pltpu.CompilerParams(
            dimension_semantics=("parallel", "parallel", "arbitrary"),
            vmem_limit_bytes=32 * 1024 * 1024,
        ),
    )(*args)

    if Mp != M or Np != N:
        out = out[:M, :N]
    return out


# --------------------------------------------------------------------------
# Glue: im2col (layout plumbing only; all FLOPs happen in the Pallas kernel)
# --------------------------------------------------------------------------
def im2col(x_nhwc, kh, kw, stride, pad):
    # TODO(synk): in-kernel patch extraction (from a VMEM-resident NHWC tile) not
    # implemented; patches are assembled by XLA and fed to the tiled matmul kernel.
    B, H, W, C = x_nhwc.shape
    xp = jnp.pad(x_nhwc, ((0, 0), (pad, pad), (pad, pad), (0, 0)))
    Ho = (H + 2 * pad - kh) // stride + 1
    Wo = (W + 2 * pad - kw) // stride + 1
    cols = []
    for i in range(kh):
        for j in range(kw):
            cols.append(xp[:, i:i + stride * Ho:stride, j:j + stride * Wo:stride, :])
    p = jnp.concatenate(cols, axis=-1)                 # (B, Ho, Wo, kh*kw*C)
    return p.reshape(B * Ho * Wo, kh * kw * C), Ho, Wo


def conv_weight_to_mat(w_oikk):
    """torch Conv2d weight (O, I, KH, KW) -> (KH*KW*I, O) matching im2col order."""
    O, I, KH, KW = w_oikk.shape
    return jnp.transpose(w_oikk, (2, 3, 1, 0)).reshape(KH * KW * I, O)


# --------------------------------------------------------------------------
# Parameter construction (deterministic, mirrors make_conv / make_linear_layer)
# --------------------------------------------------------------------------
def _normal(key, shape, std=0.05):
    return std * jax.random.normal(key, shape, dtype=jnp.float32)


def init_mlp(key, in_features, out_features, num_layers):
    layers = []
    out_final = out_features
    kidx = 0
    for i in range(num_layers - 1):
        out_features = in_features // 4
        w = _normal(jax.random.fold_in(key, kidx), (in_features, out_features)); kidx += 1
        b = _normal(jax.random.fold_in(key, kidx), (out_features,)); kidx += 1
        layers.append({"w": w, "b": b, "act": "leaky_relu"})
        # Dropout2d(0.2) between hidden layers -> identity in eval mode
        in_features = out_features
    w = _normal(jax.random.fold_in(key, kidx), (in_features, out_final)); kidx += 1
    b = _normal(jax.random.fold_in(key, kidx), (out_final,))
    layers.append({"w": w, "b": b, "act": "sigmoid"})
    return layers


def fuse_heads(head_a, head_b):
    """Fuse two same-depth MLP heads that share the same input.

    First layer: concat weights along N.  Deeper layers: block-diagonal weights
    (mathematically identical to running the two heads separately)."""
    fused = []
    for idx, (la, lb) in enumerate(zip(head_a, head_b)):
        wa, wb = la["w"], lb["w"]
        if idx == 0:
            w = jnp.concatenate([wa, wb], axis=1)
        else:
            za = jnp.zeros((wa.shape[0], wb.shape[1]), jnp.float32)
            zb = jnp.zeros((wb.shape[0], wa.shape[1]), jnp.float32)
            w = jnp.concatenate([
                jnp.concatenate([wa, za], axis=1),
                jnp.concatenate([zb, wb], axis=1),
            ], axis=0)
        b = jnp.concatenate([la["b"], lb["b"]])
        assert la["act"] == lb["act"]
        fused.append({"w": w, "b": b, "act": la["act"]})
    return fused


def init_params(key, canvas_size, num_conv_layers, num_linear_layers):
    in_ch, out_ch = 4, 4 * 16
    ds = canvas_size
    ksz, stride, pad = 3, 2, 1
    conv_layers = []
    kidx = 0
    for _ in range(num_conv_layers):
        w1 = _normal(jax.random.fold_in(key, kidx), (out_ch, in_ch, ksz, ksz)); kidx += 1
        b1 = _normal(jax.random.fold_in(key, kidx), (out_ch,)); kidx += 1
        w2 = _normal(jax.random.fold_in(key, kidx), (out_ch, out_ch, ksz, ksz)); kidx += 1
        b2 = _normal(jax.random.fold_in(key, kidx), (out_ch,)); kidx += 1
        # BatchNorm2d eval with fresh running stats: y = (x - 0)/sqrt(1+eps)*1 + 0,
        # applied AFTER LeakyReLU as in the torch Sequential.
        bn_scale = jnp.full((out_ch,), 1.0 / jnp.sqrt(1.0 + BN_EPS), jnp.float32)
        bn_shift = jnp.zeros((out_ch,), jnp.float32)
        conv_layers.append({
            "w1": conv_weight_to_mat(w1), "b1": b1,
            "w2": conv_weight_to_mat(w2), "b2": b2,
            "bn_scale": bn_scale, "bn_shift": bn_shift,
            "cout": out_ch, "k": ksz, "s": stride, "p": pad,
        })
        in_ch = out_ch
        out_ch *= 2
        for _ in range(2):
            ds = (ds + 2 * pad - ksz) // stride + 1
        ksz = min(ksz + 2, 5)
        stride = max(stride - 1, 2)
    out_ch //= 2
    assert ds > 0
    img_dim = out_ch * ds * ds

    pos_head = init_mlp(jax.random.fold_in(key, 1000), img_dim, 2 * 4, num_linear_layers)
    color_head = init_mlp(jax.random.fold_in(key, 2000), img_dim, 2 * 3, num_linear_layers)

    # Permute the first linear layers' rows from NCHW flatten order (torch reshape(B,-1))
    # to NHWC flatten order, so no feature-map transpose is needed in the forward pass.
    perm = jnp.transpose(jnp.arange(img_dim).reshape(out_ch, ds, ds), (1, 2, 0)).reshape(-1)
    pos_head[0] = dict(pos_head[0], w=pos_head[0]["w"][perm])
    color_head[0] = dict(color_head[0], w=color_head[0]["w"][perm])

    heads = fuse_heads(pos_head, color_head)
    return {"conv": conv_layers, "heads": heads,
            "pos_out": 2 * 4, "color_out": 2 * 3, "img_dim": img_dim}


# --------------------------------------------------------------------------
# Forward (Captioner.forward)
# --------------------------------------------------------------------------
def captioner_forward(params, img, edges):
    """img: (B, 3, H, W) NCHW (like PyTorch); edges: (B, H, W)."""
    inp = jnp.concatenate([img, edges[:, None, :, :]], axis=1)   # (B, 4, H, W)
    x = jnp.transpose(inp, (0, 2, 3, 1))                          # NHWC internally
    # Intermediate feature maps live in bf16 (they are cast to bf16 for the MXU anyway);
    # this halves HBM writeback/reload traffic between layers.  Epilogues stay f32.
    x = x.astype(jnp.bfloat16)
    B = x.shape[0]

    for lyr in params["conv"]:
        k, s, p = lyr["k"], lyr["s"], lyr["p"]
        cout = lyr["cout"]

        # Conv2d + LeakyReLU
        patches, Ho, Wo = im2col(x, k, k, s, p)
        y = fused_matmul(patches, lyr["w1"], lyr["b1"], act="leaky_relu",
                         out_dtype=jnp.bfloat16)
        x = y.reshape(B, Ho, Wo, cout)

        # Conv2d + LeakyReLU + BatchNorm2d(eval)  [Dropout2d(0.2) = identity in eval]
        patches, Ho, Wo = im2col(x, k, k, s, p)
        y = fused_matmul(patches, lyr["w2"], lyr["b2"], act="leaky_relu",
                         scale=lyr["bn_scale"], shift=lyr["bn_shift"],
                         out_dtype=jnp.bfloat16)
        x = y.reshape(B, Ho, Wo, cout)

    # NHWC flatten; first head-layer weights were row-permuted at init so this matches
    # torch's output.reshape(B, -1) on NCHW exactly (no transpose pass).
    feat = x.reshape(B, -1)
    assert feat.shape[1] == params["img_dim"]

    # Both heads consume `feat`: run them as a single fused (block-diagonal) MLP.
    h = feat
    n_head_layers = len(params["heads"])
    for idx, lyr in enumerate(params["heads"]):
        last = idx == n_head_layers - 1
        h = fused_matmul(h, lyr["w"], lyr["b"], act=lyr["act"],
                         out_dtype=jnp.float32 if last else jnp.bfloat16)
    pos_pred = h[:, :params["pos_out"]]
    color_pred = h[:, params["pos_out"]:params["pos_out"] + params["color_out"]]
    return pos_pred, color_pred


# --------------------------------------------------------------------------
if __name__ == "__main__":
    B, canvas = 2, 16
    num_conv_layers, num_linear_layers = 1, 2

    key = jax.random.PRNGKey(0)
    k_img, k_edges = jax.random.split(key)
    img = jax.random.uniform(k_img, (B, 3, canvas, canvas), jnp.float32)
    edges = jax.random.uniform(k_edges, (B, canvas, canvas), jnp.float32)

    params = init_params(jax.random.PRNGKey(1), canvas, num_conv_layers, num_linear_layers)

    fwd = jax.jit(functools.partial(captioner_forward, params))
    pos_pred, color_pred = jax.block_until_ready(fwd(img, edges))

    assert pos_pred.shape == (B, 8), pos_pred.shape
    assert color_pred.shape == (B, 6), color_pred.shape
    assert not bool(jnp.any(jnp.isnan(pos_pred)))
    assert not bool(jnp.any(jnp.isnan(color_pred)))
    assert bool(jnp.all((pos_pred >= 0) & (pos_pred <= 1)))
    assert bool(jnp.all((color_pred >= 0) & (color_pred <= 1)))
    print("KERNEL_OK")
</pallas_src>

<mosaic_0001>
module attributes {stable_mosaic.version = 11 : i64} {
  func.func @_fused_matmul_kernel(%arg0: i32, %arg1: i32, %arg2: i32, %arg3: memref<128x128xbf16, #tpu.memory_space<vmem>>, %arg4: memref<128x128xbf16, #tpu.memory_space<vmem>>, %arg5: memref<1x128xf32, #tpu.memory_space<vmem>>, %arg6: memref<128x128xbf16, #tpu.memory_space<vmem>>, %arg7: memref<128x128xf32, #tpu.memory_space<vmem>>) attributes {dimension_semantics = [#tpu.dimension_semantics<parallel>, #tpu.dimension_semantics<parallel>, #tpu.dimension_semantics<arbitrary>], iteration_bounds = array<i64: 1, 1, 1>, scalar_prefetch = 0 : i64, scratch_operands = 1 : i64, tpu.core_type = #tpu.core_type<tc>, window_params = [{transform_indices = @transform_0, window_bounds = array<i64: 128, 128>}, {transform_indices = @transform_1, window_bounds = array<i64: 128, 128>}, {transform_indices = @transform_2, window_bounds = array<i64: 1, 128>}, {transform_indices = @transform_3, window_bounds = array<i64: 128, 128>}]} {
    %c0_i32 = arith.constant 0 : i32
    %0 = arith.cmpi eq, %arg2, %c0_i32 : i32
    %1 = arith.extui %0 : i1 to i32
    %c0_i32_0 = arith.constant 0 : i32
    %2 = arith.cmpi ne, %1, %c0_i32_0 : i32
    scf.if %2 {
      %cst_10 = arith.constant 0.000000e+00 : f32
      %12 = vector.broadcast %cst_10 : f32 to vector<128x128xf32>
      %c0_11 = arith.constant 0 : index
      %c0_12 = arith.constant 0 : index
      %13 = vector.load %arg7[%c0_11, %c0_12] : memref<128x128xf32, #tpu.memory_space<vmem>>, vector<128x128xf32>
      tpu.vector_store %arg7[%c0_11, %c0_12], %12 {strides = array<i32>} : memref<128x128xf32, #tpu.memory_space<vmem>>, vector<128x128xf32>,
    } else {
    }
    %c0 = arith.constant 0 : index
    %c0_1 = arith.constant 0 : index
    %3 = vector.load %arg7[%c0, %c0_1] : memref<128x128xf32, #tpu.memory_space<vmem>>, vector<128x128xf32>
    %c0_2 = arith.constant 0 : index
    %c0_3 = arith.constant 0 : index
    %4 = vector.load %arg3[%c0_2, %c0_3] : memref<128x128xbf16, #tpu.memory_space<vmem>>, vector<128x128xbf16>
    %c0_4 = arith.constant 0 : index
    %c0_5 = arith.constant 0 : index
    %5 = vector.load %arg4[%c0_4, %c0_5] : memref<128x128xbf16, #tpu.memory_space<vmem>>, vector<128x128xbf16>
    %cst = arith.constant dense<0.000000e+00> : vector<128x128xf32>
    %6 = tpu.matmul %4, %5, %cst {dimension_numbers = #tpu.dot_dimension_numbers<[1], [0], [0], [1], [0, 0, 1, 1], [], []>} : vector<128x128xbf16>, vector<128x128xbf16>, vector<128x128xf32> -> vector<128x128xf32>
    %7 = arith.addf %3, %6 : vector<128x128xf32>
    %c0_6 = arith.constant 0 : index
    %c0_7 = arith.constant 0 : index
    %8 = vector.load %arg7[%c0_6, %c0_7] : memref<128x128xf32, #tpu.memory_space<vmem>>, vector<128x128xf32>
    tpu.vector_store %arg7[%c0_6, %c0_7], %7 {strides = array<i32>} : memref<128x128xf32, #tpu.memory_space<vmem>>, vector<128x128xf32>,
    %c0_i32_8 = arith.constant 0 : i32
    %9 = arith.cmpi eq, %arg2, %c0_i32_8 : i32
    %10 = arith.extui %9 : i1 to i32
    %c0_i32_9 = arith.constant 0 : i32
    %11 = arith.cmpi ne, %10, %c0_i32_9 : i32
    scf.if %11 {
      %c0_10 = arith.constant 0 : index
      %c0_11 = arith.constant 0 : index
      %12 = vector.load %arg7[%c0_10, %c0_11] : memref<128x128xf32, #tpu.memory_space<vmem>>, vector<128x128xf32>
      %c0_12 = arith.constant 0 : index
      %c0_13 = arith.constant 0 : index
      %13 = vector.load %arg5[%c0_12, %c0_13] : memref<1x128xf32, #tpu.memory_space<vmem>>, vector<1x128xf32>
      %14 = vector.broadcast %13 : vector<1x128xf32> to vector<128x128xf32>
      %15 = arith.addf %12, %14 : vector<128x128xf32>
      %cst_14 = arith.constant 0.000000e+00 : f32
      %16 = vector.broadcast %cst_14 : f32 to vector<128x128xf32>
      %17 = arith.cmpf oge, %15, %16 : vector<128x128xf32>
      %cst_15 = arith.constant 0.00999999977 : f32
      %18 = vector.broadcast %cst_15 : f32 to vector<128x128xf32>
      %19 = arith.mulf %18, %15 : vector<128x128xf32>
      %20 = arith.select %17, %15, %19 : vector<128x128xi1>, vector<128x128xf32>
      %21 = arith.truncf %20 : vector<128x128xf32> to vector<128x128xbf16>
      %c0_16 = arith.constant 0 : index
      %c0_17 = arith.constant 0 : index
      %22 = vector.load %arg6[%c0_16, %c0_17] : memref<128x128xbf16, #tpu.memory_space<vmem>>, vector<128x128xbf16>
      tpu.vector_store %arg6[%c0_16, %c0_17], %21 {strides = array<i32>} : memref<128x128xbf16, #tpu.memory_space<vmem>>, vector<128x128xbf16>,
    } else {
    }
    return
  }
  func.func @transform_0(%arg0: i32, %arg1: i32, %arg2: i32) -> (i32, i32) {
    %c0_i32 = arith.constant 0 : i32
    return %arg0, %arg2 : i32, i32
  }
  func.func @transform_1(%arg0: i32, %arg1: i32, %arg2: i32) -> (i32, i32) {
    %c0_i32 = arith.constant 0 : i32
    return %arg2, %arg1 : i32, i32
  }
  func.func @transform_2(%arg0: i32, %arg1: i32, %arg2: i32) -> (i32, i32) {
    %c0_i32 = arith.constant 0 : i32
    %c0_i32_0 = arith.constant 0 : i32
    return %c0_i32, %arg1 : i32, i32
  }
  func.func @transform_3(%arg0: i32, %arg1: i32, %arg2: i32) -> (i32, i32) {
    %c0_i32 = arith.constant 0 : i32
    return %arg0, %arg1 : i32, i32
  }
}

module attributes {stable_mosaic.version = 11 : i64} {
  func.func @_fused_matmul_kernel(%arg0: i32, %arg1: i32, %arg2: i32, %arg3: memref<32x640xbf16, #tpu.memory_space<vmem>>, %arg4: memref<640x128xbf16, #tpu.memory_space<vmem>>, %arg5: memref<1x128xf32, #tpu.memory_space<vmem>>, %arg6: memref<1x128xf32, #tpu.memory_space<vmem>>, %arg7: memref<1x128xf32, #tpu.memory_space<vmem>>, %arg8: memref<32x128xbf16, #tpu.memory_space<vmem>>, %arg9: memref<32x128xf32, #tpu.memory_space<vmem>>) attributes {dimension_semantics = [#tpu.dimension_semantics<parallel>, #tpu.dimension_semantics<parallel>, #tpu.dimension_semantics<arbitrary>], iteration_bounds = array<i64: 1, 1, 1>, scalar_prefetch = 0 : i64, scratch_operands = 1 : i64, tpu.core_type = #tpu.core_type<tc>, window_params = [{transform_indices = @transform_0, window_bounds = array<i64: 32, 640>}, {transform_indices = @transform_1, window_bounds = array<i64: 640, 128>}, {transform_indices = @transform_2, window_bounds = array<i64: 1, 128>}, {transform_indices = @transform_3, window_bounds = array<i64: 1, 128>}, {transform_indices = @transform_4, window_bounds = array<i64: 1, 128>}, {transform_indices = @transform_5, window_bounds = array<i64: 32, 128>}]} {
    %c0_i32 = arith.constant 0 : i32
    %0 = arith.cmpi eq, %arg2, %c0_i32 : i32
    %1 = arith.extui %0 : i1 to i32
    %c0_i32_0 = arith.constant 0 : i32
    %2 = arith.cmpi ne, %1, %c0_i32_0 : i32
    scf.if %2 {
      %cst_10 = arith.constant 0.000000e+00 : f32
      %12 = vector.broadcast %cst_10 : f32 to vector<32x128xf32>
      %c0_11 = arith.constant 0 : index
      %c0_12 = arith.constant 0 : index
      %13 = vector.load %arg9[%c0_11, %c0_12] : memref<32x128xf32, #tpu.memory_space<vmem>>, vector<32x128xf32>
      tpu.vector_store %arg9[%c0_11, %c0_12], %12 {strides = array<i32>} : memref<32x128xf32, #tpu.memory_space<vmem>>, vector<32x128xf32>,
    } else {
    }
    %c0 = arith.constant 0 : index
    %c0_1 = arith.constant 0 : index
    %3 = vector.load %arg9[%c0, %c0_1] : memref<32x128xf32, #tpu.memory_space<vmem>>, vector<32x128xf32>
    %c0_2 = arith.constant 0 : index
    %c0_3 = arith.constant 0 : index
    %4 = vector.load %arg3[%c0_2, %c0_3] : memref<32x640xbf16, #tpu.memory_space<vmem>>, vector<32x640xbf16>
    %c0_4 = arith.constant 0 : index
    %c0_5 = arith.constant 0 : index
    %5 = vector.load %arg4[%c0_4, %c0_5] : memref<640x128xbf16, #tpu.memory_space<vmem>>, vector<640x128xbf16>
    %cst = arith.constant dense<0.000000e+00> : vector<32x128xf32>
    %6 = tpu.matmul %4, %5, %cst {dimension_numbers = #tpu.dot_dimension_numbers<[1], [0], [0], [1], [0, 0, 1, 1], [], []>} : vector<32x640xbf16>, vector<640x128xbf16>, vector<32x128xf32> -> vector<32x128xf32>
    %7 = arith.addf %3, %6 : vector<32x128xf32>
    %c0_6 = arith.constant 0 : index
    %c0_7 = arith.constant 0 : index
    %8 = vector.load %arg9[%c0_6, %c0_7] : memref<32x128xf32, #tpu.memory_space<vmem>>, vector<32x128xf32>
    tpu.vector_store %arg9[%c0_6, %c0_7], %7 {strides = array<i32>} : memref<32x128xf32, #tpu.memory_space<vmem>>, vector<32x128xf32>,
    %c0_i32_8 = arith.constant 0 : i32
    %9 = arith.cmpi eq, %arg2, %c0_i32_8 : i32
    %10 = arith.extui %9 : i1 to i32
    %c0_i32_9 = arith.constant 0 : i32
    %11 = arith.cmpi ne, %10, %c0_i32_9 : i32
    scf.if %11 {
      %c0_10 = arith.constant 0 : index
      %c0_11 = arith.constant 0 : index
      %12 = vector.load %arg9[%c0_10, %c0_11] : memref<32x128xf32, #tpu.memory_space<vmem>>, vector<32x128xf32>
      %c0_12 = arith.constant 0 : index
      %c0_13 = arith.constant 0 : index
      %13 = vector.load %arg5[%c0_12, %c0_13] : memref<1x128xf32, #tpu.memory_space<vmem>>, vector<1x128xf32>
      %14 = vector.broadcast %13 : vector<1x128xf32> to vector<32x128xf32>
      %15 = arith.addf %12, %14 : vector<32x128xf32>
      %cst_14 = arith.constant 0.000000e+00 : f32
      %16 = vector.broadcast %cst_14 : f32 to vector<32x128xf32>
      %17 = arith.cmpf oge, %15, %16 : vector<32x128xf32>
      %cst_15 = arith.constant 0.00999999977 : f32
      %18 = vector.broadcast %cst_15 : f32 to vector<32x128xf32>
      %19 = arith.mulf %18, %15 : vector<32x128xf32>
      %20 = arith.select %17, %15, %19 : vector<32x128xi1>, vector<32x128xf32>
      %c0_16 = arith.constant 0 : index
      %c0_17 = arith.constant 0 : index
      %21 = vector.load %arg6[%c0_16, %c0_17] : memref<1x128xf32, #tpu.memory_space<vmem>>, vector<1x128xf32>
      %22 = vector.broadcast %21 : vector<1x128xf32> to vector<32x128xf32>
      %23 = arith.mulf %20, %22 : vector<32x128xf32>
      %c0_18 = arith.constant 0 : index
      %c0_19 = arith.constant 0 : index
      %24 = vector.load %arg7[%c0_18, %c0_19] : memref<1x128xf32, #tpu.memory_space<vmem>>, vector<1x128xf32>
      %25 = vector.broadcast %24 : vector<1x128xf32> to vector<32x128xf32>
      %26 = arith.addf %23, %25 : vector<32x128xf32>
      %27 = arith.truncf %26 : vector<32x128xf32> to vector<32x128xbf16>
      %c0_20 = arith.constant 0 : index
      %c0_21 = arith.constant 0 : index
      %28 = vector.load %arg8[%c0_20, %c0_21] : memref<32x128xbf16, #tpu.memory_space<vmem>>, vector<32x128xbf16>
      tpu.vector_store %arg8[%c0_20, %c0_21], %27 {strides = array<i32>} : memref<32x128xbf16, #tpu.memory_space<vmem>>, vector<32x128xbf16>,
    } else {
    }
    return
  }
  func.func @transform_0(%arg0: i32, %arg1: i32, %arg2: i32) -> (i32, i32) {
    %c0_i32 = arith.constant 0 : i32
    return %arg0, %arg2 : i32, i32
  }
  func.func @transform_1(%arg0: i32, %arg1: i32, %arg2: i32) -> (i32, i32) {
    %c0_i32 = arith.constant 0 : i32
    return %arg2, %arg1 : i32, i32
  }
  func.func @transform_2(%arg0: i32, %arg1: i32, %arg2: i32) -> (i32, i32) {
    %c0_i32 = arith.constant 0 : i32
    %c0_i32_0 = arith.constant 0 : i32
    return %c0_i32, %arg1 : i32, i32
  }
  func.func @transform_3(%arg0: i32, %arg1: i32, %arg2: i32) -> (i32, i32) {
    %c0_i32 = arith.constant 0 : i32
    %c0_i32_0 = arith.constant 0 : i32
    return %c0_i32, %arg1 : i32, i32
  }
  func.func @transform_4(%arg0: i32, %arg1: i32, %arg2: i32) -> (i32, i32) {
    %c0_i32 = arith.constant 0 : i32
    %c0_i32_0 = arith.constant 0 : i32
    return %c0_i32, %arg1 : i32, i32
  }
  func.func @transform_5(%arg0: i32, %arg1: i32, %arg2: i32) -> (i32, i32) {
    %c0_i32 = arith.constant 0 : i32
    return %arg0, %arg1 : i32, i32
  }
}

module attributes {stable_mosaic.version = 11 : i64} {
  func.func @_fused_matmul_kernel(%arg0: i32, %arg1: i32, %arg2: i32, %arg3: memref<16x1024xbf16, #tpu.memory_space<vmem>>, %arg4: memref<1024x512xbf16, #tpu.memory_space<vmem>>, %arg5: memref<1x512xf32, #tpu.memory_space<vmem>>, %arg6: memref<16x512xbf16, #tpu.memory_space<vmem>>, %arg7: memref<16x512xf32, #tpu.memory_space<vmem>>) attributes {dimension_semantics = [#tpu.dimension_semantics<parallel>, #tpu.dimension_semantics<parallel>, #tpu.dimension_semantics<arbitrary>], iteration_bounds = array<i64: 1, 1, 1>, scalar_prefetch = 0 : i64, scratch_operands = 1 : i64, tpu.core_type = #tpu.core_type<tc>, window_params = [{transform_indices = @transform_0, window_bounds = array<i64: 16, 1024>}, {transform_indices = @transform_1, window_bounds = array<i64: 1024, 512>}, {transform_indices = @transform_2, window_bounds = array<i64: 1, 512>}, {transform_indices = @transform_3, window_bounds = array<i64: 16, 512>}]} {
    %c0_i32 = arith.constant 0 : i32
    %0 = arith.cmpi eq, %arg2, %c0_i32 : i32
    %1 = arith.extui %0 : i1 to i32
    %c0_i32_0 = arith.constant 0 : i32
    %2 = arith.cmpi ne, %1, %c0_i32_0 : i32
    scf.if %2 {
      %cst_10 = arith.constant 0.000000e+00 : f32
      %12 = vector.broadcast %cst_10 : f32 to vector<16x512xf32>
      %c0_11 = arith.constant 0 : index
      %c0_12 = arith.constant 0 : index
      %13 = vector.load %arg7[%c0_11, %c0_12] : memref<16x512xf32, #tpu.memory_space<vmem>>, vector<16x512xf32>
      tpu.vector_store %arg7[%c0_11, %c0_12], %12 {strides = array<i32>} : memref<16x512xf32, #tpu.memory_space<vmem>>, vector<16x512xf32>,
    } else {
    }
    %c0 = arith.constant 0 : index
    %c0_1 = arith.constant 0 : index
    %3 = vector.load %arg7[%c0, %c0_1] : memref<16x512xf32, #tpu.memory_space<vmem>>, vector<16x512xf32>
    %c0_2 = arith.constant 0 : index
    %c0_3 = arith.constant 0 : index
    %4 = vector.load %arg3[%c0_2, %c0_3] : memref<16x1024xbf16, #tpu.memory_space<vmem>>, vector<16x1024xbf16>
    %c0_4 = arith.constant 0 : index
    %c0_5 = arith.constant 0 : index
    %5 = vector.load %arg4[%c0_4, %c0_5] : memref<1024x512xbf16, #tpu.memory_space<vmem>>, vector<1024x512xbf16>
    %cst = arith.constant dense<0.000000e+00> : vector<16x512xf32>
    %6 = tpu.matmul %4, %5, %cst {dimension_numbers = #tpu.dot_dimension_numbers<[1], [0], [0], [1], [0, 0, 1, 1], [], []>} : vector<16x1024xbf16>, vector<1024x512xbf16>, vector<16x512xf32> -> vector<16x512xf32>
    %7 = arith.addf %3, %6 : vector<16x512xf32>
    %c0_6 = arith.constant 0 : index
    %c0_7 = arith.constant 0 : index
    %8 = vector.load %arg7[%c0_6, %c0_7] : memref<16x512xf32, #tpu.memory_space<vmem>>, vector<16x512xf32>
    tpu.vector_store %arg7[%c0_6, %c0_7], %7 {strides = array<i32>} : memref<16x512xf32, #tpu.memory_space<vmem>>, vector<16x512xf32>,
    %c0_i32_8 = arith.constant 0 : i32
    %9 = arith.cmpi eq, %arg2, %c0_i32_8 : i32
    %10 = arith.extui %9 : i1 to i32
    %c0_i32_9 = arith.constant 0 : i32
    %11 = arith.cmpi ne, %10, %c0_i32_9 : i32
    scf.if %11 {
      %c0_10 = arith.constant 0 : index
      %c0_11 = arith.constant 0 : index
      %12 = vector.load %arg7[%c0_10, %c0_11] : memref<16x512xf32, #tpu.memory_space<vmem>>, vector<16x512xf32>
      %c0_12 = arith.constant 0 : index
      %c0_13 = arith.constant 0 : index
      %13 = vector.load %arg5[%c0_12, %c0_13] : memref<1x512xf32, #tpu.memory_space<vmem>>, vector<1x512xf32>
      %14 = vector.broadcast %13 : vector<1x512xf32> to vector<16x512xf32>
      %15 = arith.addf %12, %14 : vector<16x512xf32>
      %cst_14 = arith.constant 0.000000e+00 : f32
      %16 = vector.broadcast %cst_14 : f32 to vector<16x512xf32>
      %17 = arith.cmpf oge, %15, %16 : vector<16x512xf32>
      %cst_15 = arith.constant 0.00999999977 : f32
      %18 = vector.broadcast %cst_15 : f32 to vector<16x512xf32>
      %19 = arith.mulf %18, %15 : vector<16x512xf32>
      %20 = arith.select %17, %15, %19 : vector<16x512xi1>, vector<16x512xf32>
      %21 = arith.truncf %20 : vector<16x512xf32> to vector<16x512xbf16>
      %c0_16 = arith.constant 0 : index
      %c0_17 = arith.constant 0 : index
      %22 = vector.load %arg6[%c0_16, %c0_17] : memref<16x512xbf16, #tpu.memory_space<vmem>>, vector<16x512xbf16>
      tpu.vector_store %arg6[%c0_16, %c0_17], %21 {strides = array<i32>} : memref<16x512xbf16, #tpu.memory_space<vmem>>, vector<16x512xbf16>,
    } else {
    }
    return
  }
  func.func @transform_0(%arg0: i32, %arg1: i32, %arg2: i32) -> (i32, i32) {
    %c0_i32 = arith.constant 0 : i32
    return %arg0, %arg2 : i32, i32
  }
  func.func @transform_1(%arg0: i32, %arg1: i32, %arg2: i32) -> (i32, i32) {
    %c0_i32 = arith.constant 0 : i32
    return %arg2, %arg1 : i32, i32
  }
  func.func @transform_2(%arg0: i32, %arg1: i32, %arg2: i32) -> (i32, i32) {
    %c0_i32 = arith.constant 0 : i32
    %c0_i32_0 = arith.constant 0 : i32
    return %c0_i32, %arg1 : i32, i32
  }
  func.func @transform_3(%arg0: i32, %arg1: i32, %arg2: i32) -> (i32, i32) {
    %c0_i32 = arith.constant 0 : i32
    return %arg0, %arg1 : i32, i32
  }
}

module attributes {stable_mosaic.version = 11 : i64} {
  func.func @_fused_matmul_kernel(%arg0: i32, %arg1: i32, %arg2: i32, %arg3: memref<16x512xbf16, #tpu.memory_space<vmem>>, %arg4: memref<512x128xbf16, #tpu.memory_space<vmem>>, %arg5: memref<1x128xf32, #tpu.memory_space<vmem>>, %arg6: memref<16x128xf32, #tpu.memory_space<vmem>>, %arg7: memref<16x128xf32, #tpu.memory_space<vmem>>) attributes {dimension_semantics = [#tpu.dimension_semantics<parallel>, #tpu.dimension_semantics<parallel>, #tpu.dimension_semantics<arbitrary>], iteration_bounds = array<i64: 1, 1, 1>, scalar_prefetch = 0 : i64, scratch_operands = 1 : i64, tpu.core_type = #tpu.core_type<tc>, window_params = [{transform_indices = @transform_0, window_bounds = array<i64: 16, 512>}, {transform_indices = @transform_1, window_bounds = array<i64: 512, 128>}, {transform_indices = @transform_2, window_bounds = array<i64: 1, 128>}, {transform_indices = @transform_3, window_bounds = array<i64: 16, 128>}]} {
    %c0_i32 = arith.constant 0 : i32
    %0 = arith.cmpi eq, %arg2, %c0_i32 : i32
    %1 = arith.extui %0 : i1 to i32
    %c0_i32_0 = arith.constant 0 : i32
    %2 = arith.cmpi ne, %1, %c0_i32_0 : i32
    scf.if %2 {
      %cst_10 = arith.constant 0.000000e+00 : f32
      %12 = vector.broadcast %cst_10 : f32 to vector<16x128xf32>
      %c0_11 = arith.constant 0 : index
      %c0_12 = arith.constant 0 : index
      %13 = vector.load %arg7[%c0_11, %c0_12] : memref<16x128xf32, #tpu.memory_space<vmem>>, vector<16x128xf32>
      tpu.vector_store %arg7[%c0_11, %c0_12], %12 {strides = array<i32>} : memref<16x128xf32, #tpu.memory_space<vmem>>, vector<16x128xf32>,
    } else {
    }
    %c0 = arith.constant 0 : index
    %c0_1 = arith.constant 0 : index
    %3 = vector.load %arg7[%c0, %c0_1] : memref<16x128xf32, #tpu.memory_space<vmem>>, vector<16x128xf32>
    %c0_2 = arith.constant 0 : index
    %c0_3 = arith.constant 0 : index
    %4 = vector.load %arg3[%c0_2, %c0_3] : memref<16x512xbf16, #tpu.memory_space<vmem>>, vector<16x512xbf16>
    %c0_4 = arith.constant 0 : index
    %c0_5 = arith.constant 0 : index
    %5 = vector.load %arg4[%c0_4, %c0_5] : memref<512x128xbf16, #tpu.memory_space<vmem>>, vector<512x128xbf16>
    %cst = arith.constant dense<0.000000e+00> : vector<16x128xf32>
    %6 = tpu.matmul %4, %5, %cst {dimension_numbers = #tpu.dot_dimension_numbers<[1], [0], [0], [1], [0, 0, 1, 1], [], []>} : vector<16x512xbf16>, vector<512x128xbf16>, vector<16x128xf32> -> vector<16x128xf32>
    %7 = arith.addf %3, %6 : vector<16x128xf32>
    %c0_6 = arith.constant 0 : index
    %c0_7 = arith.constant 0 : index
    %8 = vector.load %arg7[%c0_6, %c0_7] : memref<16x128xf32, #tpu.memory_space<vmem>>, vector<16x128xf32>
    tpu.vector_store %arg7[%c0_6, %c0_7], %7 {strides = array<i32>} : memref<16x128xf32, #tpu.memory_space<vmem>>, vector<16x128xf32>,
    %c0_i32_8 = arith.constant 0 : i32
    %9 = arith.cmpi eq, %arg2, %c0_i32_8 : i32
    %10 = arith.extui %9 : i1 to i32
    %c0_i32_9 = arith.constant 0 : i32
    %11 = arith.cmpi ne, %10, %c0_i32_9 : i32
    scf.if %11 {
      %c0_10 = arith.constant 0 : index
      %c0_11 = arith.constant 0 : index
      %12 = vector.load %arg7[%c0_10, %c0_11] : memref<16x128xf32, #tpu.memory_space<vmem>>, vector<16x128xf32>
      %c0_12 = arith.constant 0 : index
      %c0_13 = arith.constant 0 : index
      %13 = vector.load %arg5[%c0_12, %c0_13] : memref<1x128xf32, #tpu.memory_space<vmem>>, vector<1x128xf32>
      %14 = vector.broadcast %13 : vector<1x128xf32> to vector<16x128xf32>
      %15 = arith.addf %12, %14 : vector<16x128xf32>
      %16 = arith.negf %15 : vector<16x128xf32>
      %17 = math.exp %16 : vector<16x128xf32>
      %cst_14 = arith.constant 1.000000e+00 : f32
      %18 = vector.broadcast %cst_14 : f32 to vector<16x128xf32>
      %19 = arith.addf %18, %17 : vector<16x128xf32>
      %20 = arith.divf %18, %19 : vector<16x128xf32>
      %c0_15 = arith.constant 0 : index
      %c0_16 = arith.constant 0 : index
      %21 = vector.load %arg6[%c0_15, %c0_16] : memref<16x128xf32, #tpu.memory_space<vmem>>, vector<16x128xf32>
      tpu.vector_store %arg6[%c0_15, %c0_16], %20 {strides = array<i32>} : memref<16x128xf32, #tpu.memory_space<vmem>>, vector<16x128xf32>,
    } else {
    }
    return
  }
  func.func @transform_0(%arg0: i32, %arg1: i32, %arg2: i32) -> (i32, i32) {
    %c0_i32 = arith.constant 0 : i32
    return %arg0, %arg2 : i32, i32
  }
  func.func @transform_1(%arg0: i32, %arg1: i32, %arg2: i32) -> (i32, i32) {
    %c0_i32 = arith.constant 0 : i32
    return %arg2, %arg1 : i32, i32
  }
  func.func @transform_2(%arg0: i32, %arg1: i32, %arg2: i32) -> (i32, i32) {
    %c0_i32 = arith.constant 0 : i32
    %c0_i32_0 = arith.constant 0 : i32
    return %c0_i32, %arg1 : i32, i32
  }
  func.func @transform_3(%arg0: i32, %arg1: i32, %arg2: i32) -> (i32, i32) {
    %c0_i32 = arith.constant 0 : i32
    return %arg0, %arg1 : i32, i32
  }
}

</mosaic_0001>

<bundles_post_ra>
// kernel: captioner_forward.4
= control target key start
LH: loop header
LB: loop body
LE: loop exit
PB: predicated region body
PF: predicated region fallthrough
CT: control target
= control target key end

     0   :  { %s647_s1 = inlined_call_operand.vmem [shape: bf16[128,128], index: 1, kind: input, shape index: {}]   ;;  %s648_s2 = inlined_call_operand.vmem [shape: f32[1,128], index: 2, kind: input, shape index: {}]   ;;  %s649_s0 = inlined_call_operand.vmem [shape: bf16[128,128], index: 0, kind: input, shape index: {}]   ;;  %s650_s3 = inlined_call_operand.vmem [shape: bf16[128,128], index: 3, kind: output, shape index: {}]  }
   0x1   :  { %v461_v0 = vld [vmem:[%s647_s1 + $0x38] sm:$0xff]  ;;  %v460_v1 = vld [vmem:[%s647_s1 + $0x30] sm:$0xff]  ;;  %v459_v2 = vld [vmem:[%s647_s1 + $0x28] sm:$0xff] }
   0x2   :  { %178 = vmatpush.bf16.msra.mxu0 %v461_v0  ;;  %509 = vmatpush.bf16.msra.mxu1 %v461_v0  ;;  %v458_v3 = vld [vmem:[%s647_s1 + $0x20] sm:$0xff]  ;;  %v457_v4 = vld [vmem:[%s647_s1 + $0x18] sm:$0xff]  ;;  %v456_v5 = vld [vmem:[%s647_s1 + $0x10] sm:$0xff] }
   0x3   :  { %510 = vmatpush.bf16.msra.mxu2 %v461_v0  ;;  %511 = vmatpush.bf16.msra.mxu3 %v461_v0  ;;  %v455_v6 = vld [vmem:[%s647_s1 + $0x8] sm:$0xff]  ;;  %v454_v7 = vld [vmem:[%s647_s1] sm:$0xff]  ;;  %v448_v9 = vld [vmem:[%s649_s0 + $0x10] sm:$0xff] }
   0x4   :  { %v446_v8 = vld [vmem:[%s649_s0] sm:$0xff]  ;;  %v452_v11 = vld [vmem:[%s649_s0 + $0x30] sm:$0xff]  ;;  %v447_v12 = vld [vmem:[%s649_s0 + $0x8] sm:$0xff] }
   0x5   :  { %v450_v10 = vld [vmem:[%s649_s0 + $0x20] sm:$0xff]  ;;  %v449_v13 = vld [vmem:[%s649_s0 + $0x18] sm:$0xff]  ;;  %v451_v14 = vld [vmem:[%s649_s0 + $0x28] sm:$0xff] }
   0x6   :  { %179 = vmatpush.bf16.msra.mxu0 %v460_v1  ;;  %512 = vmatpush.bf16.msra.mxu1 %v460_v1  ;;  %v453_v15 = vld [vmem:[%s649_s0 + $0x38] sm:$0xff]  ;;  %v605_v18 = vld [vmem:[%s648_s2] ss:$0 sm:$0xff] }
   0x7   :  { %513 = vmatpush.bf16.msra.mxu2 %v460_v1  ;;  %514 = vmatpush.bf16.msra.mxu3 %v460_v1 }
   0xa   :  { %180 = vmatpush.bf16.msra.mxu0 %v459_v2  ;;  %515 = vmatpush.bf16.msra.mxu1 %v459_v2 }
   0xb   :  { %516 = vmatpush.bf16.msra.mxu2 %v459_v2  ;;  %517 = vmatpush.bf16.msra.mxu3 %v459_v2 }
   0xe   :  { %181 = vmatpush.bf16.msra.mxu0 %v458_v3  ;;  %518 = vmatpush.bf16.msra.mxu1 %v458_v3 }
   0xf   :  { %519 = vmatpush.bf16.msra.mxu2 %v458_v3  ;;  %520 = vmatpush.bf16.msra.mxu3 %v458_v3 }
  0x12   :  { %182 = vmatpush.bf16.msra.mxu0 %v457_v4  ;;  %521 = vmatpush.bf16.msra.mxu1 %v457_v4 }
  0x13   :  { %522 = vmatpush.bf16.msra.mxu2 %v457_v4  ;;  %523 = vmatpush.bf16.msra.mxu3 %v457_v4 }
  0x16   :  { %183 = vmatpush.bf16.msra.mxu0 %v456_v5  ;;  %524 = vmatpush.bf16.msra.mxu1 %v456_v5 }
  0x17   :  { %525 = vmatpush.bf16.msra.mxu2 %v456_v5  ;;  %526 = vmatpush.bf16.msra.mxu3 %v456_v5 }
  0x1a   :  { %184 = vmatpush.bf16.msra.mxu0 %v455_v6  ;;  %527 = vmatpush.bf16.msra.mxu1 %v455_v6 }
  0x1b   :  { %528 = vmatpush.bf16.msra.mxu2 %v455_v6  ;;  %529 = vmatpush.bf16.msra.mxu3 %v455_v6 }
  0x1e   :  { %185 = vmatpush.bf16.msra.mxu0 %v454_v7  ;;  %530 = vmatpush.bf16.msra.mxu1 %v454_v7 }
  0x1f   :  { %531 = vmatpush.bf16.msra.mxu2 %v454_v7  ;;  %532 = vmatpush.bf16.msra.mxu3 %v454_v7 }
  0x21   :  { %186 = vmatmul.bf16.vlgmr.msra.gmra.mxu0 %v446_v8  ;;  %196 = vmatmul.bf16.vlgmr.msra.gmra.mxu1 %v448_v9 }
  0x22   :  { %206 = vmatmul.bf16.vlgmr.msra.gmra.mxu2 %v450_v10  ;;  %216 = vmatmul.bf16.vlgmr.msra.gmra.mxu3 %v452_v11 }
  0x31   :  { %191 = vmatmul.bf16.gmra.mxu0 %v447_v12  ;;  %201 = vmatmul.bf16.gmra.mxu1 %v449_v13 }
  0x32   :  { %211 = vmatmul.bf16.gmra.mxu2 %v451_v14  ;;  %221 = vmatmul.bf16.gmra.mxu3 %v453_v15 }
  0x9e   :  { %v187_v16 = vpop.f32.mrf.mxu0  ;;  %v197_v17 = vpop.f32.mrf.mxu1 }
  0x9f   :  { %v282_v19 = vadd.f32 %v605_v18, %v187_v16  ;;  %v286_v20 = vadd.f32 %v605_v18, %v197_v17 }
  0xa1   :  { %v314_v25 = vmul.f32 0.01, %v282_v19  ;;  %v318_v26 = vmul.f32 0.01, %v286_v20  ;;  %vm298_vm0 = vcmp.ge.f32.partialorder %v282_v19, 0.0  ;;  %vm302_vm1 = vcmp.ge.f32.partialorder %v286_v20, 0.0 }
  0xa3   :  { %v330_v33 = vsel %vm298_vm0, %v282_v19, %v314_v25  ;;  %v334_v34 = vsel %vm302_vm1, %v286_v20, %v318_v26 }
  0xa5   :  { %v207_v21 = vpop.f32.mrf.mxu2  ;;  %v217_v22 = vpop.f32.mrf.mxu3 }
  0xa6   :  { %v189_v23 = vpop.f32.mrf.mxu0  ;;  %v199_v24 = vpop.f32.mrf.mxu1  ;;  %v290_v31 = vadd.f32 %v605_v18, %v207_v21  ;;  %v294_v32 = vadd.f32 %v605_v18, %v217_v22 }
  0xa7   :  { %v283_v27 = vadd.f32 %v605_v18, %v189_v23  ;;  %v287_v28 = vadd.f32 %v605_v18, %v199_v24 }
  0xa8   :  { %v322_v41 = vmul.f32 0.01, %v290_v31  ;;  %v326_v42 = vmul.f32 0.01, %v294_v32  ;;  %vm306_vm4 = vcmp.ge.f32.partialorder %v290_v31, 0.0  ;;  %vm310_vm5 = vcmp.ge.f32.partialorder %v294_v32, 0.0 }
  0xa9   :  { %vm299_vm2 = vcmp.ge.f32.partialorder %v283_v27, 0.0  ;;  %v315_v29 = vmul.f32 0.01, %v283_v27  ;;  %vm303_vm3 = vcmp.ge.f32.partialorder %v287_v28, 0.0  ;;  %v319_v30 = vmul.f32 0.01, %v287_v28 }
  0xaa   :  { %v338_v49 = vsel %vm306_vm4, %v290_v31, %v322_v41  ;;  %v342_v50 = vsel %vm310_vm5, %v294_v32, %v326_v42 }
  0xab   :  { %v331_v35 = vsel %vm299_vm2, %v283_v27, %v315_v29  ;;  %v335_v36 = vsel %vm303_vm3, %v287_v28, %v319_v30 }
  0xac   :  { %v465_v37 = vpack.c.bf16 %v331_v35, %v330_v33  ;;  %v475_v38 = vpack.c.bf16 %v335_v36, %v334_v34 }
  0xad   :  { %v209_v39 = vpop.f32.mrf.mxu2  ;;  %v219_v40 = vpop.f32.mrf.mxu3 }
  0xae   :  { %466 = vst [vmem:[%s650_s3] sm:$0xff] %v465_v37   ;;  %v291_v43 = vadd.f32 %v605_v18, %v209_v39  ;;  %v295_v44 = vadd.f32 %v605_v18, %v219_v40  ;;  %v192_v45 = vpop.f32.mrf.mxu0  ;;  %v202_v46 = vpop.f32.mrf.mxu1 }
  0xaf   :  { %503 = vst [vmem:[%s650_s3 + $0x10] sm:$0xff] %v475_v38   ;;  %v284_v55 = vadd.f32 %v605_v18, %v192_v45  ;;  %v288_v56 = vadd.f32 %v605_v18, %v202_v46 }
  0xb0   :  { %vm307_vm6 = vcmp.ge.f32.partialorder %v291_v43, 0.0  ;;  %v323_v47 = vmul.f32 0.01, %v291_v43  ;;  %vm311_vm7 = vcmp.ge.f32.partialorder %v295_v44, 0.0  ;;  %v327_v48 = vmul.f32 0.01, %v295_v44 }
  0xb1   :  { %v316_v61 = vmul.f32 0.01, %v284_v55  ;;  %v320_v62 = vmul.f32 0.01, %v288_v56  ;;  %vm300_vm8 = vcmp.ge.f32.partialorder %v284_v55, 0.0  ;;  %vm304_vm9 = vcmp.ge.f32.partialorder %v288_v56, 0.0 }
  0xb2   :  { %v339_v51 = vsel %vm307_vm6, %v291_v43, %v323_v47  ;;  %v343_v52 = vsel %vm311_vm7, %v295_v44, %v327_v48 }
  0xb3   :  { %v485_v53 = vpack.c.bf16 %v339_v51, %v338_v49  ;;  %v495_v54 = vpack.c.bf16 %v343_v52, %v342_v50  ;;  %v332_v5 = vsel %vm300_vm8, %v284_v55, %v316_v61  ;;  %v336_v6 = vsel %vm304_vm9, %v288_v56, %v320_v62 }
  0xb5   :  { %505 = vst [vmem:[%s650_s3 + $0x20] sm:$0xff] %v485_v53   ;;  %v212_v57 = vpop.f32.mrf.mxu2  ;;  %v222_v58 = vpop.f32.mrf.mxu3 }
  0xb6   :  { %507 = vst [vmem:[%s650_s3 + $0x30] sm:$0xff] %v495_v54   ;;  %v194_v59 = vpop.f32.mrf.mxu0  ;;  %v204_v60 = vpop.f32.mrf.mxu1  ;;  %v292_v3 = vadd.f32 %v605_v18, %v212_v57  ;;  %v296_v4 = vadd.f32 %v605_v18, %v222_v58 }
  0xb7   :  { %v285_v63 = vadd.f32 %v605_v18, %v194_v59  ;;  %v289_v0 = vadd.f32 %v605_v18, %v204_v60 }
  0xb8   :  { %v324_v13 = vmul.f32 0.01, %v292_v3  ;;  %v328_v14 = vmul.f32 0.01, %v296_v4  ;;  %vm308_vm12 = vcmp.ge.f32.partialorder %v292_v3, 0.0  ;;  %vm312_vm13 = vcmp.ge.f32.partialorder %v296_v4, 0.0 }
  0xb9   :  { %vm301_vm10 = vcmp.ge.f32.partialorder %v285_v63, 0.0  ;;  %v317_v1 = vmul.f32 0.01, %v285_v63  ;;  %vm305_vm11 = vcmp.ge.f32.partialorder %v289_v0, 0.0  ;;  %v321_v2 = vmul.f32 0.01, %v289_v0 }
  0xba   :  { %v340_v20 = vsel %vm308_vm12, %v292_v3, %v324_v13  ;;  %v344_v21 = vsel %vm312_vm13, %v296_v4, %v328_v14 }
  0xbb   :  { %v333_v7 = vsel %vm301_vm10, %v285_v63, %v317_v1  ;;  %v337_v8 = vsel %vm305_vm11, %v289_v0, %v321_v2 }
  0xbc   :  { %v470_v9 = vpack.c.bf16 %v333_v7, %v332_v5  ;;  %v480_v10 = vpack.c.bf16 %v337_v8, %v336_v6 }
  0xbd   :  { %v214_v11 = vpop.f32.mrf.mxu2  ;;  %v224_v12 = vpop.f32.mrf.mxu3 }
  0xbe   :  { %502 = vst [vmem:[%s650_s3 + $0x8] sm:$0xff] %v470_v9   ;;  %v293_v15 = vadd.f32 %v605_v18, %v214_v11  ;;  %v297_v16 = vadd.f32 %v605_v18, %v224_v12 }
  0xbf   :  { %504 = vst [vmem:[%s650_s3 + $0x18] sm:$0xff] %v480_v10  }
  0xc0   :  { %vm309_vm14 = vcmp.ge.f32.partialorder %v293_v15, 0.0  ;;  %v325_v17 = vmul.f32 0.01, %v293_v15  ;;  %vm313_vm15 = vcmp.ge.f32.partialorder %v297_v16, 0.0  ;;  %v329_v19 = vmul.f32 0.01, %v297_v16 }
  0xc2   :  { %v341_v22 = vsel %vm309_vm14, %v293_v15, %v325_v17  ;;  %v345_v23 = vsel %vm313_vm15, %v297_v16, %v329_v19 }
  0xc3   :  { %v490_v24 = vpack.c.bf16 %v341_v22, %v340_v20  ;;  %v500_v25 = vpack.c.bf16 %v345_v23, %v344_v21 }
  0xc5   :  { %506 = vst [vmem:[%s650_s3 + $0x28] sm:$0xff] %v490_v24  }
  0xc6   :  { %508 = vst [vmem:[%s650_s3 + $0x38] sm:$0xff] %v500_v25  }

// kernel: captioner_forward.5
= control target key start
LH: loop header
LB: loop body
LE: loop exit
PB: predicated region body
PF: predicated region fallthrough
CT: control target
= control target key end

     0   :  { %s1071_s1 = inlined_call_operand.vmem [shape: bf16[640,128], index: 1, kind: input, shape index: {}]   ;;  %s1072_s0 = inlined_call_operand.vmem [shape: bf16[32,640], index: 0, kind: input, shape index: {}]   ;;  %s1073_s2 = inlined_call_operand.vmem [shape: f32[1,128], index: 2, kind: input, shape index: {}]   ;;  %s1074_s3 = inlined_call_operand.vmem [shape: f32[1,128], index: 3, kind: input, shape index: {}]   ;;  %s1075_s4 = inlined_call_operand.vmem [shape: f32[1,128], index: 4, kind: input, shape index: {}]   ;;  %s1076_s5 = inlined_call_operand.vmem [shape: bf16[32,128], index: 5, kind: output, shape index: {}]  }
   0x1   :  { %v791_v0 = vld [vmem:[%s1071_s1 + $0x38] sm:$0xff]  ;;  %v790_v4 = vld [vmem:[%s1071_s1 + $0x30] sm:$0xff]  ;;  %v789_v8 = vld [vmem:[%s1071_s1 + $0x28] sm:$0xff] }
   0x2   :  { %v799_v1 = vld [vmem:[%s1071_s1 + $0x78] sm:$0xff]  ;;  %416 = vmatpush.bf16.msra.mxu0 %v791_v0  ;;  %v798_v5 = vld [vmem:[%s1071_s1 + $0x70] sm:$0xff]  ;;  %v797_v9 = vld [vmem:[%s1071_s1 + $0x68] sm:$0xff] }
   0x3   :  { %v807_v2 = vld [vmem:[%s1071_s1 + $0xb8] sm:$0xff]  ;;  %435 = vmatpush.bf16.msra.mxu1 %v799_v1  ;;  %v806_v6 = vld [vmem:[%s1071_s1 + $0xb0] sm:$0xff]  ;;  %v805_v10 = vld [vmem:[%s1071_s1 + $0xa8] sm:$0xff] }
   0x4   :  { %v815_v3 = vld [vmem:[%s1071_s1 + $0xf8] sm:$0xff]  ;;  %454 = vmatpush.bf16.msra.mxu2 %v807_v2  ;;  %v814_v7 = vld [vmem:[%s1071_s1 + $0xf0] sm:$0xff]  ;;  %v813_v11 = vld [vmem:[%s1071_s1 + $0xe8] sm:$0xff] }
   0x5   :  { %473 = vmatpush.bf16.msra.mxu3 %v815_v3  ;;  %v788_v12 = vld [vmem:[%s1071_s1 + $0x20] sm:$0xff]  ;;  %v787_v16 = vld [vmem:[%s1071_s1 + $0x18] sm:$0xff]  ;;  %v786_v20 = vld [vmem:[%s1071_s1 + $0x10] sm:$0xff] }
   0x6   :  { %417 = vmatpush.bf16.msra.mxu0 %v790_v4  ;;  %v796_v13 = vld [vmem:[%s1071_s1 + $0x60] sm:$0xff]  ;;  %v795_v17 = vld [vmem:[%s1071_s1 + $0x58] sm:$0xff]  ;;  %v794_v21 = vld [vmem:[%s1071_s1 + $0x50] sm:$0xff] }
   0x7   :  { %436 = vmatpush.bf16.msra.mxu1 %v798_v5  ;;  %v804_v14 = vld [vmem:[%s1071_s1 + $0xa0] sm:$0xff]  ;;  %v803_v18 = vld [vmem:[%s1071_s1 + $0x98] sm:$0xff]  ;;  %v802_v22 = vld [vmem:[%s1071_s1 + $0x90] sm:$0xff] }
   0x8   :  { %455 = vmatpush.bf16.msra.mxu2 %v806_v6  ;;  %v812_v15 = vld [vmem:[%s1071_s1 + $0xe0] sm:$0xff]  ;;  %v811_v19 = vld [vmem:[%s1071_s1 + $0xd8] sm:$0xff]  ;;  %v810_v23 = vld [vmem:[%s1071_s1 + $0xd0] sm:$0xff] }
   0x9   :  { %474 = vmatpush.bf16.msra.mxu3 %v814_v7  ;;  %v785_v24 = vld [vmem:[%s1071_s1 + $0x8] sm:$0xff]  ;;  %v784_v28 = vld [vmem:[%s1071_s1] sm:$0xff]  ;;  %v776_v33 = vld [vmem:[%s1072_s0 + $0x10] sm:$0xf0] }
   0xa   :  { %418 = vmatpush.bf16.msra.mxu0 %v789_v8  ;;  %v793_v25 = vld [vmem:[%s1071_s1 + $0x48] sm:$0xff]  ;;  %v792_v29 = vld [vmem:[%s1071_s1 + $0x40] sm:$0xff]  ;;  %v578_v35 = vld [vmem:[%s1072_s0 + $0x14] sm:$0xf0] }
   0xb   :  { %437 = vmatpush.bf16.msra.mxu1 %v797_v9  ;;  %v801_v26 = vld [vmem:[%s1071_s1 + $0x88] sm:$0xff]  ;;  %v800_v30 = vld [vmem:[%s1071_s1 + $0x80] sm:$0xff]  ;;  %v777_v37 = vld [vmem:[%s1072_s0 + $0x18] sm:$0xf0] }
   0xc   :  { %456 = vmatpush.bf16.msra.mxu2 %v805_v10  ;;  %v809_v27 = vld [vmem:[%s1071_s1 + $0xc8] sm:$0xff]  ;;  %v808_v31 = vld [vmem:[%s1071_s1 + $0xc0] sm:$0xff]  ;;  %v823_v40 = vld [vmem:[%s1071_s1 + $0x138] sm:$0xff] }
   0xd   :  { %475 = vmatpush.bf16.msra.mxu3 %v813_v11  ;;  %v576_v32 = vld [vmem:[%s1072_s0] sm:$0xf]  ;;  %v774_v34 = vld [vmem:[%s1072_s0 + $0x4] sm:$0xf]  ;;  %v584_v36 = vld [vmem:[%s1072_s0 + $0x8] sm:$0xf] }
   0xe   :  { %419 = vmatpush.bf16.msra.mxu0 %v788_v12  ;;  %v775_v38 = vld [vmem:[%s1072_s0 + $0xc] sm:$0xf]  ;;  %v586_v39 = vld [vmem:[%s1072_s0 + $0x1c] sm:$0xf0]  ;;  %v577_v41 = vor.u32 %v776_v33, %v576_v32  ;;  %v581_v42 = vor.u32 %v774_v34, %v578_v35  ;;  %v585_v43 = vor.u32 %v777_v37, %v584_v36  ;;  %v822_v45 = vld [vmem:[%s1071_s1 + $0x130] sm:$0xff] }
   0xf   :  { %438 = vmatpush.bf16.msra.mxu1 %v796_v13  ;;  %v589_v44 = vor.u32 %v775_v38, %v586_v39  ;;  %v821_v46 = vld [vmem:[%s1071_s1 + $0x128] sm:$0xff]  ;;  %v820_v47 = vld [vmem:[%s1071_s1 + $0x120] sm:$0xff]  ;;  %v781_v49 = vld [vmem:[%s1072_s0 + $0x38] sm:$0xf0] }
  0x10   :  { %457 = vmatpush.bf16.msra.mxu2 %v804_v14  ;;  %v596_v48 = vld [vmem:[%s1072_s0 + $0x28] sm:$0xf]  ;;  %v779_v50 = vld [vmem:[%s1072_s0 + $0x2c] sm:$0xf]  ;;  %v598_v51 = vld [vmem:[%s1072_s0 + $0x3c] sm:$0xf0] }
  0x11   :  { %476 = vmatpush.bf16.msra.mxu3 %v812_v15  ;;  %v604_v52 = vld [vmem:[%s1072_s0 + $0x30] sm:$0xf]  ;;  %v782_v53 = vld [vmem:[%s1072_s0 + $0x40] sm:$0xf0]  ;;  %v780_v54 = vld [vmem:[%s1072_s0 + $0x34] sm:$0xf]  ;;  %v597_v57 = vor.u32 %v781_v49, %v596_v48  ;;  %v601_v58 = vor.u32 %v779_v50, %v598_v51 }
  0x12   :  { %420 = vmatpush.bf16.msra.mxu0 %v787_v16  ;;  %v606_v55 = vld [vmem:[%s1072_s0 + $0x44] sm:$0xf0]  ;;  %v819_v56 = vld [vmem:[%s1071_s1 + $0x118] sm:$0xff]  ;;  %v605_v59 = vor.u32 %v782_v53, %v604_v52  ;;  %v818_v61 = vld [vmem:[%s1071_s1 + $0x110] sm:$0xff] }
  0x13   :  { %439 = vmatpush.bf16.msra.mxu1 %v795_v17  ;;  %v609_v60 = vor.u32 %v780_v54, %v606_v55  ;;  %v817_v62 = vld [vmem:[%s1071_s1 + $0x108] sm:$0xff]  ;;  %v816_v63 = vld [vmem:[%s1071_s1 + $0x100] sm:$0xff]  ;;  %v592_v0 = vld [vmem:[%s1072_s0 + $0x10] sm:$0xf] }
  0x14   :  { %458 = vmatpush.bf16.msra.mxu2 %v803_v18  ;;  %v778_v1 = vld [vmem:[%s1072_s0 + $0x20] sm:$0xf0]  ;;  %v612_v2 = vld [vmem:[%s1072_s0 + $0x38] sm:$0xf]  ;;  %v783_v3 = vld [vmem:[%s1072_s0 + $0x48] sm:$0xf0] }
  0x15   :  { %477 = vmatpush.bf16.msra.mxu3 %v811_v19  ;;  %v593_v4 = vor.u32 %v778_v1, %v592_v0  ;;  %v613_v5 = vor.u32 %v783_v3, %v612_v2  ;;  %v845_v55 = vld [vmem:[%s1075_s4] ss:$0 sm:$0xff] }
  0x16   :  { %421 = vmatpush.bf16.msra.mxu0 %v786_v20 }
  0x17   :  { %440 = vmatpush.bf16.msra.mxu1 %v794_v21 }
  0x18   :  { %459 = vmatpush.bf16.msra.mxu2 %v802_v22 }
  0x19   :  { %478 = vmatpush.bf16.msra.mxu3 %v810_v23 }
  0x1a   :  { %422 = vmatpush.bf16.msra.mxu0 %v785_v24 }
  0x1b   :  { %441 = vmatpush.bf16.msra.mxu1 %v793_v25 }
  0x1c   :  { %460 = vmatpush.bf16.msra.mxu2 %v801_v26 }
  0x1d   :  { %479 = vmatpush.bf16.msra.mxu3 %v809_v27  ;;  %v843_v27 = vld [vmem:[%s1073_s2] ss:$0 sm:$0xff] }
  0x1e   :  { %423 = vmatpush.bf16.msra.mxu0 %v784_v28 }
  0x1f   :  { %442 = vmatpush.bf16.msra.mxu1 %v792_v29 }
  0x20   :  { %461 = vmatpush.bf16.msra.mxu2 %v800_v30 }
  0x21   :  { %480 = vmatpush.bf16.msra.mxu3 %v808_v31  ;;  %424 = vmatmul.bf16.vlgmr.msra.gmra.mxu0 %v577_v41 }
  0x22   :  { %492 = vmatpush.bf16.msrb.mxu0 %v823_v40  ;;  %443 = vmatmul.bf16.vlgmr.msra.gmra.mxu1 %v581_v42 }
  0x23   :  { %835 = vmatpush.bf16.msrb.mxu1 %v823_v40  ;;  %462 = vmatmul.bf16.vlgmr.msra.gmra.mxu2 %v585_v43 }
  0x24   :  { %481 = vmatmul.bf16.vlgmr.msra.gmra.mxu3 %v589_v44 }
  0x26   :  { %493 = vmatpush.bf16.msrb.mxu0 %v822_v45 }
  0x27   :  { %836 = vmatpush.bf16.msrb.mxu1 %v822_v45 }
  0x2a   :  { %494 = vmatpush.bf16.msrb.mxu0 %v821_v46 }
  0x2b   :  { %837 = vmatpush.bf16.msrb.mxu1 %v821_v46 }
  0x2e   :  { %495 = vmatpush.bf16.msrb.mxu0 %v820_v47 }
  0x2f   :  { %838 = vmatpush.bf16.msrb.mxu1 %v820_v47  ;;  %v844_v47 = vld [vmem:[%s1074_s3] ss:$0 sm:$0xff] }
  0x31   :  { %429 = vmatmul.bf16.gmra.mxu0 %v597_v57 }
  0x32   :  { %496 = vmatpush.bf16.msrb.mxu0 %v819_v56  ;;  %448 = vmatmul.bf16.gmra.mxu1 %v601_v58 }
  0x33   :  { %839 = vmatpush.bf16.msrb.mxu1 %v819_v56  ;;  %467 = vmatmul.bf16.gmra.mxu2 %v605_v59 }
  0x34   :  { %486 = vmatmul.bf16.gmra.mxu3 %v609_v60 }
  0x36   :  { %497 = vmatpush.bf16.msrb.mxu0 %v818_v61 }
  0x37   :  { %840 = vmatpush.bf16.msrb.mxu1 %v818_v61 }
  0x3a   :  { %498 = vmatpush.bf16.msrb.mxu0 %v817_v62 }
  0x3b   :  { %841 = vmatpush.bf16.msrb.mxu1 %v817_v62 }
  0x3e   :  { %499 = vmatpush.bf16.msrb.mxu0 %v816_v63 }
  0x3f   :  { %842 = vmatpush.bf16.msrb.mxu1 %v816_v63 }
  0x41   :  { %500 = vmatmul.bf16.vlgmr.msrb.gmra.mxu0 %v593_v4 }
  0x42   :  { %505 = vmatmul.bf16.vlgmr.msrb.gmra.mxu1 %v613_v5 }
  0x9e   :  { %v425_v6 = vpop.f32.mrf.mxu0 }
  0x9f   :  { %v444_v7 = vpop.f32.mrf.mxu1 }
  0xa0   :  { %v445_v19 = vadd.f32 %v444_v7, %v425_v6 }
  0xa6   :  { %v463_v8 = vpop.f32.mrf.mxu2  ;;  %v427_v10 = vpop.f32.mrf.mxu0 }
  0xa7   :  { %v482_v9 = vpop.f32.mrf.mxu3  ;;  %v446_v11 = vpop.f32.mrf.mxu1  ;;  %v464_v21 = vadd.f32 %v463_v8, %v445_v19 }
  0xa8   :  { %v447_v30 = vadd.f32 %v446_v11, %v427_v10 }
  0xa9   :  { %v483_v24 = vadd.f32 %v482_v9, %v464_v21 }
  0xae   :  { %v465_v12 = vpop.f32.mrf.mxu2  ;;  %v430_v13 = vpop.f32.mrf.mxu0 }
  0xaf   :  { %v449_v14 = vpop.f32.mrf.mxu1  ;;  %v484_v15 = vpop.f32.mrf.mxu3  ;;  %v466_v34 = vadd.f32 %v465_v12, %v447_v30 }
  0xb0   :  { %v450_v20 = vadd.f32 %v449_v14, %v430_v13 }
  0xb1   :  { %v485_v39 = vadd.f32 %v484_v15, %v466_v34 }
  0xb6   :  { %v468_v16 = vpop.f32.mrf.mxu2  ;;  %v432_v17 = vpop.f32.mrf.mxu0 }
  0xb7   :  { %v451_v18 = vpop.f32.mrf.mxu1  ;;  %v469_v22 = vadd.f32 %v468_v16, %v450_v20  ;;  %v487_v23 = vpop.f32.mrf.mxu3 }
  0xb8   :  { %v452_v31 = vadd.f32 %v451_v18, %v432_v17 }
  0xb9   :  { %v488_v25 = vadd.f32 %v487_v23, %v469_v22 }
  0xbe   :  { %v470_v26 = vpop.f32.mrf.mxu2  ;;  %v501_v28 = vpop.f32.mrf.mxu0 }
  0xbf   :  { %v506_v29 = vpop.f32.mrf.mxu1  ;;  %v502_v32 = vadd.f32 %v501_v28, %v483_v24  ;;  %v471_v35 = vadd.f32 %v470_v26, %v452_v31  ;;  %v489_v38 = vpop.f32.mrf.mxu3 }
  0xc0   :  { %v507_v33 = vadd.f32 %v506_v29, %v488_v25 }
  0xc1   :  { %v530_v36 = vadd.f32 %v843_v27, %v502_v32  ;;  %v490_v40 = vadd.f32 %v489_v38, %v471_v35 }
  0xc2   :  { %v532_v37 = vadd.f32 %v843_v27, %v507_v33 }
  0xc3   :  { %v538_v41 = vmul.f32 0.01, %v530_v36  ;;  %vm534_vm0 = vcmp.ge.f32.partialorder %v530_v36, 0.0 }
  0xc4   :  { %v540_v42 = vmul.f32 0.01, %v532_v37  ;;  %vm536_vm1 = vcmp.ge.f32.partialorder %v532_v37, 0.0 }
  0xc5   :  { %v542_v48 = vsel %vm534_vm0, %v530_v36, %v538_v41 }
  0xc6   :  { %v503_v43 = vpop.f32.mrf.mxu0  ;;  %v544_v49 = vsel %vm536_vm1, %v532_v37, %v540_v42  ;;  %v550_v54 = vmul.f32 %v844_v47, %v542_v48 }
  0xc7   :  { %v508_v44 = vpop.f32.mrf.mxu1  ;;  %v504_v45 = vadd.f32 %v503_v43, %v485_v39  ;;  %v552_v56 = vmul.f32 %v844_v47, %v544_v49 }
  0xc8   :  { %v509_v46 = vadd.f32 %v508_v44, %v490_v40  ;;  %v558_v61 = vadd.f32 %v845_v55, %v550_v54 }
  0xc9   :  { %v531_v50 = vadd.f32 %v843_v27, %v504_v45  ;;  %v560_v62 = vadd.f32 %v845_v55, %v552_v56 }
  0xca   :  { %v533_v51 = vadd.f32 %v843_v27, %v509_v46 }
  0xcb   :  { %vm535_vm2 = vcmp.ge.f32.partialorder %v531_v50, 0.0  ;;  %v539_v52 = vmul.f32 0.01, %v531_v50 }
  0xcc   :  { %vm537_vm3 = vcmp.ge.f32.partialorder %v533_v51, 0.0  ;;  %v541_v53 = vmul.f32 0.01, %v533_v51 }
  0xcd   :  { %v543_v57 = vsel %vm535_vm2, %v531_v50, %v539_v52 }
  0xce   :  { %v545_v58 = vsel %vm537_vm3, %v533_v51, %v541_v53  ;;  %v551_v59 = vmul.f32 %v844_v47, %v543_v57 }
  0xcf   :  { %v553_v60 = vmul.f32 %v844_v47, %v545_v58 }
  0xd0   :  { %v559_v63 = vadd.f32 %v845_v55, %v551_v59 }
  0xd1   :  { %v561_v0 = vadd.f32 %v845_v55, %v553_v60 }
  0xd2   :  { %v827_v1 = vpack.c.bf16 %v559_v63, %v558_v61 }
  0xd3   :  { %v832_v2 = vpack.c.bf16 %v561_v0, %v560_v62 }
  0xd4   :  { %828 = vst [vmem:[%s1076_s5] sm:$0xff] %v827_v1  }
  0xd5   :  { %834 = vst [vmem:[%s1076_s5 + $0x8] sm:$0xff] %v832_v2  }

// kernel: captioner_forward.7
= control target key start
LH: loop header
LB: loop body
LE: loop exit
PB: predicated region body
PF: predicated region fallthrough
CT: control target
= control target key end

     0   :  { %s757_s1 = inlined_call_operand.vmem [shape: bf16[512,128], index: 1, kind: input, shape index: {}]   ;;  %s758_s0 = inlined_call_operand.vmem [shape: bf16[16,512], index: 0, kind: input, shape index: {}]   ;;  %s759_s2 = inlined_call_operand.vmem [shape: f32[1,128], index: 2, kind: input, shape index: {}]   ;;  %s760_s3 = inlined_call_operand.vmem [shape: f32[16,128], index: 3, kind: output, shape index: {}]  }
   0x1   :  { %v574_v0 = vld [vmem:[%s757_s1 + $0x38] sm:$0xff]  ;;  %v573_v4 = vld [vmem:[%s757_s1 + $0x30] sm:$0xff]  ;;  %v572_v8 = vld [vmem:[%s757_s1 + $0x28] sm:$0xff] }
   0x2   :  { %v582_v1 = vld [vmem:[%s757_s1 + $0x78] sm:$0xff]  ;;  %302 = vmatpush.bf16.msra.mxu0 %v574_v0  ;;  %v581_v5 = vld [vmem:[%s757_s1 + $0x70] sm:$0xff]  ;;  %v580_v9 = vld [vmem:[%s757_s1 + $0x68] sm:$0xff] }
   0x3   :  { %v590_v2 = vld [vmem:[%s757_s1 + $0xb8] sm:$0xff]  ;;  %316 = vmatpush.bf16.msra.mxu1 %v582_v1  ;;  %v589_v6 = vld [vmem:[%s757_s1 + $0xb0] sm:$0xff]  ;;  %v588_v10 = vld [vmem:[%s757_s1 + $0xa8] sm:$0xff] }
   0x4   :  { %v598_v3 = vld [vmem:[%s757_s1 + $0xf8] sm:$0xff]  ;;  %330 = vmatpush.bf16.msra.mxu2 %v590_v2  ;;  %v597_v7 = vld [vmem:[%s757_s1 + $0xf0] sm:$0xff]  ;;  %v596_v11 = vld [vmem:[%s757_s1 + $0xe8] sm:$0xff] }
   0x5   :  { %344 = vmatpush.bf16.msra.mxu3 %v598_v3  ;;  %v571_v12 = vld [vmem:[%s757_s1 + $0x20] sm:$0xff]  ;;  %v570_v16 = vld [vmem:[%s757_s1 + $0x18] sm:$0xff]  ;;  %v569_v20 = vld [vmem:[%s757_s1 + $0x10] sm:$0xff] }
   0x6   :  { %303 = vmatpush.bf16.msra.mxu0 %v573_v4  ;;  %v579_v13 = vld [vmem:[%s757_s1 + $0x60] sm:$0xff]  ;;  %v578_v17 = vld [vmem:[%s757_s1 + $0x58] sm:$0xff]  ;;  %v577_v21 = vld [vmem:[%s757_s1 + $0x50] sm:$0xff] }
   0x7   :  { %317 = vmatpush.bf16.msra.mxu1 %v581_v5  ;;  %v587_v14 = vld [vmem:[%s757_s1 + $0xa0] sm:$0xff]  ;;  %v586_v18 = vld [vmem:[%s757_s1 + $0x98] sm:$0xff]  ;;  %v585_v22 = vld [vmem:[%s757_s1 + $0x90] sm:$0xff] }
   0x8   :  { %331 = vmatpush.bf16.msra.mxu2 %v589_v6  ;;  %v595_v15 = vld [vmem:[%s757_s1 + $0xe0] sm:$0xff]  ;;  %v594_v19 = vld [vmem:[%s757_s1 + $0xd8] sm:$0xff]  ;;  %v593_v23 = vld [vmem:[%s757_s1 + $0xd0] sm:$0xff] }
   0x9   :  { %345 = vmatpush.bf16.msra.mxu3 %v597_v7  ;;  %v568_v24 = vld [vmem:[%s757_s1 + $0x8] sm:$0xff]  ;;  %v567_v28 = vld [vmem:[%s757_s1] sm:$0xff]  ;;  %v565_v33 = vld [vmem:[%s758_s0 + $0xc] sm:$0xf0] }
   0xa   :  { %304 = vmatpush.bf16.msra.mxu0 %v572_v8  ;;  %v576_v25 = vld [vmem:[%s757_s1 + $0x48] sm:$0xff]  ;;  %v575_v29 = vld [vmem:[%s757_s1 + $0x40] sm:$0xff]  ;;  %v421_v35 = vld [vmem:[%s758_s0 + $0x10] sm:$0xf0] }
   0xb   :  { %318 = vmatpush.bf16.msra.mxu1 %v580_v9  ;;  %v584_v26 = vld [vmem:[%s757_s1 + $0x88] sm:$0xff]  ;;  %v583_v30 = vld [vmem:[%s757_s1 + $0x80] sm:$0xff]  ;;  %v566_v37 = vld [vmem:[%s758_s0 + $0x14] sm:$0xf0] }
   0xc   :  { %332 = vmatpush.bf16.msra.mxu2 %v588_v10  ;;  %v592_v27 = vld [vmem:[%s757_s1 + $0xc8] sm:$0xff]  ;;  %v591_v31 = vld [vmem:[%s757_s1 + $0xc0] sm:$0xff]  ;;  %v429_v39 = vld [vmem:[%s758_s0 + $0x18] sm:$0xf0] }
   0xd   :  { %346 = vmatpush.bf16.msra.mxu3 %v596_v11  ;;  %v419_v32 = vld [vmem:[%s758_s0] sm:$0xf]  ;;  %v563_v34 = vld [vmem:[%s758_s0 + $0x4] sm:$0xf]  ;;  %v427_v36 = vld [vmem:[%s758_s0 + $0x8] sm:$0xf] }
   0xe   :  { %305 = vmatpush.bf16.msra.mxu0 %v571_v12  ;;  %v564_v38 = vld [vmem:[%s758_s0 + $0xc] sm:$0xf]  ;;  %v420_v40 = vor.u32 %v565_v33, %v419_v32  ;;  %v424_v41 = vor.u32 %v563_v34, %v421_v35  ;;  %v428_v42 = vor.u32 %v566_v37, %v427_v36  ;;  %v599_v50 = vld [vmem:[%s759_s2] ss:$0 sm:$0xff] }
   0xf   :  { %319 = vmatpush.bf16.msra.mxu1 %v579_v13  ;;  %v432_v43 = vor.u32 %v564_v38, %v429_v39 }
  0x10   :  { %333 = vmatpush.bf16.msra.mxu2 %v587_v14 }
  0x11   :  { %347 = vmatpush.bf16.msra.mxu3 %v595_v15 }
  0x12   :  { %306 = vmatpush.bf16.msra.mxu0 %v570_v16 }
  0x13   :  { %320 = vmatpush.bf16.msra.mxu1 %v578_v17 }
  0x14   :  { %334 = vmatpush.bf16.msra.mxu2 %v586_v18 }
  0x15   :  { %348 = vmatpush.bf16.msra.mxu3 %v594_v19 }
  0x16   :  { %307 = vmatpush.bf16.msra.mxu0 %v569_v20 }
  0x17   :  { %321 = vmatpush.bf16.msra.mxu1 %v577_v21 }
  0x18   :  { %335 = vmatpush.bf16.msra.mxu2 %v585_v22 }
  0x19   :  { %349 = vmatpush.bf16.msra.mxu3 %v593_v23 }
  0x1a   :  { %308 = vmatpush.bf16.msra.mxu0 %v568_v24 }
  0x1b   :  { %322 = vmatpush.bf16.msra.mxu1 %v576_v25 }
  0x1c   :  { %336 = vmatpush.bf16.msra.mxu2 %v584_v26 }
  0x1d   :  { %350 = vmatpush.bf16.msra.mxu3 %v592_v27 }
  0x1e   :  { %309 = vmatpush.bf16.msra.mxu0 %v567_v28 }
  0x1f   :  { %323 = vmatpush.bf16.msra.mxu1 %v575_v29 }
  0x20   :  { %337 = vmatpush.bf16.msra.mxu2 %v583_v30 }
  0x21   :  { %351 = vmatpush.bf16.msra.mxu3 %v591_v31  ;;  %310 = vmatmul.bf16.vlgmr.msra.gmra.mxu0 %v420_v40 }
  0x22   :  { %324 = vmatmul.bf16.vlgmr.msra.gmra.mxu1 %v424_v41 }
  0x23   :  { %338 = vmatmul.bf16.vlgmr.msra.gmra.mxu2 %v428_v42 }
  0x24   :  { %352 = vmatmul.bf16.vlgmr.msra.gmra.mxu3 %v432_v43 }
  0x9e   :  { %v311_v44 = vpop.f32.mrf.mxu0 }
  0x9f   :  { %v325_v45 = vpop.f32.mrf.mxu1 }
  0xa0   :  { %v326_v46 = vadd.f32 %v325_v45, %v311_v44 }
  0xa6   :  { %v339_v47 = vpop.f32.mrf.mxu2  ;;  %v313_v52 = vpop.f32.mrf.mxu0 }
  0xa7   :  { %v353_v48 = vpop.f32.mrf.mxu3  ;;  %v340_v49 = vadd.f32 %v339_v47, %v326_v46  ;;  %v327_v53 = vpop.f32.mrf.mxu1 }
  0xa8   :  { %v328_v56 = vadd.f32 %v327_v53, %v313_v52 }
  0xa9   :  { %v354_v51 = vadd.f32 %v353_v48, %v340_v49 }
  0xab   :  { %v371_v54 = vadd.f32 %v599_v50, %v354_v51 }
  0xad   :  { %v561_v55 = vmul.f32 -1.442695, %v371_v54 }
  0xae   :  { %v341_v57 = vpop.f32.mrf.mxu2 }
  0xaf   :  { %600 = vpow2.f32 %v561_v55  ;;  %v342_v58 = vadd.f32 %v341_v57, %v328_v56  ;;  %v355_v59 = vpop.f32.mrf.mxu3 }
  0xb1   :  { %v356_v60 = vadd.f32 %v355_v59, %v342_v58 }
  0xb3   :  { %v372_v61 = vadd.f32 %v599_v50, %v356_v60 }
  0xb5   :  { %v601_v62 = vpop.eup %600  ;;  %v562_v63 = vmul.f32 -1.442695, %v372_v61 }
  0xb6   :  { %v379_v0 = vadd.f32 1.0, %v601_v62 }
  0xb7   :  { %602 = vpow2.f32 %v562_v63 }
  0xb8   :  { %604 = vrcp.f32 %v379_v0  ;;  %v392_v6 = vand.u32 2147483648, %v379_v0  ;;  %v390_v8 = vand.u32 2147483647, %v379_v0  ;;  %vm386_vm1 = vweird.f32 %v379_v0 }
  0xba   :  { %v393_v11 = vor.u32 1.1754944e-38, %v392_v6  ;;  %vm391_vm3 = vcmp.eq.f32.partialorder %v390_v8, 8.507059e+37 }
  0xbd   :  { %v603_v1 = vpop.eup %602 }
  0xbe   :  { %v605_v2 = vpop.eup %604  ;;  %v380_v3 = vadd.f32 1.0, %v603_v1 }
  0xbf   :  { %v382_v4 = vmul.f32 %v605_v2, %v379_v0  ;;  %vm387_vm0 = vweird.f32 %v605_v2 }
  0xc0   :  { %606 = vrcp.f32 %v380_v3  ;;  %vm388_vm2 = vmor %vm386_vm1, %vm387_vm0  ;;  %v407_v16 = vand.u32 2147483648, %v380_v3  ;;  %v405_v18 = vand.u32 2147483647, %v380_v3  ;;  %vm401_vm5 = vweird.f32 %v380_v3 }
  0xc1   :  { %v383_v5 = vsub.f32 1.0, %v382_v4 }
  0xc2   :  { %v408_v20 = vor.u32 1.1754944e-38, %v407_v16  ;;  %vm406_vm7 = vcmp.eq.f32.partialorder %v405_v18, 8.507059e+37 }
  0xc3   :  { %v384_v7 = vmul.f32 %v605_v2, %v383_v5 }
  0xc5   :  { %v385_v9 = vadd.f32 %v605_v2, %v384_v7 }
  0xc6   :  { %v607_v10 = vpop.eup %606 }
  0xc7   :  { %v389_v12 = vsel %vm388_vm2, %v605_v2, %v385_v9  ;;  %v397_v13 = vmul.f32 %v607_v10, %v380_v3  ;;  %vm402_vm4 = vweird.f32 %v607_v10 }
  0xc8   :  { %v394_v14 = vsel %vm391_vm3, %v393_v11, %v389_v12  ;;  %vm403_vm6 = vmor %vm401_vm5, %vm402_vm4 }
  0xc9   :  { %411 = vst [vmem:[%s760_s3] sm:$0xff] %v394_v14  ;;  %v398_v15 = vsub.f32 1.0, %v397_v13 }
  0xcb   :  { %v399_v17 = vmul.f32 %v607_v10, %v398_v15 }
  0xcd   :  { %v400_v19 = vadd.f32 %v607_v10, %v399_v17 }
  0xcf   :  { %v404_v21 = vsel %vm403_vm6, %v607_v10, %v400_v19 }
  0xd0   :  { %v409_v22 = vsel %vm406_vm7, %v408_v20, %v404_v21 }
  0xd1   :  { %412 = vst [vmem:[%s760_s3 + $0x8] sm:$0xff] %v409_v22 }

// kernel: captioner_forward.6
= control target key start
LH: loop header
LB: loop body
LE: loop exit
PB: predicated region body
PF: predicated region fallthrough
CT: control target
= control target key end

     0   :  { %s5188_s1 = inlined_call_operand.vmem [shape: bf16[1024,512], index: 1, kind: input, shape index: {}]   ;;  %s5189_s0 = inlined_call_operand.vmem [shape: bf16[16,1024], index: 0, kind: input, shape index: {}]   ;;  %s5190_s2 = inlined_call_operand.vmem [shape: f32[1,512], index: 2, kind: input, shape index: {}]   ;;  %s5191_s3 = inlined_call_operand.vmem [shape: bf16[16,512], index: 3, kind: output, shape index: {}]  }
   0x1   :  { %v2293_v0 = vld [vmem:[%s5188_s1 + $0xe0] sm:$0xf]  ;;  %v3241_v1 = vld [vmem:[%s5188_s1 + $0xec] sm:$0xf0] }
   0x2   :  { %v2421_v2 = vld [vmem:[%s5188_s1 + $0x1e0] sm:$0xf]  ;;  %v2294_v3 = vor.u32 %v3241_v1, %v2293_v0  ;;  %v3273_v4 = vld [vmem:[%s5188_s1 + $0x1ec] sm:$0xf0] }
   0x3   :  { %v2549_v5 = vld [vmem:[%s5188_s1 + $0x2e0] sm:$0xf]  ;;  %v3305_v6 = vld [vmem:[%s5188_s1 + $0x2ec] sm:$0xf0]  ;;  %v2422_v7 = vor.u32 %v3273_v4, %v2421_v2 }
   0x4   :  { %v2550_v8 = vor.u32 %v3305_v6, %v2549_v5  ;;  %v2677_v9 = vld [vmem:[%s5188_s1 + $0x3e0] sm:$0xf]  ;;  %v3337_v10 = vld [vmem:[%s5188_s1 + $0x3ec] sm:$0xf0]  ;;  %1618 = vmatpush.bf16.msra.mxu0 %v2294_v3 }
   0x5   :  { %v2277_v11 = vld [vmem:[%s5188_s1 + $0xc0] sm:$0xf]  ;;  %v2678_v12 = vor.u32 %v3337_v10, %v2677_v9  ;;  %v3237_v13 = vld [vmem:[%s5188_s1 + $0xcc] sm:$0xf0]  ;;  %1632 = vmatpush.bf16.msra.mxu1 %v2422_v7 }
   0x6   :  { %v2405_v14 = vld [vmem:[%s5188_s1 + $0x1c0] sm:$0xf]  ;;  %v3269_v15 = vld [vmem:[%s5188_s1 + $0x1cc] sm:$0xf0]  ;;  %1646 = vmatpush.bf16.msra.mxu2 %v2550_v8  ;;  %v2278_v16 = vor.u32 %v3237_v13, %v2277_v11 }
   0x7   :  { %v2406_v17 = vor.u32 %v3269_v15, %v2405_v14  ;;  %v2533_v18 = vld [vmem:[%s5188_s1 + $0x2c0] sm:$0xf]  ;;  %v3301_v19 = vld [vmem:[%s5188_s1 + $0x2cc] sm:$0xf0]  ;;  %1660 = vmatpush.bf16.msra.mxu3 %v2678_v12 }
   0x8   :  { %v2661_v20 = vld [vmem:[%s5188_s1 + $0x3c0] sm:$0xf]  ;;  %v2534_v21 = vor.u32 %v3301_v19, %v2533_v18  ;;  %v3333_v22 = vld [vmem:[%s5188_s1 + $0x3cc] sm:$0xf0]  ;;  %1619 = vmatpush.bf16.msra.mxu0 %v2278_v16 }
   0x9   :  { %v2261_v23 = vld [vmem:[%s5188_s1 + $0xa0] sm:$0xf]  ;;  %v3233_v24 = vld [vmem:[%s5188_s1 + $0xac] sm:$0xf0]  ;;  %v2662_v25 = vor.u32 %v3333_v22, %v2661_v20  ;;  %1633 = vmatpush.bf16.msra.mxu1 %v2406_v17 }
   0xa   :  { %v2389_v26 = vld [vmem:[%s5188_s1 + $0x1a0] sm:$0xf]  ;;  %v3265_v27 = vld [vmem:[%s5188_s1 + $0x1ac] sm:$0xf0]  ;;  %v2262_v29 = vor.u32 %v3233_v24, %v2261_v23  ;;  %1647 = vmatpush.bf16.msra.mxu2 %v2534_v21 }
   0xb   :  { %v2517_v28 = vld [vmem:[%s5188_s1 + $0x2a0] sm:$0xf]  ;;  %v3297_v30 = vld [vmem:[%s5188_s1 + $0x2ac] sm:$0xf0]  ;;  %v2390_v33 = vor.u32 %v3265_v27, %v2389_v26  ;;  %1661 = vmatpush.bf16.msra.mxu3 %v2662_v25 }
   0xc   :  { %v2645_v31 = vld [vmem:[%s5188_s1 + $0x3a0] sm:$0xf]  ;;  %v3329_v32 = vld [vmem:[%s5188_s1 + $0x3ac] sm:$0xf0]  ;;  %v2518_v34 = vor.u32 %v3297_v30, %v2517_v28  ;;  %1620 = vmatpush.bf16.msra.mxu0 %v2262_v29 }
   0xd   :  { %v2245_v35 = vld [vmem:[%s5188_s1 + $0x80] sm:$0xf]  ;;  %v3229_v36 = vld [vmem:[%s5188_s1 + $0x8c] sm:$0xf0]  ;;  %v2646_v38 = vor.u32 %v3329_v32, %v2645_v31  ;;  %1634 = vmatpush.bf16.msra.mxu1 %v2390_v33 }
   0xe   :  { %v2373_v37 = vld [vmem:[%s5188_s1 + $0x180] sm:$0xf]  ;;  %v3261_v39 = vld [vmem:[%s5188_s1 + $0x18c] sm:$0xf0]  ;;  %v2246_v44 = vor.u32 %v3229_v36, %v2245_v35  ;;  %1648 = vmatpush.bf16.msra.mxu2 %v2518_v34 }
   0xf   :  { %v2501_v40 = vld [vmem:[%s5188_s1 + $0x280] sm:$0xf]  ;;  %v3293_v41 = vld [vmem:[%s5188_s1 + $0x28c] sm:$0xf0]  ;;  %v2374_v45 = vor.u32 %v3261_v39, %v2373_v37  ;;  %1662 = vmatpush.bf16.msra.mxu3 %v2646_v38 }
  0x10   :  { %v2629_v42 = vld [vmem:[%s5188_s1 + $0x380] sm:$0xf]  ;;  %v3325_v43 = vld [vmem:[%s5188_s1 + $0x38c] sm:$0xf0]  ;;  %v2502_v46 = vor.u32 %v3293_v41, %v2501_v40  ;;  %1621 = vmatpush.bf16.msra.mxu0 %v2246_v44 }
  0x11   :  { %v2229_v47 = vld [vmem:[%s5188_s1 + $0x60] sm:$0xf]  ;;  %v3225_v48 = vld [vmem:[%s5188_s1 + $0x6c] sm:$0xf0]  ;;  %v2630_v50 = vor.u32 %v3325_v43, %v2629_v42  ;;  %1635 = vmatpush.bf16.msra.mxu1 %v2374_v45 }
  0x12   :  { %v2357_v49 = vld [vmem:[%s5188_s1 + $0x160] sm:$0xf]  ;;  %v3257_v51 = vld [vmem:[%s5188_s1 + $0x16c] sm:$0xf0]  ;;  %v2230_v56 = vor.u32 %v3225_v48, %v2229_v47  ;;  %1649 = vmatpush.bf16.msra.mxu2 %v2502_v46 }
  0x13   :  { %v2485_v52 = vld [vmem:[%s5188_s1 + $0x260] sm:$0xf]  ;;  %v3289_v53 = vld [vmem:[%s5188_s1 + $0x26c] sm:$0xf0]  ;;  %v2358_v57 = vor.u32 %v3257_v51, %v2357_v49  ;;  %1663 = vmatpush.bf16.msra.mxu3 %v2630_v50 }
  0x14   :  { %v2613_v54 = vld [vmem:[%s5188_s1 + $0x360] sm:$0xf]  ;;  %v3321_v55 = vld [vmem:[%s5188_s1 + $0x36c] sm:$0xf0]  ;;  %v2486_v58 = vor.u32 %v3289_v53, %v2485_v52  ;;  %1622 = vmatpush.bf16.msra.mxu0 %v2230_v56 }
  0x15   :  { %v2213_v59 = vld [vmem:[%s5188_s1 + $0x40] sm:$0xf]  ;;  %v3221_v60 = vld [vmem:[%s5188_s1 + $0x4c] sm:$0xf0]  ;;  %v2614_v62 = vor.u32 %v3321_v55, %v2613_v54  ;;  %1636 = vmatpush.bf16.msra.mxu1 %v2358_v57  ;;  %v2157_v54 = vld [vmem:[%s5189_s0 + $0x8] sm:$0xf] }
  0x16   :  { %v2341_v61 = vld [vmem:[%s5188_s1 + $0x140] sm:$0xf]  ;;  %v3253_v63 = vld [vmem:[%s5188_s1 + $0x14c] sm:$0xf0]  ;;  %v2214_v4 = vor.u32 %v3221_v60, %v2213_v59  ;;  %1650 = vmatpush.bf16.msra.mxu2 %v2486_v58  ;;  %v3208_v59 = vld [vmem:[%s5189_s0 + $0x24] sm:$0xf0] }
  0x17   :  { %v2469_v0 = vld [vmem:[%s5188_s1 + $0x240] sm:$0xf]  ;;  %v3285_v1 = vld [vmem:[%s5188_s1 + $0x24c] sm:$0xf0]  ;;  %v2342_v5 = vor.u32 %v3253_v63, %v2341_v61  ;;  %1664 = vmatpush.bf16.msra.mxu3 %v2614_v62 }
  0x18   :  { %v2597_v2 = vld [vmem:[%s5188_s1 + $0x340] sm:$0xf]  ;;  %v3317_v3 = vld [vmem:[%s5188_s1 + $0x34c] sm:$0xf0]  ;;  %v2470_v6 = vor.u32 %v3285_v1, %v2469_v0  ;;  %1623 = vmatpush.bf16.msra.mxu0 %v2214_v4  ;;  %v3756_v1 = vor.u32 %v3208_v59, %v2157_v54 }
  0x19   :  { %v2197_v7 = vld [vmem:[%s5188_s1 + $0x20] sm:$0xf]  ;;  %v3217_v8 = vld [vmem:[%s5188_s1 + $0x2c] sm:$0xf0]  ;;  %v2598_v10 = vor.u32 %v3317_v3, %v2597_v2  ;;  %1637 = vmatpush.bf16.msra.mxu1 %v2342_v5 }
  0x1a   :  { %v2325_v9 = vld [vmem:[%s5188_s1 + $0x120] sm:$0xf]  ;;  %v3249_v11 = vld [vmem:[%s5188_s1 + $0x12c] sm:$0xf0]  ;;  %v2198_v16 = vor.u32 %v3217_v8, %v2197_v7  ;;  %1651 = vmatpush.bf16.msra.mxu2 %v2470_v6  ;;  %v3203_v6 = vld [vmem:[%s5189_s0 + $0x4] sm:$0xf] }
  0x1b   :  { %v2453_v12 = vld [vmem:[%s5188_s1 + $0x220] sm:$0xf]  ;;  %v3281_v13 = vld [vmem:[%s5188_s1 + $0x22c] sm:$0xf0]  ;;  %v2326_v19 = vor.u32 %v3249_v11, %v2325_v9  ;;  %1665 = vmatpush.bf16.msra.mxu3 %v2598_v10  ;;  %v2151_v7 = vld [vmem:[%s5189_s0 + $0x20] sm:$0xf0] }
  0x1c   :  { %v2581_v14 = vld [vmem:[%s5188_s1 + $0x320] sm:$0xf]  ;;  %v3313_v15 = vld [vmem:[%s5188_s1 + $0x32c] sm:$0xf0]  ;;  %v2454_v20 = vor.u32 %v3281_v13, %v2453_v12  ;;  %1624 = vmatpush.bf16.msra.mxu0 %v2198_v16  ;;  %v3204_v8 = vld [vmem:[%s5189_s0 + $0xc] sm:$0xf]  ;;  %v3778_v10 = vor.u32 %v3203_v6, %v2151_v7 }
  0x1d   :  { %v2181_v17 = vld [vmem:[%s5188_s1] sm:$0xf]  ;;  %v3213_v18 = vld [vmem:[%s5188_s1 + $0xc] sm:$0xf0]  ;;  %v2582_v24 = vor.u32 %v3313_v15, %v2581_v14  ;;  %1638 = vmatpush.bf16.msra.mxu1 %v2326_v19  ;;  %v2159_v11 = vld [vmem:[%s5189_s0 + $0x28] sm:$0xf0] }
  0x1e   :  { %v2309_v21 = vld [vmem:[%s5188_s1 + $0x100] sm:$0xf]  ;;  %v3245_v22 = vld [vmem:[%s5188_s1 + $0x10c] sm:$0xf0]  ;;  %v2182_v31 = vor.u32 %v3213_v18, %v2181_v17  ;;  %1652 = vmatpush.bf16.msra.mxu2 %v2454_v20  ;;  %v3792_v17 = vor.u32 %v3204_v8, %v2159_v11 }
  0x1f   :  { %v2437_v23 = vld [vmem:[%s5188_s1 + $0x200] sm:$0xf]  ;;  %v3277_v25 = vld [vmem:[%s5188_s1 + $0x20c] sm:$0xf0]  ;;  %v2310_v35 = vor.u32 %v3245_v22, %v2309_v21  ;;  %1666 = vmatpush.bf16.msra.mxu3 %v2582_v24 }
  0x20   :  { %v2565_v26 = vld [vmem:[%s5188_s1 + $0x300] sm:$0xf]  ;;  %v3309_v27 = vld [vmem:[%s5188_s1 + $0x30c] sm:$0xf0]  ;;  %v2438_v36 = vor.u32 %v3277_v25, %v2437_v23  ;;  %1625 = vmatpush.bf16.msra.mxu0 %v2182_v31 }
  0x21   :  { %v2805_v28 = vld [vmem:[%s5188_s1 + $0x4e0] sm:$0xf]  ;;  %v3369_v29 = vld [vmem:[%s5188_s1 + $0x4ec] sm:$0xf0]  ;;  %v2566_v39 = vor.u32 %v3309_v27, %v2565_v26  ;;  %1639 = vmatpush.bf16.msra.mxu1 %v2310_v35 }
  0x22   :  { %v2933_v30 = vld [vmem:[%s5188_s1 + $0x5e0] sm:$0xf]  ;;  %v3401_v32 = vld [vmem:[%s5188_s1 + $0x5ec] sm:$0xf0]  ;;  %v2806_v40 = vor.u32 %v3369_v29, %v2805_v28  ;;  %1653 = vmatpush.bf16.msra.mxu2 %v2438_v36 }
  0x23   :  { %v3061_v33 = vld [vmem:[%s5188_s1 + $0x6e0] sm:$0xf]  ;;  %v3433_v34 = vld [vmem:[%s5188_s1 + $0x6ec] sm:$0xf0]  ;;  %v2934_v43 = vor.u32 %v3401_v32, %v2933_v30  ;;  %1667 = vmatpush.bf16.msra.mxu3 %v2566_v39 }
  0x24   :  { %v3189_v37 = vld [vmem:[%s5188_s1 + $0x7e0] sm:$0xf]  ;;  %v3465_v38 = vld [vmem:[%s5188_s1 + $0x7ec] sm:$0xf0]  ;;  %v3062_v44 = vor.u32 %v3433_v34, %v3061_v33  ;;  %1674 = vmatpush.bf16.msrb.mxu0 %v2806_v40  ;;  %1640 = vmatmul.bf16.vlgmr.msra.gmra.mxu1 %v3778_v10 }
  0x25   :  { %v2789_v41 = vld [vmem:[%s5188_s1 + $0x4c0] sm:$0xf]  ;;  %v3365_v42 = vld [vmem:[%s5188_s1 + $0x4cc] sm:$0xf0]  ;;  %v3190_v48 = vor.u32 %v3465_v38, %v3189_v37  ;;  %1688 = vmatpush.bf16.msrb.mxu1 %v2934_v43  ;;  %1654 = vmatmul.bf16.vlgmr.msra.gmra.mxu2 %v3756_v1 }
  0x26   :  { %v2917_v45 = vld [vmem:[%s5188_s1 + $0x5c0] sm:$0xf]  ;;  %v3397_v46 = vld [vmem:[%s5188_s1 + $0x5cc] sm:$0xf0]  ;;  %v2790_v55 = vor.u32 %v3365_v42, %v2789_v41  ;;  %1702 = vmatpush.bf16.msrb.mxu2 %v3062_v44  ;;  %1668 = vmatmul.bf16.vlgmr.msra.gmra.mxu3 %v3792_v17 }
  0x27   :  { %v3045_v47 = vld [vmem:[%s5188_s1 + $0x6c0] sm:$0xf]  ;;  %v3429_v49 = vld [vmem:[%s5188_s1 + $0x6cc] sm:$0xf0]  ;;  %v2918_v60 = vor.u32 %v3397_v46, %v2917_v45  ;;  %1716 = vmatpush.bf16.msrb.mxu3 %v3190_v48 }
  0x28   :  { %v3173_v50 = vld [vmem:[%s5188_s1 + $0x7c0] sm:$0xf]  ;;  %v3461_v51 = vld [vmem:[%s5188_s1 + $0x7cc] sm:$0xf0]  ;;  %v3046_v61 = vor.u32 %v3429_v49, %v3045_v47  ;;  %1675 = vmatpush.bf16.msrb.mxu0 %v2790_v55 }
  0x29   :  { %v2149_v52 = vld [vmem:[%s5189_s0] sm:$0xf]  ;;  %v3361_v57 = vld [vmem:[%s5188_s1 + $0x4ac] sm:$0xf0]  ;;  %v3174_v2 = vor.u32 %v3461_v51, %v3173_v50  ;;  %1689 = vmatpush.bf16.msrb.mxu1 %v2918_v60 }
  0x2a   :  { %v3207_v53 = vld [vmem:[%s5189_s0 + $0x1c] sm:$0xf0]  ;;  %v3393_v63 = vld [vmem:[%s5188_s1 + $0x5ac] sm:$0xf0]  ;;  %1703 = vmatpush.bf16.msrb.mxu2 %v3046_v61 }
  0x2b   :  { %v2773_v56 = vld [vmem:[%s5188_s1 + $0x4a0] sm:$0xf]  ;;  %v3742_v58 = vor.u32 %v3207_v53, %v2149_v52  ;;  %v3425_v3 = vld [vmem:[%s5188_s1 + $0x6ac] sm:$0xf0]  ;;  %1717 = vmatpush.bf16.msrb.mxu3 %v3174_v2 }
  0x2c   :  { %v2901_v62 = vld [vmem:[%s5188_s1 + $0x5a0] sm:$0xf]  ;;  %v3457_v5 = vld [vmem:[%s5188_s1 + $0x7ac] sm:$0xf0]  ;;  %v2774_v9 = vor.u32 %v3361_v57, %v2773_v56 }
  0x2d   :  { %v3029_v0 = vld [vmem:[%s5188_s1 + $0x6a0] sm:$0xf]  ;;  %1626 = vmatmul.bf16.vlgmr.msra.gmra.mxu0 %v3742_v58  ;;  %v2902_v12 = vor.u32 %v3393_v63, %v2901_v62  ;;  %v3357_v15 = vld [vmem:[%s5188_s1 + $0x48c] sm:$0xf0] }
  0x2e   :  { %v3157_v4 = vld [vmem:[%s5188_s1 + $0x7a0] sm:$0xf]  ;;  %v3030_v13 = vor.u32 %v3425_v3, %v3029_v0  ;;  %v3389_v19 = vld [vmem:[%s5188_s1 + $0x58c] sm:$0xf0]  ;;  %1676 = vmatpush.bf16.msrb.mxu0 %v2774_v9  ;;  %v3239_v9 = vld [vmem:[%s5188_s1 + $0xe4] sm:$0xf] }
  0x2f   :  { %v2757_v14 = vld [vmem:[%s5188_s1 + $0x480] sm:$0xf]  ;;  %v3158_v18 = vor.u32 %v3457_v5, %v3157_v4  ;;  %v3421_v21 = vld [vmem:[%s5188_s1 + $0x68c] sm:$0xf0]  ;;  %1690 = vmatpush.bf16.msrb.mxu1 %v2902_v12  ;;  %v2295_v12 = vld [vmem:[%s5188_s1 + $0xf0] sm:$0xf0] }
  0x30   :  { %v2885_v16 = vld [vmem:[%s5188_s1 + $0x580] sm:$0xf]  ;;  %v3453_v23 = vld [vmem:[%s5188_s1 + $0x78c] sm:$0xf0]  ;;  %v2758_v24 = vor.u32 %v3357_v15, %v2757_v14  ;;  %1704 = vmatpush.bf16.msrb.mxu2 %v3030_v13  ;;  %v3271_v13 = vld [vmem:[%s5188_s1 + $0x1e4] sm:$0xf] }
  0x31   :  { %v3013_v20 = vld [vmem:[%s5188_s1 + $0x680] sm:$0xf]  ;;  %v2886_v25 = vor.u32 %v3389_v19, %v2885_v16  ;;  %v3353_v28 = vld [vmem:[%s5188_s1 + $0x46c] sm:$0xf0]  ;;  %1718 = vmatpush.bf16.msrb.mxu3 %v3158_v18  ;;  %v2423_v14 = vld [vmem:[%s5188_s1 + $0x1f0] sm:$0xf0] }
  0x32   :  { %v3141_v22 = vld [vmem:[%s5188_s1 + $0x780] sm:$0xf]  ;;  %v3014_v26 = vor.u32 %v3421_v21, %v3013_v20  ;;  %v3385_v31 = vld [vmem:[%s5188_s1 + $0x56c] sm:$0xf0]  ;;  %1677 = vmatpush.bf16.msrb.mxu0 %v2758_v24  ;;  %v3303_v15 = vld [vmem:[%s5188_s1 + $0x2e4] sm:$0xf] }
  0x33   :  { %v2741_v27 = vld [vmem:[%s5188_s1 + $0x460] sm:$0xf]  ;;  %v3142_v30 = vor.u32 %v3453_v23, %v3141_v22  ;;  %v3417_v33 = vld [vmem:[%s5188_s1 + $0x66c] sm:$0xf0]  ;;  %1691 = vmatpush.bf16.msrb.mxu1 %v2886_v25  ;;  %v2551_v16 = vld [vmem:[%s5188_s1 + $0x2f0] sm:$0xf0] }
  0x34   :  { %v2869_v29 = vld [vmem:[%s5188_s1 + $0x560] sm:$0xf]  ;;  %v3449_v35 = vld [vmem:[%s5188_s1 + $0x76c] sm:$0xf0]  ;;  %v2742_v36 = vor.u32 %v3353_v28, %v2741_v27  ;;  %1705 = vmatpush.bf16.msrb.mxu2 %v3014_v26  ;;  %v3335_v18 = vld [vmem:[%s5188_s1 + $0x3e4] sm:$0xf] }
  0x35   :  { %v2997_v32 = vld [vmem:[%s5188_s1 + $0x660] sm:$0xf]  ;;  %v2870_v37 = vor.u32 %v3385_v31, %v2869_v29  ;;  %v3349_v40 = vld [vmem:[%s5188_s1 + $0x44c] sm:$0xf0]  ;;  %1719 = vmatpush.bf16.msrb.mxu3 %v3142_v30  ;;  %v2679_v20 = vld [vmem:[%s5188_s1 + $0x3f0] sm:$0xf0]  ;;  %v2298_v29 = vor.u32 %v3239_v9, %v2295_v12 }
  0x36   :  { %v3125_v34 = vld [vmem:[%s5188_s1 + $0x760] sm:$0xf]  ;;  %v2998_v38 = vor.u32 %v3417_v33, %v2997_v32  ;;  %v3381_v43 = vld [vmem:[%s5188_s1 + $0x54c] sm:$0xf0]  ;;  %1678 = vmatpush.bf16.msrb.mxu0 %v2742_v36  ;;  %v2173_v25 = vld [vmem:[%s5189_s0 + $0x18] sm:$0xf]  ;;  %v2426_v33 = vor.u32 %v3271_v13, %v2423_v14 }
  0x37   :  { %v2725_v39 = vld [vmem:[%s5188_s1 + $0x440] sm:$0xf]  ;;  %v3126_v42 = vor.u32 %v3449_v35, %v3125_v34  ;;  %v3413_v45 = vld [vmem:[%s5188_s1 + $0x64c] sm:$0xf0]  ;;  %1692 = vmatpush.bf16.msrb.mxu1 %v2870_v37  ;;  %v3210_v26 = vld [vmem:[%s5189_s0 + $0x34] sm:$0xf0]  ;;  %v2554_v34 = vor.u32 %v3303_v15, %v2551_v16 }
  0x38   :  { %v2853_v41 = vld [vmem:[%s5188_s1 + $0x540] sm:$0xf]  ;;  %v3445_v47 = vld [vmem:[%s5188_s1 + $0x74c] sm:$0xf0]  ;;  %v2726_v48 = vor.u32 %v3349_v40, %v2725_v39  ;;  %1706 = vmatpush.bf16.msrb.mxu2 %v2998_v38  ;;  %v3205_v27 = vld [vmem:[%s5189_s0 + $0x14] sm:$0xf]  ;;  %v2682_v38 = vor.u32 %v3335_v18, %v2679_v20 }
  0x39   :  { %v2981_v44 = vld [vmem:[%s5188_s1 + $0x640] sm:$0xf]  ;;  %v2854_v50 = vor.u32 %v3381_v43, %v2853_v41  ;;  %v3345_v52 = vld [vmem:[%s5188_s1 + $0x42c] sm:$0xf0]  ;;  %1720 = vmatpush.bf16.msrb.mxu3 %v3126_v42  ;;  %v2167_v30 = vld [vmem:[%s5189_s0 + $0x30] sm:$0xf0]  ;;  %v3975_v43 = vor.u32 %v3210_v26, %v2173_v25 }
  0x3a   :  { %v3109_v46 = vld [vmem:[%s5188_s1 + $0x740] sm:$0xf]  ;;  %v2982_v51 = vor.u32 %v3413_v45, %v2981_v44  ;;  %v3377_v54 = vld [vmem:[%s5188_s1 + $0x52c] sm:$0xf0]  ;;  %1679 = vmatpush.bf16.msrb.mxu0 %v2726_v48  ;;  %v3206_v31 = vld [vmem:[%s5189_s0 + $0x1c] sm:$0xf]  ;;  %v3977_v44 = vor.u32 %v3205_v27, %v2167_v30 }
  0x3b   :  { %v2709_v49 = vld [vmem:[%s5188_s1 + $0x420] sm:$0xf]  ;;  %v3110_v55 = vor.u32 %v3445_v47, %v3109_v46  ;;  %v3409_v57 = vld [vmem:[%s5188_s1 + $0x62c] sm:$0xf0]  ;;  %1693 = vmatpush.bf16.msrb.mxu1 %v2854_v50  ;;  %v2175_v32 = vld [vmem:[%s5189_s0 + $0x38] sm:$0xf0] }
  0x3c   :  { %v2837_v53 = vld [vmem:[%s5188_s1 + $0x520] sm:$0xf]  ;;  %v3441_v60 = vld [vmem:[%s5188_s1 + $0x72c] sm:$0xf0]  ;;  %v2710_v63 = vor.u32 %v3345_v52, %v2709_v49  ;;  %1707 = vmatpush.bf16.msrb.mxu2 %v2982_v51  ;;  %v3235_v35 = vld [vmem:[%s5188_s1 + $0xc4] sm:$0xf]  ;;  %v3985_v47 = vor.u32 %v3206_v31, %v2175_v32 }
  0x3d   :  { %v2965_v56 = vld [vmem:[%s5188_s1 + $0x620] sm:$0xf]  ;;  %v3341_v62 = vld [vmem:[%s5188_s1 + $0x40c] sm:$0xf0]  ;;  %v2838_v5 = vor.u32 %v3377_v54, %v2837_v53  ;;  %1721 = vmatpush.bf16.msrb.mxu3 %v3110_v55  ;;  %v2279_v36 = vld [vmem:[%s5188_s1 + $0xd0] sm:$0xf0] }
  0x3e   :  { %v3093_v59 = vld [vmem:[%s5188_s1 + $0x720] sm:$0xf]  ;;  %v3373_v2 = vld [vmem:[%s5188_s1 + $0x50c] sm:$0xf0]  ;;  %v2966_v6 = vor.u32 %v3409_v57, %v2965_v56  ;;  %1680 = vmatpush.bf16.msrb.mxu0 %v2710_v63  ;;  %v3267_v37 = vld [vmem:[%s5188_s1 + $0x1c4] sm:$0xf]  ;;  %v2282_v48 = vor.u32 %v3235_v35, %v2279_v36 }
  0x3f   :  { %v2693_v61 = vld [vmem:[%s5188_s1 + $0x400] sm:$0xf]  ;;  %v3405_v4 = vld [vmem:[%s5188_s1 + $0x60c] sm:$0xf0]  ;;  %v3094_v11 = vor.u32 %v3441_v60, %v3093_v59  ;;  %1694 = vmatpush.bf16.msrb.mxu1 %v2838_v5  ;;  %v2407_v40 = vld [vmem:[%s5188_s1 + $0x1d0] sm:$0xf0] }
  0x40   :  { %v2821_v0 = vld [vmem:[%s5188_s1 + $0x500] sm:$0xf]  ;;  %v3437_v8 = vld [vmem:[%s5188_s1 + $0x70c] sm:$0xf0]  ;;  %v2694_v19 = vor.u32 %v3341_v62, %v2693_v61  ;;  %1708 = vmatpush.bf16.msrb.mxu2 %v2966_v6  ;;  %v3299_v41 = vld [vmem:[%s5188_s1 + $0x2c4] sm:$0xf]  ;;  %v2410_v49 = vor.u32 %v3267_v37, %v2407_v40 }
  0x41   :  { %v2949_v3 = vld [vmem:[%s5188_s1 + $0x600] sm:$0xf]  ;;  %v2165_v21 = vld [vmem:[%s5189_s0 + $0x10] sm:$0xf]  ;;  %v2822_v23 = vor.u32 %v3373_v2, %v2821_v0  ;;  %1722 = vmatpush.bf16.msrb.mxu3 %v3094_v11  ;;  %v2535_v42 = vld [vmem:[%s5188_s1 + $0x2d0] sm:$0xf0] }
  0x42   :  { %v3077_v7 = vld [vmem:[%s5188_s1 + $0x700] sm:$0xf]  ;;  %v3209_v22 = vld [vmem:[%s5189_s0 + $0x2c] sm:$0xf0]  ;;  %v2950_v24 = vor.u32 %v3405_v4, %v2949_v3  ;;  %1681 = vmatpush.bf16.msrb.mxu0 %v2694_v19  ;;  %v3331_v45 = vld [vmem:[%s5188_s1 + $0x3c4] sm:$0xf]  ;;  %v2538_v50 = vor.u32 %v3299_v41, %v2535_v42 }
  0x43   :  { %v3078_v28 = vor.u32 %v3437_v8, %v3077_v7  ;;  %v3964_v39 = vor.u32 %v3209_v22, %v2165_v21  ;;  %1695 = vmatpush.bf16.msrb.mxu1 %v2822_v23  ;;  %v2663_v46 = vld [vmem:[%s5188_s1 + $0x3d0] sm:$0xf0]  ;;  %v3231_v51 = vld [vmem:[%s5188_s1 + $0xa4] sm:$0xf] }
  0x44   :  { %1709 = vmatpush.bf16.msrb.mxu2 %v2950_v24  ;;  %v2263_v52 = vld [vmem:[%s5188_s1 + $0xb0] sm:$0xf0]  ;;  %v3263_v53 = vld [vmem:[%s5188_s1 + $0x1a4] sm:$0xf]  ;;  %v2666_v54 = vor.u32 %v3331_v45, %v2663_v46 }
  0x45   :  { %1723 = vmatpush.bf16.msrb.mxu3 %v3078_v28  ;;  %1682 = vmatmul.bf16.vlgmr.msrb.gmra.mxu0 %v3964_v39  ;;  %v2391_v55 = vld [vmem:[%s5188_s1 + $0x1b0] sm:$0xf0]  ;;  %v3295_v56 = vld [vmem:[%s5188_s1 + $0x2a4] sm:$0xf]  ;;  %v2266_v61 = vor.u32 %v3231_v51, %v2263_v52 }
  0x46   :  { %1730 = vmatpush.bf16.msra.mxu0 %v2298_v29  ;;  %v2519_v57 = vld [vmem:[%s5188_s1 + $0x2b0] sm:$0xf0]  ;;  %1696 = vmatmul.bf16.vlgmr.msrb.gmra.mxu1 %v3977_v44  ;;  %v3327_v59 = vld [vmem:[%s5188_s1 + $0x3a4] sm:$0xf]  ;;  %v2394_v62 = vor.u32 %v3263_v53, %v2391_v55 }
  0x47   :  { %1744 = vmatpush.bf16.msra.mxu1 %v2426_v33  ;;  %1710 = vmatmul.bf16.vlgmr.msrb.gmra.mxu2 %v3975_v43  ;;  %v2647_v60 = vld [vmem:[%s5188_s1 + $0x3b0] sm:$0xf0]  ;;  %v2522_v63 = vor.u32 %v3295_v56, %v2519_v57  ;;  %v3227_v0 = vld [vmem:[%s5188_s1 + $0x84] sm:$0xf] }
  0x48   :  { %1758 = vmatpush.bf16.msra.mxu2 %v2554_v34  ;;  %1724 = vmatmul.bf16.vlgmr.msrb.gmra.mxu3 %v3985_v47  ;;  %v2247_v2 = vld [vmem:[%s5188_s1 + $0x90] sm:$0xf0]  ;;  %v3259_v3 = vld [vmem:[%s5188_s1 + $0x184] sm:$0xf]  ;;  %v2650_v4 = vor.u32 %v3327_v59, %v2647_v60 }
  0x49   :  { %1772 = vmatpush.bf16.msra.mxu3 %v2682_v38  ;;  %v2375_v5 = vld [vmem:[%s5188_s1 + $0x190] sm:$0xf0]  ;;  %v3291_v6 = vld [vmem:[%s5188_s1 + $0x284] sm:$0xf]  ;;  %v2250_v11 = vor.u32 %v3227_v0, %v2247_v2 }
  0x4a   :  { %1731 = vmatpush.bf16.msra.mxu0 %v2282_v48  ;;  %v2503_v7 = vld [vmem:[%s5188_s1 + $0x290] sm:$0xf0]  ;;  %v3323_v8 = vld [vmem:[%s5188_s1 + $0x384] sm:$0xf]  ;;  %v2378_v12 = vor.u32 %v3259_v3, %v2375_v5 }
  0x4b   :  { %1745 = vmatpush.bf16.msra.mxu1 %v2410_v49  ;;  %v2631_v9 = vld [vmem:[%s5188_s1 + $0x390] sm:$0xf0]  ;;  %v2506_v13 = vor.u32 %v3291_v6, %v2503_v7  ;;  %v3223_v14 = vld [vmem:[%s5188_s1 + $0x64] sm:$0xf] }
  0x4c   :  { %1759 = vmatpush.bf16.msra.mxu2 %v2538_v50  ;;  %v2231_v15 = vld [vmem:[%s5188_s1 + $0x70] sm:$0xf0]  ;;  %v3255_v16 = vld [vmem:[%s5188_s1 + $0x164] sm:$0xf]  ;;  %v2634_v18 = vor.u32 %v3323_v8, %v2631_v9 }
  0x4d   :  { %1773 = vmatpush.bf16.msra.mxu3 %v2666_v54  ;;  %v2359_v19 = vld [vmem:[%s5188_s1 + $0x170] sm:$0xf0]  ;;  %v3287_v20 = vld [vmem:[%s5188_s1 + $0x264] sm:$0xf]  ;;  %v2234_v24 = vor.u32 %v3223_v14, %v2231_v15 }
  0x4e   :  { %1732 = vmatpush.bf16.msra.mxu0 %v2266_v61  ;;  %v2487_v21 = vld [vmem:[%s5188_s1 + $0x270] sm:$0xf0]  ;;  %v3319_v22 = vld [vmem:[%s5188_s1 + $0x364] sm:$0xf]  ;;  %v2362_v25 = vor.u32 %v3255_v16, %v2359_v19 }
  0x4f   :  { %1746 = vmatpush.bf16.msra.mxu1 %v2394_v62  ;;  %v2615_v23 = vld [vmem:[%s5188_s1 + $0x370] sm:$0xf0]  ;;  %v2490_v26 = vor.u32 %v3287_v20, %v2487_v21  ;;  %v3219_v27 = vld [vmem:[%s5188_s1 + $0x44] sm:$0xf] }
  0x50   :  { %1760 = vmatpush.bf16.msra.mxu2 %v2522_v63  ;;  %v2215_v28 = vld [vmem:[%s5188_s1 + $0x50] sm:$0xf0]  ;;  %v3251_v29 = vld [vmem:[%s5188_s1 + $0x144] sm:$0xf]  ;;  %v2618_v30 = vor.u32 %v3319_v22, %v2615_v23 }
  0x51   :  { %1774 = vmatpush.bf16.msra.mxu3 %v2650_v4  ;;  %v2343_v31 = vld [vmem:[%s5188_s1 + $0x150] sm:$0xf0]  ;;  %v3283_v32 = vld [vmem:[%s5188_s1 + $0x244] sm:$0xf]  ;;  %v2218_v36 = vor.u32 %v3219_v27, %v2215_v28 }
  0x52   :  { %1733 = vmatpush.bf16.msra.mxu0 %v2250_v11  ;;  %v2471_v33 = vld [vmem:[%s5188_s1 + $0x250] sm:$0xf0]  ;;  %v3315_v34 = vld [vmem:[%s5188_s1 + $0x344] sm:$0xf]  ;;  %v2346_v37 = vor.u32 %v3251_v29, %v2343_v31 }
  0x53   :  { %1747 = vmatpush.bf16.msra.mxu1 %v2378_v12  ;;  %v2599_v35 = vld [vmem:[%s5188_s1 + $0x350] sm:$0xf0]  ;;  %v2474_v38 = vor.u32 %v3283_v32, %v2471_v33  ;;  %v3215_v40 = vld [vmem:[%s5188_s1 + $0x24] sm:$0xf] }
  0x54   :  { %1761 = vmatpush.bf16.msra.mxu2 %v2506_v13  ;;  %v2199_v41 = vld [vmem:[%s5188_s1 + $0x30] sm:$0xf0]  ;;  %v3247_v42 = vld [vmem:[%s5188_s1 + $0x124] sm:$0xf]  ;;  %v2602_v45 = vor.u32 %v3315_v34, %v2599_v35 }
  0x55   :  { %1775 = vmatpush.bf16.msra.mxu3 %v2634_v18  ;;  %v2327_v46 = vld [vmem:[%s5188_s1 + $0x130] sm:$0xf0]  ;;  %v3279_v48 = vld [vmem:[%s5188_s1 + $0x224] sm:$0xf]  ;;  %v2202_v52 = vor.u32 %v3215_v40, %v2199_v41 }
  0x56   :  { %1734 = vmatpush.bf16.msra.mxu0 %v2234_v24  ;;  %v2455_v49 = vld [vmem:[%s5188_s1 + $0x230] sm:$0xf0]  ;;  %v3311_v50 = vld [vmem:[%s5188_s1 + $0x324] sm:$0xf]  ;;  %v2330_v55 = vor.u32 %v3247_v42, %v2327_v46 }
  0x57   :  { %1748 = vmatpush.bf16.msra.mxu1 %v2362_v25  ;;  %v2583_v51 = vld [vmem:[%s5188_s1 + $0x330] sm:$0xf0]  ;;  %v3211_v53 = vld [vmem:[%s5188_s1 + $0x4] sm:$0xf]  ;;  %v2458_v56 = vor.u32 %v3279_v48, %v2455_v49 }
  0x58   :  { %1762 = vmatpush.bf16.msra.mxu2 %v2490_v26  ;;  %v2183_v54 = vld [vmem:[%s5188_s1 + $0x10] sm:$0xf0]  ;;  %v3243_v57 = vld [vmem:[%s5188_s1 + $0x104] sm:$0xf]  ;;  %v2586_v61 = vor.u32 %v3311_v50, %v2583_v51 }
  0x59   :  { %1776 = vmatpush.bf16.msra.mxu3 %v2618_v30  ;;  %v2311_v59 = vld [vmem:[%s5188_s1 + $0x110] sm:$0xf0]  ;;  %v3275_v60 = vld [vmem:[%s5188_s1 + $0x204] sm:$0xf]  ;;  %v2186_v5 = vor.u32 %v3211_v53, %v2183_v54 }
  0x5a   :  { %1735 = vmatpush.bf16.msra.mxu0 %v2218_v36  ;;  %v2439_v62 = vld [vmem:[%s5188_s1 + $0x210] sm:$0xf0]  ;;  %v3307_v63 = vld [vmem:[%s5188_s1 + $0x304] sm:$0xf]  ;;  %v2314_v9 = vor.u32 %v3243_v57, %v2311_v59 }
  0x5b   :  { %1749 = vmatpush.bf16.msra.mxu1 %v2346_v37  ;;  %v2567_v0 = vld [vmem:[%s5188_s1 + $0x310] sm:$0xf0]  ;;  %v3367_v2 = vld [vmem:[%s5188_s1 + $0x4e4] sm:$0xf]  ;;  %v2442_v11 = vor.u32 %v3275_v60, %v2439_v62 }
  0x5c   :  { %1763 = vmatpush.bf16.msra.mxu2 %v2474_v38  ;;  %v2807_v3 = vld [vmem:[%s5188_s1 + $0x4f0] sm:$0xf0]  ;;  %v3399_v4 = vld [vmem:[%s5188_s1 + $0x5e4] sm:$0xf]  ;;  %v2570_v14 = vor.u32 %v3307_v63, %v2567_v0 }
  0x5d   :  { %1777 = vmatpush.bf16.msra.mxu3 %v2602_v45  ;;  %v2935_v6 = vld [vmem:[%s5188_s1 + $0x5f0] sm:$0xf0]  ;;  %v3431_v7 = vld [vmem:[%s5188_s1 + $0x6e4] sm:$0xf]  ;;  %v2810_v15 = vor.u32 %v3367_v2, %v2807_v3 }
  0x5e   :  { %1736 = vmatpush.bf16.msra.mxu0 %v2202_v52  ;;  %v3063_v8 = vld [vmem:[%s5188_s1 + $0x6f0] sm:$0xf0]  ;;  %v3463_v12 = vld [vmem:[%s5188_s1 + $0x7e4] sm:$0xf]  ;;  %v2938_v16 = vor.u32 %v3399_v4, %v2935_v6 }
  0x5f   :  { %1750 = vmatpush.bf16.msra.mxu1 %v2330_v55  ;;  %v3191_v13 = vld [vmem:[%s5188_s1 + $0x7f0] sm:$0xf0]  ;;  %v3066_v18 = vor.u32 %v3431_v7, %v3063_v8  ;;  %v3363_v19 = vld [vmem:[%s5188_s1 + $0x4c4] sm:$0xf] }
  0x60   :  { %1764 = vmatpush.bf16.msra.mxu2 %v2458_v56  ;;  %v2791_v20 = vld [vmem:[%s5188_s1 + $0x4d0] sm:$0xf0]  ;;  %v3395_v21 = vld [vmem:[%s5188_s1 + $0x5c4] sm:$0xf]  ;;  %v3194_v22 = vor.u32 %v3463_v12, %v3191_v13 }
  0x61   :  { %1778 = vmatpush.bf16.msra.mxu3 %v2586_v61  ;;  %v2919_v23 = vld [vmem:[%s5188_s1 + $0x5d0] sm:$0xf0]  ;;  %v3427_v24 = vld [vmem:[%s5188_s1 + $0x6c4] sm:$0xf]  ;;  %v2794_v28 = vor.u32 %v3363_v19, %v2791_v20 }
  0x62   :  { %1737 = vmatpush.bf16.msra.mxu0 %v2186_v5  ;;  %v3047_v25 = vld [vmem:[%s5188_s1 + $0x6d0] sm:$0xf0]  ;;  %v3459_v26 = vld [vmem:[%s5188_s1 + $0x7c4] sm:$0xf]  ;;  %v2922_v29 = vor.u32 %v3395_v21, %v2919_v23 }
  0x63   :  { %1751 = vmatpush.bf16.msra.mxu1 %v2314_v9  ;;  %v3175_v27 = vld [vmem:[%s5188_s1 + $0x7d0] sm:$0xf0]  ;;  %v3050_v30 = vor.u32 %v3427_v24, %v3047_v25  ;;  %v3359_v31 = vld [vmem:[%s5188_s1 + $0x4a4] sm:$0xf] }
  0x64   :  { %1765 = vmatpush.bf16.msra.mxu2 %v2442_v11  ;;  %v2775_v32 = vld [vmem:[%s5188_s1 + $0x4b0] sm:$0xf0]  ;;  %v3391_v33 = vld [vmem:[%s5188_s1 + $0x5a4] sm:$0xf]  ;;  %v3178_v34 = vor.u32 %v3459_v26, %v3175_v27 }
  0x65   :  { %1779 = vmatpush.bf16.msra.mxu3 %v2570_v14  ;;  %v2903_v35 = vld [vmem:[%s5188_s1 + $0x5b0] sm:$0xf0]  ;;  %v3423_v36 = vld [vmem:[%s5188_s1 + $0x6a4] sm:$0xf]  ;;  %1738 = vmatmul.bf16.vlgmr.msra.gmra.mxu0 %v3742_v58  ;;  %v2778_v41 = vor.u32 %v3359_v31, %v2775_v32 }
  0x66   :  { %1786 = vmatpush.bf16.msrb.mxu0 %v2810_v15  ;;  %v3031_v37 = vld [vmem:[%s5188_s1 + $0x6b0] sm:$0xf0]  ;;  %v3455_v38 = vld [vmem:[%s5188_s1 + $0x7a4] sm:$0xf]  ;;  %1752 = vmatmul.bf16.vlgmr.msra.gmra.mxu1 %v3778_v10  ;;  %v2906_v42 = vor.u32 %v3391_v33, %v2903_v35 }
  0x67   :  { %1800 = vmatpush.bf16.msrb.mxu1 %v2938_v16  ;;  %v3159_v40 = vld [vmem:[%s5188_s1 + $0x7b0] sm:$0xf0]  ;;  %1766 = vmatmul.bf16.vlgmr.msra.gmra.mxu2 %v3756_v1  ;;  %v3034_v45 = vor.u32 %v3423_v36, %v3031_v37  ;;  %v3355_v46 = vld [vmem:[%s5188_s1 + $0x484] sm:$0xf] }
  0x68   :  { %1814 = vmatpush.bf16.msrb.mxu2 %v3066_v18  ;;  %1780 = vmatmul.bf16.vlgmr.msra.gmra.mxu3 %v3792_v17  ;;  %v2759_v48 = vld [vmem:[%s5188_s1 + $0x490] sm:$0xf0]  ;;  %v3387_v49 = vld [vmem:[%s5188_s1 + $0x584] sm:$0xf]  ;;  %v3162_v50 = vor.u32 %v3455_v38, %v3159_v40 }
  0x69   :  { %1828 = vmatpush.bf16.msrb.mxu3 %v3194_v22  ;;  %v2887_v51 = vld [vmem:[%s5188_s1 + $0x590] sm:$0xf0]  ;;  %v3419_v52 = vld [vmem:[%s5188_s1 + $0x684] sm:$0xf]  ;;  %v2762_v56 = vor.u32 %v3355_v46, %v2759_v48  ;;  %v2301_v48 = vld [vmem:[%s5188_s1 + $0xe8] sm:$0xf] }
  0x6a   :  { %1787 = vmatpush.bf16.msrb.mxu0 %v2794_v28  ;;  %v3015_v53 = vld [vmem:[%s5188_s1 + $0x690] sm:$0xf0]  ;;  %v3451_v54 = vld [vmem:[%s5188_s1 + $0x784] sm:$0xf]  ;;  %v2890_v57 = vor.u32 %v3387_v49, %v2887_v51  ;;  %v3242_v49 = vld [vmem:[%s5188_s1 + $0xf4] sm:$0xf0] }
  0x6b   :  { %1801 = vmatpush.bf16.msrb.mxu1 %v2922_v29  ;;  %v3143_v55 = vld [vmem:[%s5188_s1 + $0x790] sm:$0xf0]  ;;  %v3018_v59 = vor.u32 %v3419_v52, %v3015_v53  ;;  %v3351_v60 = vld [vmem:[%s5188_s1 + $0x464] sm:$0xf]  ;;  %v3274_v52 = vld [vmem:[%s5188_s1 + $0x1f4] sm:$0xf0] }
  0x6c   :  { %1815 = vmatpush.bf16.msrb.mxu2 %v3050_v30  ;;  %v2743_v61 = vld [vmem:[%s5188_s1 + $0x470] sm:$0xf0]  ;;  %v3383_v62 = vld [vmem:[%s5188_s1 + $0x564] sm:$0xf]  ;;  %v3146_v63 = vor.u32 %v3451_v54, %v3143_v55  ;;  %v2557_v53 = vld [vmem:[%s5188_s1 + $0x2e8] sm:$0xf] }
  0x6d   :  { %1829 = vmatpush.bf16.msrb.mxu3 %v3178_v34  ;;  %v2871_v0 = vld [vmem:[%s5188_s1 + $0x570] sm:$0xf0]  ;;  %v3415_v2 = vld [vmem:[%s5188_s1 + $0x664] sm:$0xf]  ;;  %v2746_v6 = vor.u32 %v3351_v60, %v2743_v61  ;;  %v3306_v54 = vld [vmem:[%s5188_s1 + $0x2f4] sm:$0xf0]  ;;  %v2302_v61 = vor.u32 %v3242_v49, %v2301_v48 }
  0x6e   :  { %1788 = vmatpush.bf16.msrb.mxu0 %v2778_v41  ;;  %v2999_v3 = vld [vmem:[%s5188_s1 + $0x670] sm:$0xf0]  ;;  %v3447_v4 = vld [vmem:[%s5188_s1 + $0x764] sm:$0xf]  ;;  %v2874_v7 = vor.u32 %v3383_v62, %v2871_v0  ;;  %v2285_v0 = vld [vmem:[%s5188_s1 + $0xc8] sm:$0xf] }
  0x6f   :  { %1802 = vmatpush.bf16.msrb.mxu1 %v2906_v42  ;;  %v3127_v5 = vld [vmem:[%s5188_s1 + $0x770] sm:$0xf0]  ;;  %v3002_v8 = vor.u32 %v3415_v2, %v2999_v3  ;;  %v3347_v9 = vld [vmem:[%s5188_s1 + $0x444] sm:$0xf]  ;;  %v3238_v2 = vld [vmem:[%s5188_s1 + $0xd4] sm:$0xf0] }
  0x70   :  { %1816 = vmatpush.bf16.msrb.mxu2 %v3034_v45  ;;  %v2727_v11 = vld [vmem:[%s5188_s1 + $0x450] sm:$0xf0]  ;;  %v3379_v12 = vld [vmem:[%s5188_s1 + $0x544] sm:$0xf]  ;;  %v3130_v13 = vor.u32 %v3447_v4, %v3127_v5  ;;  %v2413_v3 = vld [vmem:[%s5188_s1 + $0x1c8] sm:$0xf] }
  0x71   :  { %1830 = vmatpush.bf16.msrb.mxu3 %v3162_v50  ;;  %v2855_v14 = vld [vmem:[%s5188_s1 + $0x550] sm:$0xf0]  ;;  %v3411_v15 = vld [vmem:[%s5188_s1 + $0x644] sm:$0xf]  ;;  %v2730_v20 = vor.u32 %v3347_v9, %v2727_v11  ;;  %v2429_v50 = vld [vmem:[%s5188_s1 + $0x1e8] sm:$0xf]  ;;  %v2286_v11 = vor.u32 %v3238_v2, %v2285_v0 }
  0x72   :  { %1789 = vmatpush.bf16.msrb.mxu0 %v2762_v56  ;;  %v2983_v16 = vld [vmem:[%s5188_s1 + $0x650] sm:$0xf0]  ;;  %v3443_v18 = vld [vmem:[%s5188_s1 + $0x744] sm:$0xf]  ;;  %v2858_v21 = vor.u32 %v3379_v12, %v2855_v14  ;;  %v2430_v62 = vor.u32 %v3274_v52, %v2429_v50  ;;  %v3270_v5 = vld [vmem:[%s5188_s1 + $0x1d4] sm:$0xf0] }
  0x73   :  { %1803 = vmatpush.bf16.msrb.mxu1 %v2890_v57  ;;  %v3111_v19 = vld [vmem:[%s5188_s1 + $0x750] sm:$0xf0]  ;;  %v2986_v22 = vor.u32 %v3411_v15, %v2983_v16  ;;  %v3343_v23 = vld [vmem:[%s5188_s1 + $0x424] sm:$0xf]  ;;  %v2685_v57 = vld [vmem:[%s5188_s1 + $0x3e8] sm:$0xf]  ;;  %v2414_v12 = vor.u32 %v3270_v5, %v2413_v3 }
  0x74   :  { %1817 = vmatpush.bf16.msrb.mxu2 %v3018_v59  ;;  %v2711_v24 = vld [vmem:[%s5188_s1 + $0x430] sm:$0xf0]  ;;  %v3375_v25 = vld [vmem:[%s5188_s1 + $0x524] sm:$0xf]  ;;  %v3114_v26 = vor.u32 %v3443_v18, %v3111_v19  ;;  %v3338_v59 = vld [vmem:[%s5188_s1 + $0x3f4] sm:$0xf0] }
  0x75   :  { %1831 = vmatpush.bf16.msrb.mxu3 %v3146_v63  ;;  %v2839_v27 = vld [vmem:[%s5188_s1 + $0x530] sm:$0xf0]  ;;  %v3407_v28 = vld [vmem:[%s5188_s1 + $0x624] sm:$0xf]  ;;  %v2714_v32 = vor.u32 %v3343_v23, %v2711_v24  ;;  %v2558_v63 = vor.u32 %v3306_v54, %v2557_v53  ;;  %v2686_v4 = vor.u32 %v3338_v59, %v2685_v57  ;;  %v3334_v9 = vld [vmem:[%s5188_s1 + $0x3d4] sm:$0xf0] }
  0x76   :  { %1790 = vmatpush.bf16.msrb.mxu0 %v2746_v6  ;;  %v2967_v29 = vld [vmem:[%s5188_s1 + $0x630] sm:$0xf0]  ;;  %v3439_v30 = vld [vmem:[%s5188_s1 + $0x724] sm:$0xf]  ;;  %v2842_v35 = vor.u32 %v3375_v25, %v2839_v27  ;;  %v2541_v6 = vld [vmem:[%s5188_s1 + $0x2c8] sm:$0xf] }
  0x77   :  { %1804 = vmatpush.bf16.msrb.mxu1 %v2874_v7  ;;  %v3095_v31 = vld [vmem:[%s5188_s1 + $0x730] sm:$0xf0]  ;;  %v3339_v33 = vld [vmem:[%s5188_s1 + $0x404] sm:$0xf]  ;;  %v2970_v36 = vor.u32 %v3407_v28, %v2967_v29  ;;  %v3302_v7 = vld [vmem:[%s5188_s1 + $0x2d4] sm:$0xf0] }
  0x78   :  { %1818 = vmatpush.bf16.msrb.mxu2 %v3002_v8  ;;  %v2695_v34 = vld [vmem:[%s5188_s1 + $0x410] sm:$0xf0]  ;;  %v3371_v37 = vld [vmem:[%s5188_s1 + $0x504] sm:$0xf]  ;;  %v3098_v41 = vor.u32 %v3439_v30, %v3095_v31  ;;  %v2669_v8 = vld [vmem:[%s5188_s1 + $0x3c8] sm:$0xf] }
  0x79   :  { %1832 = vmatpush.bf16.msrb.mxu3 %v3130_v13  ;;  %v2823_v38 = vld [vmem:[%s5188_s1 + $0x510] sm:$0xf0]  ;;  %v3403_v40 = vld [vmem:[%s5188_s1 + $0x604] sm:$0xf]  ;;  %v2698_v51 = vor.u32 %v3339_v33, %v2695_v34  ;;  %v2542_v13 = vor.u32 %v3302_v7, %v2541_v6  ;;  %v2269_v14 = vld [vmem:[%s5188_s1 + $0xa8] sm:$0xf]  ;;  %v2670_v18 = vor.u32 %v3334_v9, %v2669_v8 }
  0x7a   :  { %1791 = vmatpush.bf16.msrb.mxu0 %v2730_v20  ;;  %v2951_v42 = vld [vmem:[%s5188_s1 + $0x610] sm:$0xf0]  ;;  %v3435_v45 = vld [vmem:[%s5188_s1 + $0x704] sm:$0xf]  ;;  %v2826_v55 = vor.u32 %v3371_v37, %v2823_v38  ;;  %v3234_v15 = vld [vmem:[%s5188_s1 + $0xb4] sm:$0xf0] }
  0x7b   :  { %1805 = vmatpush.bf16.msrb.mxu1 %v2858_v21  ;;  %v3079_v46 = vld [vmem:[%s5188_s1 + $0x710] sm:$0xf0]  ;;  %v2954_v56 = vor.u32 %v3403_v40, %v2951_v42  ;;  %v2397_v16 = vld [vmem:[%s5188_s1 + $0x1a8] sm:$0xf]  ;;  %v3266_v19 = vld [vmem:[%s5188_s1 + $0x1b4] sm:$0xf0]  ;;  %v2270_v24 = vor.u32 %v3234_v15, %v2269_v14 }
  0x7c   :  { %1819 = vmatpush.bf16.msrb.mxu2 %v2986_v22  ;;  %v3082_v60 = vor.u32 %v3435_v45, %v3079_v46  ;;  %v2525_v20 = vld [vmem:[%s5188_s1 + $0x2a8] sm:$0xf]  ;;  %v3298_v21 = vld [vmem:[%s5188_s1 + $0x2b4] sm:$0xf0]  ;;  %v2398_v25 = vor.u32 %v3266_v19, %v2397_v16 }
  0x7d   :  { %1833 = vmatpush.bf16.msrb.mxu3 %v3114_v26  ;;  %v2653_v22 = vld [vmem:[%s5188_s1 + $0x3a8] sm:$0xf]  ;;  %v3330_v23 = vld [vmem:[%s5188_s1 + $0x3b4] sm:$0xf0]  ;;  %v2526_v26 = vor.u32 %v3298_v21, %v2525_v20 }
  0x7e   :  { %1792 = vmatpush.bf16.msrb.mxu0 %v2714_v32  ;;  %v2253_v27 = vld [vmem:[%s5188_s1 + $0x88] sm:$0xf]  ;;  %v3230_v28 = vld [vmem:[%s5188_s1 + $0x94] sm:$0xf0]  ;;  %v2654_v30 = vor.u32 %v3330_v23, %v2653_v22 }
  0x7f   :  { %1806 = vmatpush.bf16.msrb.mxu1 %v2842_v35  ;;  %v2381_v29 = vld [vmem:[%s5188_s1 + $0x188] sm:$0xf]  ;;  %v3262_v31 = vld [vmem:[%s5188_s1 + $0x194] sm:$0xf0] }
  0x80   :  { %1820 = vmatpush.bf16.msrb.mxu2 %v2970_v36  ;;  %v2509_v32 = vld [vmem:[%s5188_s1 + $0x288] sm:$0xf]  ;;  %v3294_v33 = vld [vmem:[%s5188_s1 + $0x294] sm:$0xf0]  ;;  %v2254_v36 = vor.u32 %v3230_v28, %v2253_v27  ;;  %v2382_v37 = vor.u32 %v3262_v31, %v2381_v29 }
  0x81   :  { %1834 = vmatpush.bf16.msrb.mxu3 %v3098_v41  ;;  %v2637_v34 = vld [vmem:[%s5188_s1 + $0x388] sm:$0xf]  ;;  %v3326_v35 = vld [vmem:[%s5188_s1 + $0x394] sm:$0xf0]  ;;  %v2510_v38 = vor.u32 %v3294_v33, %v2509_v32 }
  0x82   :  { %1793 = vmatpush.bf16.msrb.mxu0 %v2698_v51  ;;  %v2237_v40 = vld [vmem:[%s5188_s1 + $0x68] sm:$0xf]  ;;  %v3226_v41 = vld [vmem:[%s5188_s1 + $0x74] sm:$0xf0]  ;;  %v2638_v45 = vor.u32 %v3326_v35, %v2637_v34 }
  0x83   :  { %1807 = vmatpush.bf16.msrb.mxu1 %v2826_v55  ;;  %v2365_v42 = vld [vmem:[%s5188_s1 + $0x168] sm:$0xf]  ;;  %v3258_v46 = vld [vmem:[%s5188_s1 + $0x174] sm:$0xf0]  ;;  %v2238_v52 = vor.u32 %v3226_v41, %v2237_v40 }
  0x84   :  { %1821 = vmatpush.bf16.msrb.mxu2 %v2954_v56  ;;  %v2493_v48 = vld [vmem:[%s5188_s1 + $0x268] sm:$0xf]  ;;  %v3290_v49 = vld [vmem:[%s5188_s1 + $0x274] sm:$0xf0]  ;;  %v2366_v53 = vor.u32 %v3258_v46, %v2365_v42 }
  0x85   :  { %1835 = vmatpush.bf16.msrb.mxu3 %v3082_v60  ;;  %1794 = vmatmul.bf16.vlgmr.msrb.gmra.mxu0 %v3964_v39  ;;  %v2621_v50 = vld [vmem:[%s5188_s1 + $0x368] sm:$0xf]  ;;  %v3322_v51 = vld [vmem:[%s5188_s1 + $0x374] sm:$0xf0]  ;;  %v2494_v54 = vor.u32 %v3290_v49, %v2493_v48 }
  0x86   :  { %1842 = vmatpush.bf16.msra.mxu0 %v2302_v61  ;;  %1808 = vmatmul.bf16.vlgmr.msrb.gmra.mxu1 %v3977_v44  ;;  %v2221_v55 = vld [vmem:[%s5188_s1 + $0x48] sm:$0xf]  ;;  %v3222_v56 = vld [vmem:[%s5188_s1 + $0x54] sm:$0xf0]  ;;  %v2622_v59 = vor.u32 %v3322_v51, %v2621_v50 }
  0x87   :  { %1856 = vmatpush.bf16.msra.mxu1 %v2430_v62  ;;  %1822 = vmatmul.bf16.vlgmr.msrb.gmra.mxu2 %v3975_v43  ;;  %v2349_v57 = vld [vmem:[%s5188_s1 + $0x148] sm:$0xf]  ;;  %v3254_v60 = vld [vmem:[%s5188_s1 + $0x154] sm:$0xf0]  ;;  %v2222_v2 = vor.u32 %v3222_v56, %v2221_v55 }
  0x88   :  { %1870 = vmatpush.bf16.msra.mxu2 %v2558_v63  ;;  %1836 = vmatmul.bf16.vlgmr.msrb.gmra.mxu3 %v3985_v47  ;;  %v2477_v61 = vld [vmem:[%s5188_s1 + $0x248] sm:$0xf]  ;;  %v3286_v62 = vld [vmem:[%s5188_s1 + $0x254] sm:$0xf0]  ;;  %v2350_v3 = vor.u32 %v3254_v60, %v2349_v57 }
  0x89   :  { %1884 = vmatpush.bf16.msra.mxu3 %v2686_v4  ;;  %v2605_v63 = vld [vmem:[%s5188_s1 + $0x348] sm:$0xf]  ;;  %v3318_v0 = vld [vmem:[%s5188_s1 + $0x354] sm:$0xf0]  ;;  %v2478_v4 = vor.u32 %v3286_v62, %v2477_v61 }
  0x8a   :  { %1843 = vmatpush.bf16.msra.mxu0 %v2286_v11  ;;  %v2205_v5 = vld [vmem:[%s5188_s1 + $0x28] sm:$0xf]  ;;  %v3218_v6 = vld [vmem:[%s5188_s1 + $0x34] sm:$0xf0]  ;;  %v2606_v8 = vor.u32 %v3318_v0, %v2605_v63 }
  0x8b   :  { %1857 = vmatpush.bf16.msra.mxu1 %v2414_v12  ;;  %v2333_v7 = vld [vmem:[%s5188_s1 + $0x128] sm:$0xf]  ;;  %v3250_v9 = vld [vmem:[%s5188_s1 + $0x134] sm:$0xf0]  ;;  %v2206_v15 = vor.u32 %v3218_v6, %v2205_v5 }
  0x8c   :  { %1871 = vmatpush.bf16.msra.mxu2 %v2542_v13  ;;  %v2461_v11 = vld [vmem:[%s5188_s1 + $0x228] sm:$0xf]  ;;  %v3282_v12 = vld [vmem:[%s5188_s1 + $0x234] sm:$0xf0]  ;;  %v2334_v19 = vor.u32 %v3250_v9, %v2333_v7 }
  0x8d   :  { %1885 = vmatpush.bf16.msra.mxu3 %v2670_v18  ;;  %v2589_v13 = vld [vmem:[%s5188_s1 + $0x328] sm:$0xf]  ;;  %v3314_v14 = vld [vmem:[%s5188_s1 + $0x334] sm:$0xf0]  ;;  %v2462_v20 = vor.u32 %v3282_v12, %v2461_v11 }
  0x8e   :  { %1844 = vmatpush.bf16.msra.mxu0 %v2270_v24  ;;  %v2189_v16 = vld [vmem:[%s5188_s1 + $0x8] sm:$0xf]  ;;  %v3214_v18 = vld [vmem:[%s5188_s1 + $0x14] sm:$0xf0]  ;;  %v2590_v24 = vor.u32 %v3314_v14, %v2589_v13 }
  0x8f   :  { %1858 = vmatpush.bf16.msra.mxu1 %v2398_v25  ;;  %v2317_v21 = vld [vmem:[%s5188_s1 + $0x108] sm:$0xf]  ;;  %v3246_v22 = vld [vmem:[%s5188_s1 + $0x114] sm:$0xf0]  ;;  %v2190_v31 = vor.u32 %v3214_v18, %v2189_v16 }
  0x90   :  { %1872 = vmatpush.bf16.msra.mxu2 %v2526_v26  ;;  %v2445_v23 = vld [vmem:[%s5188_s1 + $0x208] sm:$0xf]  ;;  %v3278_v25 = vld [vmem:[%s5188_s1 + $0x214] sm:$0xf0]  ;;  %v2318_v35 = vor.u32 %v3246_v22, %v2317_v21 }
  0x91   :  { %1886 = vmatpush.bf16.msra.mxu3 %v2654_v30  ;;  %v2573_v26 = vld [vmem:[%s5188_s1 + $0x308] sm:$0xf]  ;;  %v3310_v27 = vld [vmem:[%s5188_s1 + $0x314] sm:$0xf0] }
  0x92   :  { %1845 = vmatpush.bf16.msra.mxu0 %v2254_v36  ;;  %v2813_v28 = vld [vmem:[%s5188_s1 + $0x4e8] sm:$0xf]  ;;  %v3370_v29 = vld [vmem:[%s5188_s1 + $0x4f4] sm:$0xf0]  ;;  %v2446_v36 = vor.u32 %v3278_v25, %v2445_v23  ;;  %v2574_v40 = vor.u32 %v3310_v27, %v2573_v26 }
  0x93   :  { %1859 = vmatpush.bf16.msra.mxu1 %v2382_v37  ;;  %v2941_v30 = vld [vmem:[%s5188_s1 + $0x5e8] sm:$0xf]  ;;  %v3402_v32 = vld [vmem:[%s5188_s1 + $0x5f4] sm:$0xf0]  ;;  %v2814_v41 = vor.u32 %v3370_v29, %v2813_v28 }
  0x94   :  { %1873 = vmatpush.bf16.msra.mxu2 %v2510_v38  ;;  %v3069_v33 = vld [vmem:[%s5188_s1 + $0x6e8] sm:$0xf]  ;;  %v3434_v34 = vld [vmem:[%s5188_s1 + $0x6f4] sm:$0xf0]  ;;  %v2942_v42 = vor.u32 %v3402_v32, %v2941_v30 }
  0x95   :  { %1887 = vmatpush.bf16.msra.mxu3 %v2638_v45  ;;  %v3197_v37 = vld [vmem:[%s5188_s1 + $0x7e8] sm:$0xf]  ;;  %v3466_v38 = vld [vmem:[%s5188_s1 + $0x7f4] sm:$0xf0]  ;;  %v3070_v45 = vor.u32 %v3434_v34, %v3069_v33 }
  0x96   :  { %1846 = vmatpush.bf16.msra.mxu0 %v2238_v52  ;;  %v2797_v46 = vld [vmem:[%s5188_s1 + $0x4c8] sm:$0xf]  ;;  %v3366_v48 = vld [vmem:[%s5188_s1 + $0x4d4] sm:$0xf0]  ;;  %v3198_v50 = vor.u32 %v3466_v38, %v3197_v37 }
  0x97   :  { %1860 = vmatpush.bf16.msra.mxu1 %v2366_v53  ;;  %v2925_v49 = vld [vmem:[%s5188_s1 + $0x5c8] sm:$0xf]  ;;  %v3398_v51 = vld [vmem:[%s5188_s1 + $0x5d4] sm:$0xf0]  ;;  %v2798_v56 = vor.u32 %v3366_v48, %v2797_v46 }
  0x98   :  { %1874 = vmatpush.bf16.msra.mxu2 %v2494_v54  ;;  %v3053_v52 = vld [vmem:[%s5188_s1 + $0x6c8] sm:$0xf]  ;;  %v3430_v53 = vld [vmem:[%s5188_s1 + $0x6d4] sm:$0xf0]  ;;  %v2926_v57 = vor.u32 %v3398_v51, %v2925_v49 }
  0x99   :  { %1888 = vmatpush.bf16.msra.mxu3 %v2622_v59  ;;  %v3181_v54 = vld [vmem:[%s5188_s1 + $0x7c8] sm:$0xf]  ;;  %v3462_v55 = vld [vmem:[%s5188_s1 + $0x7d4] sm:$0xf0]  ;;  %v3054_v59 = vor.u32 %v3430_v53, %v3053_v52 }
  0x9a   :  { %1847 = vmatpush.bf16.msra.mxu0 %v2222_v2  ;;  %v2781_v60 = vld [vmem:[%s5188_s1 + $0x4a8] sm:$0xf]  ;;  %v3362_v61 = vld [vmem:[%s5188_s1 + $0x4b4] sm:$0xf0]  ;;  %v3182_v63 = vor.u32 %v3462_v55, %v3181_v54 }
  0x9b   :  { %1861 = vmatpush.bf16.msra.mxu1 %v2350_v3  ;;  %v2909_v62 = vld [vmem:[%s5188_s1 + $0x5a8] sm:$0xf]  ;;  %v3394_v0 = vld [vmem:[%s5188_s1 + $0x5b4] sm:$0xf0]  ;;  %v2782_v6 = vor.u32 %v3362_v61, %v2781_v60 }
  0x9c   :  { %1875 = vmatpush.bf16.msra.mxu2 %v2478_v4  ;;  %v3037_v2 = vld [vmem:[%s5188_s1 + $0x6a8] sm:$0xf]  ;;  %v3426_v3 = vld [vmem:[%s5188_s1 + $0x6b4] sm:$0xf0]  ;;  %v2910_v7 = vor.u32 %v3394_v0, %v2909_v62 }
  0x9d   :  { %1889 = vmatpush.bf16.msra.mxu3 %v2606_v8  ;;  %v3165_v4 = vld [vmem:[%s5188_s1 + $0x7a8] sm:$0xf]  ;;  %v3458_v5 = vld [vmem:[%s5188_s1 + $0x7b4] sm:$0xf0]  ;;  %v3038_v8 = vor.u32 %v3426_v3, %v3037_v2 }
  0x9e   :  { %1848 = vmatpush.bf16.msra.mxu0 %v2206_v15  ;;  %v2765_v9 = vld [vmem:[%s5188_s1 + $0x488] sm:$0xf]  ;;  %v3358_v11 = vld [vmem:[%s5188_s1 + $0x494] sm:$0xf0]  ;;  %v3166_v13 = vor.u32 %v3458_v5, %v3165_v4 }
  0x9f   :  { %1862 = vmatpush.bf16.msra.mxu1 %v2334_v19  ;;  %v2893_v12 = vld [vmem:[%s5188_s1 + $0x588] sm:$0xf]  ;;  %v3390_v14 = vld [vmem:[%s5188_s1 + $0x594] sm:$0xf0] }
  0xa0   :  { %1876 = vmatpush.bf16.msra.mxu2 %v2462_v20  ;;  %v3021_v15 = vld [vmem:[%s5188_s1 + $0x688] sm:$0xf]  ;;  %v3422_v16 = vld [vmem:[%s5188_s1 + $0x694] sm:$0xf0]  ;;  %v2766_v20 = vor.u32 %v3358_v11, %v2765_v9  ;;  %v2894_v21 = vor.u32 %v3390_v14, %v2893_v12  ;;  %v3240_v11 = vld [vmem:[%s5188_s1 + $0xec] sm:$0xf] }
  0xa1   :  { %1890 = vmatpush.bf16.msra.mxu3 %v2590_v24  ;;  %v3149_v18 = vld [vmem:[%s5188_s1 + $0x788] sm:$0xf]  ;;  %v3454_v19 = vld [vmem:[%s5188_s1 + $0x794] sm:$0xf0]  ;;  %v3022_v22 = vor.u32 %v3422_v16, %v3021_v15  ;;  %v2303_v12 = vld [vmem:[%s5188_s1 + $0xf8] sm:$0xf0] }
  0xa2   :  { %1849 = vmatpush.bf16.msra.mxu0 %v2190_v31  ;;  %v2749_v23 = vld [vmem:[%s5188_s1 + $0x468] sm:$0xf]  ;;  %v3354_v24 = vld [vmem:[%s5188_s1 + $0x474] sm:$0xf0]  ;;  %v3150_v26 = vor.u32 %v3454_v19, %v3149_v18  ;;  %v2431_v15 = vld [vmem:[%s5188_s1 + $0x1f8] sm:$0xf0] }
  0xa3   :  { %1863 = vmatpush.bf16.msra.mxu1 %v2318_v35  ;;  %v2877_v25 = vld [vmem:[%s5188_s1 + $0x568] sm:$0xf]  ;;  %v3386_v27 = vld [vmem:[%s5188_s1 + $0x574] sm:$0xf0]  ;;  %v2750_v32 = vor.u32 %v3354_v24, %v2749_v23  ;;  %v3304_v16 = vld [vmem:[%s5188_s1 + $0x2ec] sm:$0xf]  ;;  %v2306_v24 = vor.u32 %v3240_v11, %v2303_v12 }
  0xa4   :  { %1877 = vmatpush.bf16.msra.mxu2 %v2446_v36  ;;  %v3005_v28 = vld [vmem:[%s5188_s1 + $0x668] sm:$0xf]  ;;  %v3418_v29 = vld [vmem:[%s5188_s1 + $0x674] sm:$0xf0]  ;;  %v2878_v33 = vor.u32 %v3386_v27, %v2877_v25  ;;  %v2559_v18 = vld [vmem:[%s5188_s1 + $0x2f8] sm:$0xf0] }
  0xa5   :  { %1891 = vmatpush.bf16.msra.mxu3 %v2574_v40  ;;  %1850 = vmatmul.bf16.vlgmr.msra.gmra.mxu0 %v3742_v58  ;;  %v3133_v30 = vld [vmem:[%s5188_s1 + $0x768] sm:$0xf]  ;;  %v3450_v31 = vld [vmem:[%s5188_s1 + $0x774] sm:$0xf0]  ;;  %v3006_v34 = vor.u32 %v3418_v29, %v3005_v28  ;;  %v3236_v27 = vld [vmem:[%s5188_s1 + $0xcc] sm:$0xf] }
  0xa6   :  { %1898 = vmatpush.bf16.msrb.mxu0 %v2814_v41  ;;  %1864 = vmatmul.bf16.vlgmr.msra.gmra.mxu1 %v3778_v10  ;;  %v2733_v35 = vld [vmem:[%s5188_s1 + $0x448] sm:$0xf]  ;;  %v3350_v36 = vld [vmem:[%s5188_s1 + $0x454] sm:$0xf0]  ;;  %v3134_v38 = vor.u32 %v3450_v31, %v3133_v30  ;;  %v2287_v28 = vld [vmem:[%s5188_s1 + $0xd8] sm:$0xf0] }
  0xa7   :  { %1912 = vmatpush.bf16.msrb.mxu1 %v2942_v42  ;;  %1878 = vmatmul.bf16.vlgmr.msra.gmra.mxu2 %v3756_v1  ;;  %v2861_v37 = vld [vmem:[%s5188_s1 + $0x548] sm:$0xf]  ;;  %v3382_v40 = vld [vmem:[%s5188_s1 + $0x554] sm:$0xf0]  ;;  %v2734_v48 = vor.u32 %v3350_v36, %v2733_v35  ;;  %v3268_v29 = vld [vmem:[%s5188_s1 + $0x1cc] sm:$0xf]  ;;  %v2290_v36 = vor.u32 %v3236_v27, %v2287_v28 }
  0xa8   :  { %1926 = vmatpush.bf16.msrb.mxu2 %v3070_v45  ;;  %1892 = vmatmul.bf16.vlgmr.msra.gmra.mxu3 %v3792_v17  ;;  %v2989_v41 = vld [vmem:[%s5188_s1 + $0x648] sm:$0xf]  ;;  %v3414_v42 = vld [vmem:[%s5188_s1 + $0x654] sm:$0xf0]  ;;  %v2862_v49 = vor.u32 %v3382_v40, %v2861_v37  ;;  %v2415_v31 = vld [vmem:[%s5188_s1 + $0x1d8] sm:$0xf0] }
  0xa9   :  { %1940 = vmatpush.bf16.msrb.mxu3 %v3198_v50  ;;  %v3117_v45 = vld [vmem:[%s5188_s1 + $0x748] sm:$0xf]  ;;  %v3446_v46 = vld [vmem:[%s5188_s1 + $0x754] sm:$0xf0]  ;;  %v2990_v50 = vor.u32 %v3414_v42, %v2989_v41  ;;  %v2671_v35 = vld [vmem:[%s5188_s1 + $0x3d8] sm:$0xf0]  ;;  %v2418_v37 = vor.u32 %v3268_v29, %v2415_v31 }
  0xaa   :  { %1899 = vmatpush.bf16.msrb.mxu0 %v2798_v56  ;;  %v2717_v51 = vld [vmem:[%s5188_s1 + $0x428] sm:$0xf]  ;;  %v3346_v52 = vld [vmem:[%s5188_s1 + $0x434] sm:$0xf0]  ;;  %v3118_v54 = vor.u32 %v3446_v46, %v3117_v45  ;;  %v3232_v40 = vld [vmem:[%s5188_s1 + $0xac] sm:$0xf] }
  0xab   :  { %1913 = vmatpush.bf16.msrb.mxu1 %v2926_v57  ;;  %v2845_v53 = vld [vmem:[%s5188_s1 + $0x528] sm:$0xf]  ;;  %v3378_v55 = vld [vmem:[%s5188_s1 + $0x534] sm:$0xf0]  ;;  %v2718_v61 = vor.u32 %v3346_v52, %v2717_v51  ;;  %v2271_v41 = vld [vmem:[%s5188_s1 + $0xb8] sm:$0xf0] }
  0xac   :  { %1927 = vmatpush.bf16.msrb.mxu2 %v3054_v59  ;;  %v2973_v56 = vld [vmem:[%s5188_s1 + $0x628] sm:$0xf]  ;;  %v3410_v57 = vld [vmem:[%s5188_s1 + $0x634] sm:$0xf0]  ;;  %v2846_v0 = vor.u32 %v3378_v55, %v2845_v53  ;;  %v3264_v42 = vld [vmem:[%s5188_s1 + $0x1ac] sm:$0xf]  ;;  %v2274_v52 = vor.u32 %v3232_v40, %v2271_v41 }
  0xad   :  { %1941 = vmatpush.bf16.msrb.mxu3 %v3182_v63  ;;  %v3101_v59 = vld [vmem:[%s5188_s1 + $0x728] sm:$0xf]  ;;  %v3442_v60 = vld [vmem:[%s5188_s1 + $0x734] sm:$0xf0]  ;;  %v2974_v2 = vor.u32 %v3410_v57, %v2973_v56  ;;  %v2399_v46 = vld [vmem:[%s5188_s1 + $0x1b8] sm:$0xf0] }
  0xae   :  { %1900 = vmatpush.bf16.msrb.mxu0 %v2782_v6  ;;  %v2701_v62 = vld [vmem:[%s5188_s1 + $0x408] sm:$0xf]  ;;  %v3342_v63 = vld [vmem:[%s5188_s1 + $0x414] sm:$0xf0]  ;;  %v3102_v6 = vor.u32 %v3442_v60, %v3101_v59  ;;  %v2655_v51 = vld [vmem:[%s5188_s1 + $0x3b8] sm:$0xf0]  ;;  %v2402_v53 = vor.u32 %v3264_v42, %v2399_v46 }
  0xaf   :  { %1914 = vmatpush.bf16.msrb.mxu1 %v2910_v7  ;;  %v2829_v3 = vld [vmem:[%s5188_s1 + $0x508] sm:$0xf]  ;;  %v3374_v4 = vld [vmem:[%s5188_s1 + $0x514] sm:$0xf0]  ;;  %v2702_v14 = vor.u32 %v3342_v63, %v2701_v62  ;;  %v3228_v55 = vld [vmem:[%s5188_s1 + $0x8c] sm:$0xf] }
  0xb0   :  { %1928 = vmatpush.bf16.msrb.mxu2 %v3038_v8  ;;  %v2957_v5 = vld [vmem:[%s5188_s1 + $0x608] sm:$0xf]  ;;  %v3406_v7 = vld [vmem:[%s5188_s1 + $0x614] sm:$0xf0]  ;;  %v2830_v19 = vor.u32 %v3374_v4, %v2829_v3  ;;  %v2255_v56 = vld [vmem:[%s5188_s1 + $0x98] sm:$0xf0]  ;;  %v4823_v3 = vpop.f32.mrf.mxu0 }
  0xb1   :  { %1942 = vmatpush.bf16.msrb.mxu3 %v3166_v13  ;;  %v3085_v8 = vld [vmem:[%s5188_s1 + $0x708] sm:$0xf]  ;;  %v3438_v9 = vld [vmem:[%s5188_s1 + $0x714] sm:$0xf0]  ;;  %v3272_v13 = vld [vmem:[%s5188_s1 + $0x1ec] sm:$0xf] }
  0xb2   :  { %1901 = vmatpush.bf16.msrb.mxu0 %v2766_v20  ;;  %v2958_v20 = vor.u32 %v3406_v7, %v2957_v5  ;;  %v3086_v23 = vor.u32 %v3438_v9, %v3085_v8  ;;  %v2434_v25 = vor.u32 %v3272_v13, %v2431_v15  ;;  %v3260_v57 = vld [vmem:[%s5188_s1 + $0x18c] sm:$0xf]  ;;  %v2383_v60 = vld [vmem:[%s5188_s1 + $0x198] sm:$0xf0]  ;;  %v4834_v9 = vpop.f32.mrf.mxu1 }
  0xb3   :  { %1915 = vmatpush.bf16.msrb.mxu1 %v2894_v21  ;;  %v3336_v21 = vld [vmem:[%s5188_s1 + $0x3ec] sm:$0xf]  ;;  %v2511_v62 = vld [vmem:[%s5188_s1 + $0x298] sm:$0xf0]  ;;  %v2386_v4 = vor.u32 %v3260_v57, %v2383_v60 }
  0xb4   :  { %1929 = vmatpush.bf16.msrb.mxu2 %v3022_v22  ;;  %v2687_v22 = vld [vmem:[%s5188_s1 + $0x3f8] sm:$0xf0]  ;;  %v3324_v63 = vld [vmem:[%s5188_s1 + $0x38c] sm:$0xf] }
  0xb5   :  { %1943 = vmatpush.bf16.msrb.mxu3 %v3150_v26  ;;  %v2562_v26 = vor.u32 %v3304_v16, %v2559_v18  ;;  %v2690_v30 = vor.u32 %v3336_v21, %v2687_v22  ;;  %v2239_v7 = vld [vmem:[%s5188_s1 + $0x78] sm:$0xf0]  ;;  %v3256_v8 = vld [vmem:[%s5188_s1 + $0x16c] sm:$0xf] }
  0xb6   :  { %1902 = vmatpush.bf16.msrb.mxu0 %v2750_v32  ;;  %v3300_v32 = vld [vmem:[%s5188_s1 + $0x2cc] sm:$0xf]  ;;  %v2367_v12 = vld [vmem:[%s5188_s1 + $0x178] sm:$0xf0] }
  0xb7   :  { %1916 = vmatpush.bf16.msrb.mxu1 %v2878_v33  ;;  %v2543_v33 = vld [vmem:[%s5188_s1 + $0x2d8] sm:$0xf0]  ;;  %v3288_v13 = vld [vmem:[%s5188_s1 + $0x26c] sm:$0xf] }
  0xb8   :  { %1930 = vmatpush.bf16.msrb.mxu2 %v3006_v34  ;;  %v3332_v34 = vld [vmem:[%s5188_s1 + $0x3cc] sm:$0xf]  ;;  %v2623_v16 = vld [vmem:[%s5188_s1 + $0x378] sm:$0xf0] }
  0xb9   :  { %1944 = vmatpush.bf16.msrb.mxu3 %v3134_v38  ;;  %v2546_v38 = vor.u32 %v3300_v32, %v2543_v33  ;;  %v2674_v45 = vor.u32 %v3332_v34, %v2671_v35  ;;  %v3320_v15 = vld [vmem:[%s5188_s1 + $0x36c] sm:$0xf]  ;;  %v2223_v22 = vld [vmem:[%s5188_s1 + $0x58] sm:$0xf0]  ;;  %v4877_v32 = vpop.f32.mrf.mxu3 }
  0xba   :  { %1903 = vmatpush.bf16.msrb.mxu0 %v2734_v48  ;;  %v3296_v48 = vld [vmem:[%s5188_s1 + $0x2ac] sm:$0xf]  ;;  %v2479_v27 = vld [vmem:[%s5188_s1 + $0x258] sm:$0xf0] }
  0xbb   :  { %1917 = vmatpush.bf16.msrb.mxu1 %v2862_v49  ;;  %v2527_v49 = vld [vmem:[%s5188_s1 + $0x2b8] sm:$0xf0]  ;;  %v3220_v21 = vld [vmem:[%s5188_s1 + $0x4c] sm:$0xf] }
  0xbc   :  { %1931 = vmatpush.bf16.msrb.mxu2 %v2990_v50  ;;  %v3328_v50 = vld [vmem:[%s5188_s1 + $0x3ac] sm:$0xf]  ;;  %v2607_v29 = vld [vmem:[%s5188_s1 + $0x358] sm:$0xf0]  ;;  %v2226_v31 = vor.u32 %v3220_v21, %v2223_v22 }
  0xbd   :  { %1945 = vmatpush.bf16.msrb.mxu3 %v3118_v54  ;;  %v2530_v54 = vor.u32 %v3296_v48, %v2527_v49  ;;  %v2658_v59 = vor.u32 %v3328_v50, %v2655_v51  ;;  %v3316_v28 = vld [vmem:[%s5188_s1 + $0x34c] sm:$0xf]  ;;  %v2335_v40 = vld [vmem:[%s5188_s1 + $0x138] sm:$0xf0]  ;;  %v4905_v49 = vpop.f32.mrf.mxu1 }
  0xbe   :  { %1904 = vmatpush.bf16.msrb.mxu0 %v2718_v61  ;;  %v3292_v61 = vld [vmem:[%s5188_s1 + $0x28c] sm:$0xf]  ;;  %v2463_v42 = vld [vmem:[%s5188_s1 + $0x238] sm:$0xf0] }
  0xbf   :  { %1918 = vmatpush.bf16.msrb.mxu1 %v2846_v0  ;;  %v2639_v0 = vld [vmem:[%s5188_s1 + $0x398] sm:$0xf0]  ;;  %v2514_v5 = vor.u32 %v3292_v61, %v2511_v62  ;;  %v3216_v35 = vld [vmem:[%s5188_s1 + $0x2c] sm:$0xf] }
  0xc0   :  { %1932 = vmatpush.bf16.msrb.mxu2 %v2974_v2  ;;  %v2258_v2 = vor.u32 %v3228_v55, %v2255_v56  ;;  %v2642_v11 = vor.u32 %v3324_v63, %v2639_v0  ;;  %v3280_v41 = vld [vmem:[%s5188_s1 + $0x22c] sm:$0xf]  ;;  %v2591_v48 = vld [vmem:[%s5188_s1 + $0x338] sm:$0xf0] }
  0xc1   :  { %1946 = vmatpush.bf16.msrb.mxu3 %v3102_v6  ;;  %v3224_v6 = vld [vmem:[%s5188_s1 + $0x6c] sm:$0xf]  ;;  %v2319_v56 = vld [vmem:[%s5188_s1 + $0x118] sm:$0xf0] }
  0xc2   :  { %1905 = vmatpush.bf16.msrb.mxu0 %v2702_v14  ;;  %v2495_v14 = vld [vmem:[%s5188_s1 + $0x278] sm:$0xf0]  ;;  %v2242_v18 = vor.u32 %v3224_v6, %v2239_v7  ;;  %v3312_v46 = vld [vmem:[%s5188_s1 + $0x32c] sm:$0xf] }
  0xc3   :  { %1919 = vmatpush.bf16.msrb.mxu1 %v2830_v19  ;;  %v2370_v19 = vor.u32 %v3256_v8, %v2367_v12  ;;  %v3212_v51 = vld [vmem:[%s5188_s1 + $0xc] sm:$0xf]  ;;  %v2447_v60 = vld [vmem:[%s5188_s1 + $0x218] sm:$0xf0] }
  0xc4   :  { %1933 = vmatpush.bf16.msrb.mxu2 %v2958_v20  ;;  %v2498_v20 = vor.u32 %v3288_v13, %v2495_v14  ;;  %v3244_v55 = vld [vmem:[%s5188_s1 + $0x10c] sm:$0xf]  ;;  %v2575_v62 = vld [vmem:[%s5188_s1 + $0x318] sm:$0xf0] }
  0xc5   :  { %1947 = vmatpush.bf16.msrb.mxu3 %v3086_v23  ;;  %1906 = vmatmul.bf16.vlgmr.msrb.gmra.mxu0 %v3964_v39  ;;  %v3252_v23 = vld [vmem:[%s5188_s1 + $0x14c] sm:$0xf]  ;;  %v2815_v0 = vld [vmem:[%s5188_s1 + $0x4f8] sm:$0xf0]  ;;  %v2322_v8 = vor.u32 %v3244_v55, %v2319_v56 }
  0xc6   :  { %1954 = vmatpush.bf16.msra.mxu0 %v2306_v24  ;;  %1920 = vmatmul.bf16.vlgmr.msrb.gmra.mxu1 %v3977_v44  ;;  %v2626_v24 = vor.u32 %v3320_v15, %v2623_v16  ;;  %v3276_v57 = vld [vmem:[%s5188_s1 + $0x20c] sm:$0xf]  ;;  %v3071_v7 = vld [vmem:[%s5188_s1 + $0x6f8] sm:$0xf0] }
  0xc7   :  { %1968 = vmatpush.bf16.msra.mxu1 %v2434_v25  ;;  %1934 = vmatmul.bf16.vlgmr.msrb.gmra.mxu2 %v3975_v43  ;;  %v2351_v25 = vld [vmem:[%s5188_s1 + $0x158] sm:$0xf0]  ;;  %v3308_v61 = vld [vmem:[%s5188_s1 + $0x30c] sm:$0xf] }
  0xc8   :  { %1982 = vmatpush.bf16.msra.mxu2 %v2562_v26  ;;  %1948 = vmatmul.bf16.vlgmr.msrb.gmra.mxu3 %v3985_v47  ;;  %v3284_v26 = vld [vmem:[%s5188_s1 + $0x24c] sm:$0xf]  ;;  %v2354_v33 = vor.u32 %v3252_v23, %v2351_v25  ;;  %v3199_v13 = vld [vmem:[%s5188_s1 + $0x7f8] sm:$0xf0]  ;;  %v2578_v15 = vor.u32 %v3308_v61, %v2575_v62 }
  0xc9   :  { %1996 = vmatpush.bf16.msra.mxu3 %v2690_v30  ;;  %v4875_v30 = vpop.f32.mrf.mxu2  ;;  %v2482_v34 = vor.u32 %v3284_v26, %v2479_v27  ;;  %v3368_v63 = vld [vmem:[%s5188_s1 + $0x4ec] sm:$0xf]  ;;  %v2799_v22 = vld [vmem:[%s5188_s1 + $0x4d8] sm:$0xf0] }
  0xca   :  { %1955 = vmatpush.bf16.msra.mxu0 %v2290_v36  ;;  %v2207_v36 = vld [vmem:[%s5188_s1 + $0x38] sm:$0xf0]  ;;  %v3432_v6 = vld [vmem:[%s5188_s1 + $0x6ec] sm:$0xf]  ;;  %v2818_v16 = vor.u32 %v3368_v63, %v2815_v0 }
  0xcb   :  { %1969 = vmatpush.bf16.msra.mxu1 %v2418_v37  ;;  %v3248_v37 = vld [vmem:[%s5188_s1 + $0x12c] sm:$0xf]  ;;  %v2210_v50 = vor.u32 %v3216_v35, %v2207_v36  ;;  %v2927_v25 = vld [vmem:[%s5188_s1 + $0x5d8] sm:$0xf0] }
  0xcc   :  { %1983 = vmatpush.bf16.msra.mxu2 %v2546_v38  ;;  %v2610_v38 = vor.u32 %v3316_v28, %v2607_v29  ;;  %v3464_v12 = vld [vmem:[%s5188_s1 + $0x7ec] sm:$0xf]  ;;  %v3055_v27 = vld [vmem:[%s5188_s1 + $0x6d8] sm:$0xf0] }
  0xcd   :  { %1997 = vmatpush.bf16.msra.mxu3 %v2674_v45  ;;  %v4897_v45 = vpop.f32.mrf.mxu0  ;;  %v3364_v21 = vld [vmem:[%s5188_s1 + $0x4cc] sm:$0xf]  ;;  %v2895_v56 = vld [vmem:[%s5188_s1 + $0x598] sm:$0xf0] }
  0xce   :  { %1956 = vmatpush.bf16.msra.mxu0 %v2274_v52  ;;  %v2191_v52 = vld [vmem:[%s5188_s1 + $0x18] sm:$0xf0]  ;;  %v3396_v23 = vld [vmem:[%s5188_s1 + $0x5cc] sm:$0xf] }
  0xcf   :  { %1970 = vmatpush.bf16.msra.mxu1 %v2402_v53  ;;  %v2338_v53 = vor.u32 %v3248_v37, %v2335_v40  ;;  %v3428_v26 = vld [vmem:[%s5188_s1 + $0x6cc] sm:$0xf]  ;;  %v2930_v35 = vor.u32 %v3396_v23, %v2927_v25  ;;  %v3151_v62 = vld [vmem:[%s5188_s1 + $0x798] sm:$0xf0] }
  0xd0   :  { %1984 = vmatpush.bf16.msra.mxu2 %v2530_v54  ;;  %v2466_v54 = vor.u32 %v3280_v41, %v2463_v42  ;;  %v3460_v29 = vld [vmem:[%s5188_s1 + $0x7cc] sm:$0xf]  ;;  %v3058_v36 = vor.u32 %v3428_v26, %v3055_v27  ;;  %v2911_v42 = vld [vmem:[%s5188_s1 + $0x5b8] sm:$0xf0] }
  0xd1   :  { %1998 = vmatpush.bf16.msra.mxu3 %v2658_v59  ;;  %v2594_v59 = vor.u32 %v3312_v46, %v2591_v48  ;;  %v4955_v14 = vpop.f32.mrf.mxu2  ;;  %v3360_v37 = vld [vmem:[%s5188_s1 + $0x4ac] sm:$0xf]  ;;  %v3039_v48 = vld [vmem:[%s5188_s1 + $0x6b8] sm:$0xf0] }
  0xd2   :  { %1957 = vmatpush.bf16.msra.mxu0 %v2258_v2  ;;  %v3400_v2 = vld [vmem:[%s5188_s1 + $0x5ec] sm:$0xf]  ;;  %v2863_v27 = vld [vmem:[%s5188_s1 + $0x558] sm:$0xf0] }
  0xd3   :  { %1971 = vmatpush.bf16.msra.mxu1 %v2386_v4  ;;  %v2194_v4 = vor.u32 %v3212_v51, %v2191_v52  ;;  %v3392_v40 = vld [vmem:[%s5188_s1 + $0x5ac] sm:$0xf] }
  0xd4   :  { %1985 = vmatpush.bf16.msra.mxu2 %v2514_v5  ;;  %v2943_v5 = vld [vmem:[%s5188_s1 + $0x5f8] sm:$0xf0]  ;;  %v3424_v46 = vld [vmem:[%s5188_s1 + $0x6ac] sm:$0xf]  ;;  %v2914_v52 = vor.u32 %v3392_v40, %v2911_v42 }
  0xd5   :  { %1999 = vmatpush.bf16.msra.mxu3 %v2642_v11  ;;  %v2450_v11 = vor.u32 %v3276_v57, %v2447_v60  ;;  %v4977_v28 = vpop.f32.mrf.mxu0  ;;  %v3420_v57 = vld [vmem:[%s5188_s1 + $0x68c] sm:$0xf] }
  0xd6   :  { %1958 = vmatpush.bf16.msra.mxu0 %v2242_v18  ;;  %v4957_v18 = vpop.f32.mrf.mxu3  ;;  %v3452_v61 = vld [vmem:[%s5188_s1 + $0x78c] sm:$0xf] }
  0xd7   :  { %1972 = vmatpush.bf16.msra.mxu1 %v2370_v19  ;;  %v2946_v19 = vor.u32 %v3400_v2, %v2943_v5  ;;  %v3352_v5 = vld [vmem:[%s5188_s1 + $0x46c] sm:$0xf] }
  0xd8   :  { %1986 = vmatpush.bf16.msra.mxu2 %v2498_v20  ;;  %v3074_v20 = vor.u32 %v3432_v6, %v3071_v7  ;;  %v2751_v6 = vld [vmem:[%s5188_s1 + $0x478] sm:$0xf0]  ;;  %v3384_v7 = vld [vmem:[%s5188_s1 + $0x56c] sm:$0xf] }
  0xd9   :  { %2000 = vmatpush.bf16.msra.mxu3 %v2626_v24  ;;  %v3202_v24 = vor.u32 %v3464_v12, %v3199_v13  ;;  %v5024_v55 = vpop.f32.mrf.mxu2  ;;  %v2879_v12 = vld [vmem:[%s5188_s1 + $0x578] sm:$0xf0]  ;;  %v3416_v13 = vld [vmem:[%s5188_s1 + $0x66c] sm:$0xf] }
  0xda   :  { %1959 = vmatpush.bf16.msra.mxu0 %v2226_v31  ;;  %v3183_v31 = vld [vmem:[%s5188_s1 + $0x7d8] sm:$0xf0]  ;;  %v3348_v23 = vld [vmem:[%s5188_s1 + $0x44c] sm:$0xf] }
  0xdb   :  { %1973 = vmatpush.bf16.msra.mxu1 %v2354_v33  ;;  %v4985_v33 = vpop.f32.mrf.mxu1  ;;  %v3186_v41 = vor.u32 %v3460_v29, %v3183_v31  ;;  %v3380_v25 = vld [vmem:[%s5188_s1 + $0x54c] sm:$0xf]  ;;  %v2991_v31 = vld [vmem:[%s5188_s1 + $0x658] sm:$0xf0] }
  0xdc   :  { %1987 = vmatpush.bf16.msra.mxu2 %v2482_v34  ;;  %v2802_v34 = vor.u32 %v3364_v21, %v2799_v22  ;;  %v2882_v21 = vor.u32 %v3384_v7, %v2879_v12  ;;  %v3412_v29 = vld [vmem:[%s5188_s1 + $0x64c] sm:$0xf] }
  0xdd   :  { %2001 = vmatpush.bf16.msra.mxu3 %v2610_v38  ;;  %v2783_v38 = vld [vmem:[%s5188_s1 + $0x4b8] sm:$0xf0]  ;;  %v5043_v0 = vpop.f32.mrf.mxu0  ;;  %v2994_v42 = vor.u32 %v3412_v29, %v2991_v31 }
  0xde   :  { %1960 = vmatpush.bf16.msra.mxu0 %v2210_v50  ;;  %v3456_v50 = vld [vmem:[%s5188_s1 + $0x7ac] sm:$0xf]  ;;  %v2786_v51 = vor.u32 %v3360_v37, %v2783_v38  ;;  %v5035_v60 = vpop.f32.mrf.mxu3 }
  0xdf   :  { %1974 = vmatpush.bf16.msra.mxu1 %v2338_v53  ;;  %v3042_v53 = vor.u32 %v3424_v46, %v3039_v48  ;;  %v3344_v48 = vld [vmem:[%s5188_s1 + $0x42c] sm:$0xf] }
  0xe0   :  { %1988 = vmatpush.bf16.msra.mxu2 %v2466_v54  ;;  %v2767_v54 = vld [vmem:[%s5188_s1 + $0x498] sm:$0xf0] }
  0xe1   :  { %2002 = vmatpush.bf16.msra.mxu3 %v2594_v59  ;;  %v3023_v59 = vld [vmem:[%s5188_s1 + $0x698] sm:$0xf0]  ;;  %v5097_v37 = vpop.f32.mrf.mxu2 }
  0xe2   :  { %1961 = vmatpush.bf16.msra.mxu0 %v2194_v4  ;;  %v3026_v4 = vor.u32 %v3420_v57, %v3023_v59  ;;  %v3340_v59 = vld [vmem:[%s5188_s1 + $0x40c] sm:$0xf] }
  0xe3   :  { %1975 = vmatpush.bf16.msra.mxu1 %v2322_v8  ;;  %v5054_v8 = vpop.f32.mrf.mxu1 }
  0xe4   :  { %1989 = vmatpush.bf16.msra.mxu2 %v2450_v11  ;;  %v3154_v11 = vor.u32 %v3452_v61, %v3151_v62  ;;  %v2703_v61 = vld [vmem:[%s5188_s1 + $0x418] sm:$0xf0]  ;;  %v3372_v62 = vld [vmem:[%s5188_s1 + $0x50c] sm:$0xf] }
  0xe5   :  { %2003 = vmatpush.bf16.msra.mxu3 %v2578_v15  ;;  %1962 = vmatmul.bf16.vlgmr.msra.gmra.mxu0 %v3742_v58  ;;  %v3388_v58 = vld [vmem:[%s5188_s1 + $0x58c] sm:$0xf]  ;;  %v3007_v15 = vld [vmem:[%s5188_s1 + $0x678] sm:$0xf0]  ;;  %v1739_v46 = vpop.f32.mrf.mxu0 }
  0xe6   :  { %2010 = vmatpush.bf16.msrb.mxu0 %v2818_v16  ;;  %1976 = vmatmul.bf16.vlgmr.msra.gmra.mxu1 %v3778_v10  ;;  %v2898_v2 = vor.u32 %v3388_v58, %v2895_v56  ;;  %v3448_v16 = vld [vmem:[%s5188_s1 + $0x76c] sm:$0xf]  ;;  %v3010_v22 = vor.u32 %v3416_v13, %v3007_v15  ;;  %v5099_v40 = vpop.f32.mrf.mxu3 }
  0xe7   :  { %2024 = vmatpush.bf16.msrb.mxu1 %v2946_v19  ;;  %1990 = vmatmul.bf16.vlgmr.msra.gmra.mxu2 %v3756_v1  ;;  %v3167_v1 = vld [vmem:[%s5188_s1 + $0x7b8] sm:$0xf0] }
  0xe8   :  { %2038 = vmatpush.bf16.msrb.mxu2 %v3074_v20  ;;  %2004 = vmatmul.bf16.vlgmr.msra.gmra.mxu3 %v3792_v17  ;;  %v3356_v17 = vld [vmem:[%s5188_s1 + $0x48c] sm:$0xf]  ;;  %v3170_v10 = vor.u32 %v3456_v50, %v3167_v1  ;;  %v3135_v19 = vld [vmem:[%s5188_s1 + $0x778] sm:$0xf0]  ;;  %v2754_v20 = vor.u32 %v3352_v5, %v2751_v6 }
  0xe9   :  { %2052 = vmatpush.bf16.msrb.mxu3 %v3202_v24  ;;  %v2770_v63 = vor.u32 %v3356_v17, %v2767_v54  ;;  %v2735_v24 = vld [vmem:[%s5188_s1 + $0x458] sm:$0xf0]  ;;  %v3138_v26 = vor.u32 %v3448_v16, %v3135_v19  ;;  %v3440_v17 = vld [vmem:[%s5188_s1 + $0x72c] sm:$0xf] }
  0xea   :  { %2011 = vmatpush.bf16.msrb.mxu0 %v2802_v34  ;;  %v3444_v34 = vld [vmem:[%s5188_s1 + $0x74c] sm:$0xf]  ;;  %v2738_v38 = vor.u32 %v3348_v23, %v2735_v24  ;;  %v2719_v50 = vld [vmem:[%s5188_s1 + $0x438] sm:$0xf0]  ;;  %v1767_v12 = vpop.f32.mrf.mxu2  ;;  %v1644_v24 = vadd.f32 %v4905_v49, %v4897_v45 }
  0xeb   :  { %2025 = vmatpush.bf16.msrb.mxu1 %v2930_v35  ;;  %v3119_v35 = vld [vmem:[%s5188_s1 + $0x758] sm:$0xf0]  ;;  %v3436_v5 = vld [vmem:[%s5188_s1 + $0x70c] sm:$0xf] }
  0xec   :  { %2039 = vmatpush.bf16.msrb.mxu2 %v3058_v36  ;;  %v1642_v36 = vadd.f32 %v4834_v9, %v4823_v3  ;;  %v3376_v3 = vld [vmem:[%s5188_s1 + $0x52c] sm:$0xf]  ;;  %v3122_v9 = vor.u32 %v3444_v34, %v3119_v35  ;;  %v2847_v1 = vld [vmem:[%s5188_s1 + $0x538] sm:$0xf0] }
  0xed   :  { %2053 = vmatpush.bf16.msrb.mxu3 %v3186_v41  ;;  %v2866_v41 = vor.u32 %v3380_v25, %v2863_v27  ;;  %v3103_v54 = vld [vmem:[%s5188_s1 + $0x738] sm:$0xf0]  ;;  %v2850_v56 = vor.u32 %v3376_v3, %v2847_v1 }
  0xee   :  { %2012 = vmatpush.bf16.msrb.mxu0 %v2786_v51  ;;  %v3408_v51 = vld [vmem:[%s5188_s1 + $0x62c] sm:$0xf]  ;;  %v1656_v58 = vadd.f32 %v4875_v30, %v1642_v36  ;;  %v3106_v30 = vor.u32 %v3440_v17, %v3103_v54  ;;  %v3087_v6 = vld [vmem:[%s5188_s1 + $0x718] sm:$0xf0]  ;;  %v1781_v16 = vpop.f32.mrf.mxu3 }
  0xef   :  { %2026 = vmatpush.bf16.msrb.mxu1 %v2914_v52  ;;  %v2975_v52 = vld [vmem:[%s5188_s1 + $0x638] sm:$0xf0] }
  0xf0   :  { %2040 = vmatpush.bf16.msrb.mxu2 %v3042_v53  ;;  %v1753_v53 = vpop.f32.mrf.mxu1  ;;  %v2978_v57 = vor.u32 %v3408_v51, %v2975_v52  ;;  %v1670_v7 = vadd.f32 %v4877_v32, %v1656_v58 }
  0xf1   :  { %2054 = vmatpush.bf16.msrb.mxu3 %v3170_v10  ;;  %v2722_v10 = vor.u32 %v3344_v48, %v2719_v50  ;;  %v1754_v19 = vadd.f32 %v1753_v53, %v1739_v46 }
  0xf2   :  { %2013 = vmatpush.bf16.msrb.mxu0 %v2770_v63  ;;  %v2831_v63 = vld [vmem:[%s5188_s1 + $0x518] sm:$0xf0]  ;;  %v1769_v27 = vpop.f32.mrf.mxu2 }
  0xf3   :  { %2027 = vmatpush.bf16.msrb.mxu1 %v2898_v2  ;;  %v3404_v2 = vld [vmem:[%s5188_s1 + $0x60c] sm:$0xf]  ;;  %v2834_v13 = vor.u32 %v3372_v62, %v2831_v63  ;;  %v1768_v32 = vadd.f32 %v1767_v12, %v1754_v19 }
  0xf4   :  { %2041 = vmatpush.bf16.msrb.mxu2 %v3026_v4  ;;  %v2959_v4 = vld [vmem:[%s5188_s1 + $0x618] sm:$0xf0] }
  0xf5   :  { %2055 = vmatpush.bf16.msrb.mxu3 %v3154_v11  ;;  %v2706_v11 = vor.u32 %v3340_v59, %v2703_v61  ;;  %v2962_v15 = vor.u32 %v3404_v2, %v2959_v4 }
  0xf6   :  { %2014 = vmatpush.bf16.msrb.mxu0 %v2754_v20  ;;  %v3090_v20 = vor.u32 %v3436_v5, %v3087_v6  ;;  %v1783_v29 = vpop.f32.mrf.mxu3 }
  0xf7   :  { %2028 = vmatpush.bf16.msrb.mxu1 %v2882_v21  ;;  %v1741_v21 = vpop.f32.mrf.mxu0 }
  0xf8   :  { %2042 = vmatpush.bf16.msrb.mxu2 %v3010_v22  ;;  %v1684_v22 = vadd.f32 %v4977_v28, %v1670_v7  ;;  %v1755_v23 = vpop.f32.mrf.mxu1  ;;  %v1782_v28 = vadd.f32 %v1781_v16, %v1768_v32 }
  0xf9   :  { %2056 = vmatpush.bf16.msrb.mxu3 %v3138_v26  ;;  %v1658_v26 = vadd.f32 %v4955_v14, %v1644_v24 }
  0xfa   :  { %2015 = vmatpush.bf16.msrb.mxu0 %v2738_v38  ;;  %v1698_v25 = vadd.f32 %v4985_v33, %v1684_v22  ;;  %v1756_v33 = vadd.f32 %v1755_v23, %v1741_v21 }
  0xfb   :  { %2029 = vmatpush.bf16.msrb.mxu1 %v2866_v41  ;;  %v1672_v49 = vadd.f32 %v4957_v18, %v1658_v26 }
  0xfc   :  { %2043 = vmatpush.bf16.msrb.mxu2 %v2994_v42  ;;  %v1712_v45 = vadd.f32 %v5024_v55, %v1698_v25  ;;  %v1770_v35 = vadd.f32 %v1769_v27, %v1756_v33 }
  0xfd   :  { %2057 = vmatpush.bf16.msrb.mxu3 %v3122_v9  ;;  %v1686_v14 = vadd.f32 %v5043_v0, %v1672_v49 }
  0xfe   :  { %2016 = vmatpush.bf16.msrb.mxu0 %v2722_v10  ;;  %v1784_v42 = vadd.f32 %v1783_v29, %v1770_v35 }
  0xff   :  { %2030 = vmatpush.bf16.msrb.mxu1 %v2850_v56  ;;  %v1700_v55 = vadd.f32 %v5054_v8, %v1686_v14 }
 0x100   :  { %2044 = vmatpush.bf16.msrb.mxu2 %v2978_v57 }
 0x101   :  { %2058 = vmatpush.bf16.msrb.mxu3 %v3106_v30  ;;  %v1714_v41 = vadd.f32 %v5097_v37, %v1700_v55 }
 0x102   :  { %2017 = vmatpush.bf16.msrb.mxu0 %v2706_v11 }
 0x103   :  { %2031 = vmatpush.bf16.msrb.mxu1 %v2834_v13  ;;  %v1728_v51 = vadd.f32 %v5099_v40, %v1714_v41 }
 0x104   :  { %2045 = vmatpush.bf16.msrb.mxu2 %v2962_v15 }
 0x105   :  { %2059 = vmatpush.bf16.msrb.mxu3 %v3090_v20  ;;  %2018 = vmatmul.bf16.vlgmr.msrb.gmra.mxu0 %v3964_v39  ;;  %v5165_v39 = vld [vmem:[%s5190_s2] sm:$0xf] }
 0x106   :  { %2032 = vmatmul.bf16.vlgmr.msrb.gmra.mxu1 %v3977_v44  ;;  %v1795_v44 = vpop.f32.mrf.mxu0  ;;  %v2095_v34 = vperm.slane %v5165_v39, 0  ;;  %v2096_v3 = vperm.slane %v5165_v39, 1 }
 0x107   :  { %2046 = vmatmul.bf16.vlgmr.msrb.gmra.mxu2 %v3975_v43  ;;  %v1796_v31 = vadd.f32 %v1795_v44, %v1782_v28  ;;  %v1809_v43 = vpop.f32.mrf.mxu1 }
 0x108   :  { %2060 = vmatmul.bf16.vlgmr.msrb.gmra.mxu3 %v3985_v47  ;;  %v1726_v47 = vadd.f32 %v5035_v60, %v1712_v45  ;;  %v2107_v37 = vadd.f32 %v2095_v34, %v1728_v51 }
 0x109   :  { %v1810_v36 = vadd.f32 %v1809_v43, %v1796_v31 }
 0x10a   :  { %v2103_v18 = vadd.f32 %v2095_v34, %v1726_v47  ;;  %v1823_v38 = vpop.f32.mrf.mxu2  ;;  %v2123_v61 = vmul.f32 0.01, %v2107_v37  ;;  %vm2115_vm2 = vcmp.ge.f32.partialorder %v2107_v37, 0.0 }
 0x10b   :  { %v1824_v46 = vadd.f32 %v1823_v38, %v1810_v36  ;;  %v1837_v50 = vpop.f32.mrf.mxu3 }
 0x10c   :  { %v2119_v60 = vmul.f32 0.01, %v2103_v18  ;;  %vm2111_vm0 = vcmp.ge.f32.partialorder %v2103_v18, 0.0  ;;  %v2131_v30 = vsel %vm2115_vm2, %v2107_v37, %v2123_v61 }
 0x10d   :  { %v1838_v0 = vadd.f32 %v1837_v50, %v1824_v46 }
 0x10e   :  { %v1797_v48 = vpop.f32.mrf.mxu0  ;;  %v2127_v54 = vsel %vm2111_vm0, %v2103_v18, %v2119_v60 }
 0x10f   :  { %v1798_v9 = vadd.f32 %v1797_v48, %v1784_v42  ;;  %v1811_v1 = vpop.f32.mrf.mxu1  ;;  %v2104_v52 = vadd.f32 %v2096_v3, %v1838_v0 }
 0x111   :  { %vm2112_vm1 = vcmp.ge.f32.partialorder %v2104_v52, 0.0  ;;  %v2120_v8 = vmul.f32 0.01, %v2104_v52  ;;  %v1812_v53 = vadd.f32 %v1811_v1, %v1798_v9  ;;  %v2097_v9 = vperm.slane %v5165_v39, 2 }
 0x112   :  { %v1825_v17 = vpop.f32.mrf.mxu2 }
 0x113   :  { %v2128_v58 = vsel %vm2112_vm1, %v2104_v52, %v2120_v8  ;;  %v1826_v10 = vadd.f32 %v1825_v17, %v1812_v53  ;;  %v1839_v56 = vpop.f32.mrf.mxu3 }
 0x114   :  { %v2135_v57 = vpack.c.bf16 %v2128_v58, %v2127_v54  ;;  %v2098_v58 = vperm.slane %v5165_v39, 3 }
 0x115   :  { %v1840_v59 = vadd.f32 %v1839_v56, %v1826_v10 }
 0x116   :  { %2139 = vst [vmem:[%s5191_s3] sm:$0xff] %v2135_v57 }
 0x117   :  { %v2108_v62 = vadd.f32 %v2096_v3, %v1840_v59 }
 0x119   :  { %vm2116_vm3 = vcmp.ge.f32.partialorder %v2108_v62, 0.0  ;;  %v2124_v40 = vmul.f32 0.01, %v2108_v62 }
 0x11b   :  { %v2132_v63 = vsel %vm2116_vm3, %v2108_v62, %v2124_v40 }
 0x11c   :  { %v2137_v2 = vpack.c.bf16 %v2132_v63, %v2131_v30 }
 0x11e   :  { %2141 = vst [vmem:[%s5191_s3 + $0x10] sm:$0xff] %v2137_v2 }
 0x122   :  { %v1851_v4 = vpop.f32.mrf.mxu0 }
 0x123   :  { %v1865_v5 = vpop.f32.mrf.mxu1 }
 0x124   :  { %v1866_v24 = vadd.f32 %v1865_v5, %v1851_v4 }
 0x12a   :  { %v1879_v6 = vpop.f32.mrf.mxu2  ;;  %v1853_v11 = vpop.f32.mrf.mxu0 }
 0x12b   :  { %v1893_v7 = vpop.f32.mrf.mxu3  ;;  %v1867_v12 = vpop.f32.mrf.mxu1  ;;  %v1880_v28 = vadd.f32 %v1879_v6, %v1866_v24 }
 0x12c   :  { %v1868_v44 = vadd.f32 %v1867_v12, %v1853_v11 }
 0x12d   :  { %v1894_v29 = vadd.f32 %v1893_v7, %v1880_v28 }
 0x132   :  { %v1881_v13 = vpop.f32.mrf.mxu2 }
 0x133   :  { %v1895_v15 = vpop.f32.mrf.mxu3  ;;  %v1882_v34 = vadd.f32 %v1881_v13, %v1868_v44 }
 0x135   :  { %v1896_v18 = vadd.f32 %v1895_v15, %v1882_v34 }
 0x142   :  { %v1907_v16 = vpop.f32.mrf.mxu0 }
 0x143   :  { %v1921_v19 = vpop.f32.mrf.mxu1  ;;  %v1908_v33 = vadd.f32 %v1907_v16, %v1894_v29 }
 0x145   :  { %v1922_v14 = vadd.f32 %v1921_v19, %v1908_v33 }
 0x14a   :  { %v1935_v20 = vpop.f32.mrf.mxu2  ;;  %v1909_v22 = vpop.f32.mrf.mxu0 }
 0x14b   :  { %v1949_v21 = vpop.f32.mrf.mxu3  ;;  %v1923_v23 = vpop.f32.mrf.mxu1  ;;  %v1936_v36 = vadd.f32 %v1935_v20, %v1922_v14  ;;  %v1910_v48 = vadd.f32 %v1909_v22, %v1896_v18 }
 0x14d   :  { %v1950_v3 = vadd.f32 %v1949_v21, %v1936_v36  ;;  %v1924_v60 = vadd.f32 %v1923_v23, %v1910_v48 }
 0x14f   :  { %v2105_v52 = vadd.f32 %v2097_v9, %v1950_v3 }
 0x151   :  { %v2121_v59 = vmul.f32 0.01, %v2105_v52  ;;  %vm2113_vm4 = vcmp.ge.f32.partialorder %v2105_v52, 0.0 }
 0x152   :  { %v1937_v32 = vpop.f32.mrf.mxu2 }
 0x153   :  { %v1951_v25 = vpop.f32.mrf.mxu3  ;;  %v1938_v53 = vadd.f32 %v1937_v32, %v1924_v60  ;;  %v2129_v4 = vsel %vm2113_vm4, %v2105_v52, %v2121_v59 }
 0x155   :  { %v1952_v61 = vadd.f32 %v1951_v25, %v1938_v53 }
 0x157   :  { %v2109_v5 = vadd.f32 %v2097_v9, %v1952_v61 }
 0x159   :  { %v2125_v39 = vmul.f32 0.01, %v2109_v5  ;;  %vm2117_vm6 = vcmp.ge.f32.partialorder %v2109_v5, 0.0 }
 0x15b   :  { %v2133_v19 = vsel %vm2117_vm6, %v2109_v5, %v2125_v39 }
 0x162   :  { %v1963_v26 = vpop.f32.mrf.mxu0 }
 0x163   :  { %v1977_v27 = vpop.f32.mrf.mxu1 }
 0x164   :  { %v1978_v31 = vadd.f32 %v1977_v27, %v1963_v26 }
 0x16a   :  { %v1991_v45 = vpop.f32.mrf.mxu2  ;;  %v1965_v43 = vpop.f32.mrf.mxu0 }
 0x16b   :  { %v2005_v49 = vpop.f32.mrf.mxu3  ;;  %v1979_v47 = vpop.f32.mrf.mxu1  ;;  %v1992_v35 = vadd.f32 %v1991_v45, %v1978_v31 }
 0x16c   :  { %v1980_v41 = vadd.f32 %v1979_v47, %v1965_v43 }
 0x16d   :  { %v2006_v38 = vadd.f32 %v2005_v49, %v1992_v35 }
 0x172   :  { %v1993_v55 = vpop.f32.mrf.mxu2 }
 0x173   :  { %v2007_v42 = vpop.f32.mrf.mxu3  ;;  %v1994_v1 = vadd.f32 %v1993_v55, %v1980_v41 }
 0x175   :  { %v2008_v17 = vadd.f32 %v2007_v42, %v1994_v1 }
 0x182   :  { %v2019_v46 = vpop.f32.mrf.mxu0 }
 0x183   :  { %v2020_v50 = vadd.f32 %v2019_v46, %v2006_v38  ;;  %v2033_v0 = vpop.f32.mrf.mxu1 }
 0x185   :  { %v2034_v51 = vadd.f32 %v2033_v0, %v2020_v50 }
 0x18a   :  { %v2047_v8 = vpop.f32.mrf.mxu2  ;;  %v2021_v10 = vpop.f32.mrf.mxu0 }
 0x18b   :  { %v2048_v54 = vadd.f32 %v2047_v8, %v2034_v51  ;;  %v2061_v37 = vpop.f32.mrf.mxu3  ;;  %v2022_v57 = vadd.f32 %v2021_v10, %v2008_v17  ;;  %v2035_v40 = vpop.f32.mrf.mxu1 }
 0x18d   :  { %v2062_v56 = vadd.f32 %v2061_v37, %v2048_v54  ;;  %v2036_v63 = vadd.f32 %v2035_v40, %v2022_v57 }
 0x18f   :  { %v2106_v62 = vadd.f32 %v2098_v58, %v2062_v56 }
 0x191   :  { %vm2114_vm5 = vcmp.ge.f32.partialorder %v2106_v62, 0.0  ;;  %v2122_v30 = vmul.f32 0.01, %v2106_v62 }
 0x192   :  { %v2049_v2 = vpop.f32.mrf.mxu2 }
 0x193   :  { %v2130_v6 = vsel %vm2114_vm5, %v2106_v62, %v2122_v30  ;;  %v2050_v7 = vadd.f32 %v2049_v2, %v2036_v63  ;;  %v2063_v12 = vpop.f32.mrf.mxu3 }
 0x194   :  { %v2136_v11 = vpack.c.bf16 %v2130_v6, %v2129_v4 }
 0x195   :  { %v2064_v13 = vadd.f32 %v2063_v12, %v2050_v7 }
 0x196   :  { %2140 = vst [vmem:[%s5191_s3 + $0x8] sm:$0xff] %v2136_v11 }
 0x197   :  { %v2110_v15 = vadd.f32 %v2098_v58, %v2064_v13 }
 0x199   :  { %vm2118_vm7 = vcmp.ge.f32.partialorder %v2110_v15, 0.0  ;;  %v2126_v16 = vmul.f32 0.01, %v2110_v15 }
 0x19b   :  { %v2134_v20 = vsel %vm2118_vm7, %v2110_v15, %v2126_v16 }
 0x19c   :  { %v2138_v21 = vpack.c.bf16 %v2134_v20, %v2133_v19 }
 0x19e   :  { %2142 = vst [vmem:[%s5191_s3 + $0x18] sm:$0xff] %v2138_v21 }

</bundles_post_ra>
